<compile_context>
chip_gen: v7x
topology: tpu7x:2x2x1
jax: 0.10.0
libtpu: 0.0.40
codegen_flags: <defaults>
</compile_context>

<pallas_src>
import math

import jax
import jax.numpy as jnp
from jax import lax
from jax.experimental import pallas as pl
from jax.experimental.pallas import tpu as pltpu


# ----------------------------- small config -----------------------------
B_AUDIO_LEN = 400          # raw audio samples
VOCAB = 32                 # vocab size (blank / pad_token_id = 0)
BLANK = 0
HID = 32                   # transformer hidden size
NHEADS = 4
DHEAD = HID // NHEADS
FFN = 64
CONV_CH = 16
CONV_CFG = [(10, 5), (3, 2)]   # (kernel, stride) per conv layer
TGT_LEN = 6


def _gelu(x):
    # tanh-approx GELU (VPU/EUP friendly inside Mosaic)
    return 0.5 * x * (1.0 + jnp.tanh(0.7978845608028654 * (x + 0.044715 * x * x * x)))


# ----------------------------- fused Pallas kernel -----------------------------
def _fused_kernel(pcat_ref, mask_ref,
                  w1bd_ref, w2_ref,
                  fpg_ref, fpb_ref, fpw_ref, fpbb_ref,
                  eg_ref, eb_ref,
                  qkvw_ref, qkvb_ref, ow_ref, ob_ref,
                  l1g_ref, l1b_ref,
                  f1w_ref, f1b_ref, f2w_ref, f2b_ref,
                  l2g_ref, l2b_ref,
                  lmw_ref, lmb_ref,
                  logits_ref, logp_ref):
    """One grid step = one batch element.  Everything stays in VMEM / vregs."""

    def ln(x, g, b, eps=1e-5):
        mu = jnp.mean(x, axis=-1, keepdims=True)
        var = jnp.mean((x - mu) * (x - mu), axis=-1, keepdims=True)
        return (x - mu) * lax.rsqrt(var + eps) * g + b

    # --- conv feature extractor: both strided convs as two matmuls ---
    p = pcat_ref[0]                                                      # (Tf, K2*K1)
    y1 = _gelu(jnp.dot(p, w1bd_ref[...], preferred_element_type=jnp.float32))   # (Tf, K2*Cc)
    feat = _gelu(jnp.dot(y1, w2_ref[...], preferred_element_type=jnp.float32))  # (Tf, Cc)

    # --- feature projection (LN + Linear) + encoder LayerNorm ---
    x = ln(feat, fpg_ref[...], fpb_ref[...])
    h = jnp.dot(x, fpw_ref[...], preferred_element_type=jnp.float32) + fpbb_ref[...]
    h = ln(h, eg_ref[...], eb_ref[...])                                  # (Tf, HID)

    # --- multi-head self attention (fused QKV projection) ---
    qkv = jnp.dot(h, qkvw_ref[...], preferred_element_type=jnp.float32) + qkvb_ref[...]
    q = qkv[:, 0:HID]
    k = qkv[:, HID:2 * HID]
    v = qkv[:, 2 * HID:3 * HID]
    mask = mask_ref[0]                                                   # (1, Tf)
    ow = ow_ref[...]                                                     # (HID, HID)
    scale = 1.0 / math.sqrt(DHEAD)

    ctx = None
    for hd in range(NHEADS):
        lo, hi = hd * DHEAD, (hd + 1) * DHEAD
        qh, kh, vh = q[:, lo:hi], k[:, lo:hi], v[:, lo:hi]
        s = lax.dot_general(qh, kh, (((1,), (1,)), ((), ())),
                            preferred_element_type=jnp.float32) * scale  # (Tf, Tf)
        s = jnp.where(mask > 0.5, s, -1e30)                              # mask padded keys
        m = jnp.maximum(jnp.max(s, axis=-1, keepdims=True), -1e30)       # all-masked-row guard
        pexp = jnp.exp(s - m)
        denom = jnp.sum(pexp, axis=-1, keepdims=True)
        pexp = pexp * pl.reciprocal(denom, approx=True)                  # EUP reciprocal
        oh = jnp.dot(pexp, vh, preferred_element_type=jnp.float32)       # (Tf, Dh)
        contrib = jnp.dot(oh, ow[lo:hi, :], preferred_element_type=jnp.float32)  # (Tf, HID)
        ctx = contrib if ctx is None else ctx + contrib
    attn = ctx + ob_ref[...]
    h = ln(h + attn, l1g_ref[...], l1b_ref[...])

    # --- feed-forward ---
    ff = _gelu(jnp.dot(h, f1w_ref[...], preferred_element_type=jnp.float32) + f1b_ref[...])
    ff = jnp.dot(ff, f2w_ref[...], preferred_element_type=jnp.float32) + f2b_ref[...]
    h = ln(h + ff, l2g_ref[...], l2b_ref[...])

    # --- LM head + log-softmax (both emitted from the same kernel) ---
    logits = jnp.dot(h, lmw_ref[...], preferred_element_type=jnp.float32) + lmb_ref[...]
    logits_ref[0] = logits
    z = logits - jnp.max(logits, axis=-1, keepdims=True)
    logp_ref[0] = z - jnp.log(jnp.sum(jnp.exp(z), axis=-1, keepdims=True))


def fused_forward(pcat, frame_mask, wlist):
    """pcat: (B, Tf, K2*K1) composed conv patches; frame_mask: (B, 1, Tf) float."""
    B, Tf, KK = pcat.shape
    w_specs = [pl.BlockSpec(w.shape, lambda b: (0, 0)) for w in wlist]
    return pl.pallas_call(
        _fused_kernel,
        out_shape=(jax.ShapeDtypeStruct((B, Tf, VOCAB), jnp.float32),
                   jax.ShapeDtypeStruct((B, Tf, VOCAB), jnp.float32)),
        grid=(B,),
        in_specs=[pl.BlockSpec((1, Tf, KK), lambda b: (b, 0, 0)),
                  pl.BlockSpec((1, 1, Tf), lambda b: (b, 0, 0))] + w_specs,
        out_specs=(pl.BlockSpec((1, Tf, VOCAB), lambda b: (b, 0, 0)),
                   pl.BlockSpec((1, Tf, VOCAB), lambda b: (b, 0, 0))),
        compiler_params=pltpu.CompilerParams(dimension_semantics=("parallel",)),
    )(pcat, frame_mask, *wlist)


# ----------------------------- model glue -----------------------------
def feat_extract_output_lengths(lens):
    for kk, ss in CONV_CFG:
        lens = (lens - kk) // ss + 1
    return lens.astype(jnp.int32)


def ctc_loss_mean(log_probs_tbv, targets, input_lengths, target_lengths, blank=0):
    """PyTorch-style CTC loss, reduction='mean' (per-sequence NLL / target_len, averaged).

    The per-step emission gather is hoisted out of the sequential scan.
    """
    T, B, V = log_probs_tbv.shape
    L = targets.shape[1]
    S = 2 * L + 1
    NEG = -1e30
    tgt = jnp.where(targets >= 0, targets, 0).astype(jnp.int32)
    ext = jnp.zeros((B, S), dtype=jnp.int32).at[:, 1::2].set(tgt)        # blanks interleaved
    ext_m2 = jnp.concatenate([jnp.full((B, 2), -1, jnp.int32), ext[:, :-2]], axis=1)
    can_skip = (ext != blank) & (ext != ext_m2)

    # all emissions gathered once: (T, B, S); scan body is pure elementwise + lse3
    emit_all = jnp.take_along_axis(
        log_probs_tbv, jnp.broadcast_to(ext[None, :, :], (T, B, S)), axis=2)

    alpha0 = jnp.full((B, S), NEG)
    alpha0 = alpha0.at[:, 0].set(emit_all[0, :, 0])
    alpha0 = alpha0.at[:, 1].set(jnp.where(target_lengths >= 1, emit_all[0, :, 1], NEG))

    def lse3(a, b, c):
        m = jnp.maximum(jnp.maximum(a, b), c)
        m_safe = jnp.where(m <= NEG / 2, 0.0, m)
        out = m_safe + jnp.log(jnp.exp(a - m_safe) + jnp.exp(b - m_safe) + jnp.exp(c - m_safe))
        return jnp.where(m <= NEG / 2, NEG, out)

    def step(alpha, inp):
        emit, t = inp
        a1 = jnp.concatenate([jnp.full((B, 1), NEG), alpha[:, :-1]], axis=1)
        a2 = jnp.concatenate([jnp.full((B, 2), NEG), alpha[:, :-2]], axis=1)
        a2 = jnp.where(can_skip, a2, NEG)
        new_alpha = lse3(alpha, a1, a2) + emit
        valid = (t < input_lengths)[:, None]
        return jnp.where(valid, new_alpha, alpha), None

    alpha_f, _ = lax.scan(step, alpha0, (emit_all[1:], jnp.arange(1, T)))
    i_blank = (2 * target_lengths)[:, None]
    i_label = (2 * target_lengths - 1)[:, None]
    a_b = jnp.take_along_axis(alpha_f, i_blank, axis=1)[:, 0]
    a_l = jnp.take_along_axis(alpha_f, i_label, axis=1)[:, 0]
    m = jnp.maximum(a_b, a_l)
    ll = m + jnp.log(jnp.exp(a_b - m) + jnp.exp(a_l - m))
    nll = -ll
    return jnp.mean(nll / target_lengths.astype(jnp.float32))


def init_params(key):
    ks = jax.random.split(key, 24)
    s = 0.05
    p = {
        "conv1_w": s * jax.random.normal(ks[0], (CONV_CH, 1, CONV_CFG[0][0]), jnp.float32),
        "conv2_w": s * jax.random.normal(ks[1], (CONV_CH, CONV_CH, CONV_CFG[1][0]), jnp.float32),
        "fp_ln_g": jnp.ones((CONV_CH,), jnp.float32),
        "fp_ln_b": jnp.zeros((CONV_CH,), jnp.float32),
        "fp_w": s * jax.random.normal(ks[2], (CONV_CH, HID), jnp.float32),
        "fp_b": jnp.zeros((HID,), jnp.float32),
        "enc_ln_g": jnp.ones((HID,), jnp.float32),
        "enc_ln_b": jnp.zeros((HID,), jnp.float32),
        "q_w": s * jax.random.normal(ks[3], (HID, HID), jnp.float32),
        "q_b": jnp.zeros((HID,), jnp.float32),
        "k_w": s * jax.random.normal(ks[4], (HID, HID), jnp.float32),
        "k_b": jnp.zeros((HID,), jnp.float32),
        "v_w": s * jax.random.normal(ks[5], (HID, HID), jnp.float32),
        "v_b": jnp.zeros((HID,), jnp.float32),
        "o_w": s * jax.random.normal(ks[6], (HID, HID), jnp.float32),
        "o_b": jnp.zeros((HID,), jnp.float32),
        "ln1_g": jnp.ones((HID,), jnp.float32),
        "ln1_b": jnp.zeros((HID,), jnp.float32),
        "ff1_w": s * jax.random.normal(ks[7], (HID, FFN), jnp.float32),
        "ff1_b": jnp.zeros((FFN,), jnp.float32),
        "ff2_w": s * jax.random.normal(ks[8], (FFN, HID), jnp.float32),
        "ff2_b": jnp.zeros((HID,), jnp.float32),
        "ln2_g": jnp.ones((HID,), jnp.float32),
        "ln2_b": jnp.zeros((HID,), jnp.float32),
        "lm_w": s * jax.random.normal(ks[9], (HID, VOCAB), jnp.float32),
        "lm_b": jnp.zeros((VOCAB,), jnp.float32),
    }
    return p


def forward(params, inputs, input_attention, targets):
    """Mirrors Wav2Vec2ForCTC(inputs, attention_mask, labels) -> (loss, logits)."""
    B, Taud = inputs.shape
    (K1, S1), (K2, S2) = CONV_CFG
    T1 = (Taud - K1) // S1 + 1
    Tf = (T1 - K2) // S2 + 1
    RF = S1 * (K2 - 1) + K1            # composed receptive field per output frame
    hop = S1 * S2                      # composed stride

    # --- composed-receptive-field patches: one tiny gather + static slices ---
    idx = jnp.arange(Tf)[:, None] * hop + jnp.arange(RF)[None, :]        # (Tf, RF)
    windows = inputs.astype(jnp.float32)[:, idx]                         # (B, Tf, RF)
    pcat = jnp.concatenate(
        [windows[:, :, k * S1:k * S1 + K1] for k in range(K2)], axis=-1)  # (B, Tf, K2*K1)

    # --- frame-level attention mask from raw attention_mask ---
    in_lens = feat_extract_output_lengths(jnp.sum(input_attention, axis=-1))
    frame_mask = (jnp.arange(Tf)[None, :] < in_lens[:, None]).astype(jnp.float32)[:, None, :]

    # --- fold PyTorch conv weights into the two-matmul form ---
    w1 = jnp.transpose(params["conv1_w"], (2, 1, 0)).reshape(K1, CONV_CH)     # (K1, Cc)
    w1bd = jnp.zeros((K2 * K1, K2 * CONV_CH), jnp.float32)                    # block-diag replication
    for k in range(K2):
        w1bd = w1bd.at[k * K1:(k + 1) * K1, k * CONV_CH:(k + 1) * CONV_CH].set(w1)
    w2 = jnp.transpose(params["conv2_w"], (2, 1, 0)).reshape(K2 * CONV_CH, CONV_CH)

    # --- fused QKV weights ---
    qkv_w = jnp.concatenate([params["q_w"], params["k_w"], params["v_w"]], axis=1)   # (HID, 3*HID)
    qkv_b = jnp.concatenate([params["q_b"], params["k_b"], params["v_b"]], axis=0)   # (3*HID,)

    row = lambda a: a.reshape(1, -1).astype(jnp.float32)
    wlist = [
        w1bd, w2,
        row(params["fp_ln_g"]), row(params["fp_ln_b"]),
        params["fp_w"], row(params["fp_b"]),
        row(params["enc_ln_g"]), row(params["enc_ln_b"]),
        qkv_w, row(qkv_b),
        params["o_w"], row(params["o_b"]),
        row(params["ln1_g"]), row(params["ln1_b"]),
        params["ff1_w"], row(params["ff1_b"]),
        params["ff2_w"], row(params["ff2_b"]),
        row(params["ln2_g"]), row(params["ln2_b"]),
        params["lm_w"], row(params["lm_b"]),
    ]

    # --- single fused Pallas call: convs -> encoder -> LM head -> log-softmax ---
    logits, log_probs = fused_forward(pcat, frame_mask, wlist)           # (B, Tf, V) x2

    # --- CTC loss (sequential DP in JAX) ---
    log_probs_tbv = jnp.transpose(log_probs, (1, 0, 2))                  # (T, B, V)
    target_lengths = jnp.sum(targets >= 0, axis=-1).astype(jnp.int32)
    loss = ctc_loss_mean(log_probs_tbv, targets, in_lens, target_lengths, blank=BLANK)
    return loss, logits


if __name__ == "__main__":
    B = 2
    key = jax.random.PRNGKey(0)
    k_in, k_tgt = jax.random.split(key)

    inputs = jax.random.normal(k_in, (B, B_AUDIO_LEN), jnp.float32)
    input_attention = jnp.concatenate(
        [jnp.ones((1, B_AUDIO_LEN), jnp.int32),
         jnp.concatenate([jnp.ones((1, 300), jnp.int32), jnp.zeros((1, 100), jnp.int32)], axis=1)],
        axis=0)
    targets = jax.random.randint(k_tgt, (B, TGT_LEN), 1, VOCAB).astype(jnp.int32)
    targets = targets.at[1, -1].set(-100)   # HF-style label padding

    params = init_params(jax.random.PRNGKey(1))

    fwd = jax.jit(forward)
    loss, logits = fwd(params, inputs, input_attention, targets)
    jax.block_until_ready((loss, logits))

    assert logits.shape[0] == B and logits.shape[-1] == VOCAB
    assert jnp.isfinite(loss)
    print("KERNEL_OK")
</pallas_src>

<mosaic_0001>
module attributes {stable_mosaic.version = 11 : i64} {
  func.func @_fused_kernel(%arg0: i32, %arg1: memref<1x39x30xf32, #tpu.memory_space<vmem>>, %arg2: memref<1x1x39xf32, #tpu.memory_space<vmem>>, %arg3: memref<30x48xf32, #tpu.memory_space<vmem>>, %arg4: memref<48x16xf32, #tpu.memory_space<vmem>>, %arg5: memref<1x16xf32, #tpu.memory_space<vmem>>, %arg6: memref<1x16xf32, #tpu.memory_space<vmem>>, %arg7: memref<16x32xf32, #tpu.memory_space<vmem>>, %arg8: memref<1x32xf32, #tpu.memory_space<vmem>>, %arg9: memref<1x32xf32, #tpu.memory_space<vmem>>, %arg10: memref<1x32xf32, #tpu.memory_space<vmem>>, %arg11: memref<32x96xf32, #tpu.memory_space<vmem>>, %arg12: memref<1x96xf32, #tpu.memory_space<vmem>>, %arg13: memref<32x32xf32, #tpu.memory_space<vmem>>, %arg14: memref<1x32xf32, #tpu.memory_space<vmem>>, %arg15: memref<1x32xf32, #tpu.memory_space<vmem>>, %arg16: memref<1x32xf32, #tpu.memory_space<vmem>>, %arg17: memref<32x64xf32, #tpu.memory_space<vmem>>, %arg18: memref<1x64xf32, #tpu.memory_space<vmem>>, %arg19: memref<64x32xf32, #tpu.memory_space<vmem>>, %arg20: memref<1x32xf32, #tpu.memory_space<vmem>>, %arg21: memref<1x32xf32, #tpu.memory_space<vmem>>, %arg22: memref<1x32xf32, #tpu.memory_space<vmem>>, %arg23: memref<32x32xf32, #tpu.memory_space<vmem>>, %arg24: memref<1x32xf32, #tpu.memory_space<vmem>>, %arg25: memref<1x39x32xf32, #tpu.memory_space<vmem>>, %arg26: memref<1x39x32xf32, #tpu.memory_space<vmem>>) attributes {dimension_semantics = [#tpu.dimension_semantics<parallel>], iteration_bounds = array<i64: 2>, scalar_prefetch = 0 : i64, scratch_operands = 0 : i64, tpu.core_type = #tpu.core_type<tc>, window_params = [{transform_indices = @transform_0, window_bounds = array<i64: 1, 39, 30>}, {transform_indices = @transform_1, window_bounds = array<i64: 1, 1, 39>}, {pipeline_mode = #tpu.pipeline_mode<synchronous>, transform_indices = @transform_2, window_bounds = array<i64: 30, 48>}, {pipeline_mode = #tpu.pipeline_mode<synchronous>, transform_indices = @transform_3, window_bounds = array<i64: 48, 16>}, {pipeline_mode = #tpu.pipeline_mode<synchronous>, transform_indices = @transform_4, window_bounds = array<i64: 1, 16>}, {pipeline_mode = #tpu.pipeline_mode<synchronous>, transform_indices = @transform_5, window_bounds = array<i64: 1, 16>}, {pipeline_mode = #tpu.pipeline_mode<synchronous>, transform_indices = @transform_6, window_bounds = array<i64: 16, 32>}, {pipeline_mode = #tpu.pipeline_mode<synchronous>, transform_indices = @transform_7, window_bounds = array<i64: 1, 32>}, {pipeline_mode = #tpu.pipeline_mode<synchronous>, transform_indices = @transform_8, window_bounds = array<i64: 1, 32>}, {pipeline_mode = #tpu.pipeline_mode<synchronous>, transform_indices = @transform_9, window_bounds = array<i64: 1, 32>}, {pipeline_mode = #tpu.pipeline_mode<synchronous>, transform_indices = @transform_10, window_bounds = array<i64: 32, 96>}, {pipeline_mode = #tpu.pipeline_mode<synchronous>, transform_indices = @transform_11, window_bounds = array<i64: 1, 96>}, {pipeline_mode = #tpu.pipeline_mode<synchronous>, transform_indices = @transform_12, window_bounds = array<i64: 32, 32>}, {pipeline_mode = #tpu.pipeline_mode<synchronous>, transform_indices = @transform_13, window_bounds = array<i64: 1, 32>}, {pipeline_mode = #tpu.pipeline_mode<synchronous>, transform_indices = @transform_14, window_bounds = array<i64: 1, 32>}, {pipeline_mode = #tpu.pipeline_mode<synchronous>, transform_indices = @transform_15, window_bounds = array<i64: 1, 32>}, {pipeline_mode = #tpu.pipeline_mode<synchronous>, transform_indices = @transform_16, window_bounds = array<i64: 32, 64>}, {pipeline_mode = #tpu.pipeline_mode<synchronous>, transform_indices = @transform_17, window_bounds = array<i64: 1, 64>}, {pipeline_mode = #tpu.pipeline_mode<synchronous>, transform_indices = @transform_18, window_bounds = array<i64: 64, 32>}, {pipeline_mode = #tpu.pipeline_mode<synchronous>, transform_indices = @transform_19, window_bounds = array<i64: 1, 32>}, {pipeline_mode = #tpu.pipeline_mode<synchronous>, transform_indices = @transform_20, window_bounds = array<i64: 1, 32>}, {pipeline_mode = #tpu.pipeline_mode<synchronous>, transform_indices = @transform_21, window_bounds = array<i64: 1, 32>}, {pipeline_mode = #tpu.pipeline_mode<synchronous>, transform_indices = @transform_22, window_bounds = array<i64: 32, 32>}, {pipeline_mode = #tpu.pipeline_mode<synchronous>, transform_indices = @transform_23, window_bounds = array<i64: 1, 32>}, {transform_indices = @transform_24, window_bounds = array<i64: 1, 39, 32>}, {transform_indices = @transform_25, window_bounds = array<i64: 1, 39, 32>}]} {
    %c0 = arith.constant 0 : index
    %c0_0 = arith.constant 0 : index
    %c0_1 = arith.constant 0 : index
    %0 = vector.load %arg1[%c0, %c0_0, %c0_1] : memref<1x39x30xf32, #tpu.memory_space<vmem>>, vector<1x39x30xf32>
    %1 = vector.shape_cast %0 : vector<1x39x30xf32> to vector<39x30xf32>
    %c0_2 = arith.constant 0 : index
    %c0_3 = arith.constant 0 : index
    %2 = vector.load %arg3[%c0_2, %c0_3] : memref<30x48xf32, #tpu.memory_space<vmem>>, vector<30x48xf32>
    %cst = arith.constant dense<0.000000e+00> : vector<39x48xf32>
    %3 = tpu.matmul %1, %2, %cst {dimension_numbers = #tpu.dot_dimension_numbers<[1], [0], [0], [1], [0, 0, 1, 1], [], []>} : vector<39x30xf32>, vector<30x48xf32>, vector<39x48xf32> -> vector<39x48xf32>
    %cst_4 = arith.constant 5.000000e-01 : f32
    %4 = vector.broadcast %cst_4 : f32 to vector<39x48xf32>
    %5 = arith.mulf %4, %3 : vector<39x48xf32>
    %cst_5 = arith.constant 4.471500e-02 : f32
    %6 = vector.broadcast %cst_5 : f32 to vector<39x48xf32>
    %7 = arith.mulf %6, %3 : vector<39x48xf32>
    %8 = arith.mulf %7, %3 : vector<39x48xf32>
    %9 = arith.mulf %8, %3 : vector<39x48xf32>
    %10 = arith.addf %3, %9 : vector<39x48xf32>
    %cst_6 = arith.constant 0.797884583 : f32
    %11 = vector.broadcast %cst_6 : f32 to vector<39x48xf32>
    %12 = arith.mulf %11, %10 : vector<39x48xf32>
    %13 = math.tanh %12 : vector<39x48xf32>
    %cst_7 = arith.constant 1.000000e+00 : f32
    %14 = vector.broadcast %cst_7 : f32 to vector<39x48xf32>
    %15 = arith.addf %14, %13 : vector<39x48xf32>
    %16 = arith.mulf %5, %15 : vector<39x48xf32>
    %c0_8 = arith.constant 0 : index
    %c0_9 = arith.constant 0 : index
    %17 = vector.load %arg4[%c0_8, %c0_9] : memref<48x16xf32, #tpu.memory_space<vmem>>, vector<48x16xf32>
    %cst_10 = arith.constant dense<0.000000e+00> : vector<39x16xf32>
    %18 = tpu.matmul %16, %17, %cst_10 {dimension_numbers = #tpu.dot_dimension_numbers<[1], [0], [0], [1], [0, 0, 1, 1], [], []>} : vector<39x48xf32>, vector<48x16xf32>, vector<39x16xf32> -> vector<39x16xf32>
    %cst_11 = arith.constant 5.000000e-01 : f32
    %19 = vector.broadcast %cst_11 : f32 to vector<39x16xf32>
    %20 = arith.mulf %19, %18 : vector<39x16xf32>
    %cst_12 = arith.constant 4.471500e-02 : f32
    %21 = vector.broadcast %cst_12 : f32 to vector<39x16xf32>
    %22 = arith.mulf %21, %18 : vector<39x16xf32>
    %23 = arith.mulf %22, %18 : vector<39x16xf32>
    %24 = arith.mulf %23, %18 : vector<39x16xf32>
    %25 = arith.addf %18, %24 : vector<39x16xf32>
    %cst_13 = arith.constant 0.797884583 : f32
    %26 = vector.broadcast %cst_13 : f32 to vector<39x16xf32>
    %27 = arith.mulf %26, %25 : vector<39x16xf32>
    %28 = math.tanh %27 : vector<39x16xf32>
    %cst_14 = arith.constant 1.000000e+00 : f32
    %29 = vector.broadcast %cst_14 : f32 to vector<39x16xf32>
    %30 = arith.addf %29, %28 : vector<39x16xf32>
    %31 = arith.mulf %20, %30 : vector<39x16xf32>
    %c0_15 = arith.constant 0 : index
    %c0_16 = arith.constant 0 : index
    %32 = vector.load %arg5[%c0_15, %c0_16] : memref<1x16xf32, #tpu.memory_space<vmem>>, vector<1x16xf32>
    %c0_17 = arith.constant 0 : index
    %c0_18 = arith.constant 0 : index
    %33 = vector.load %arg6[%c0_17, %c0_18] : memref<1x16xf32, #tpu.memory_space<vmem>>, vector<1x16xf32>
    %cst_19 = arith.constant dense<0.000000e+00> : vector<39xf32>
    %34 = vector.multi_reduction <add>, %31, %cst_19 [1] : vector<39x16xf32> to vector<39xf32>
    %35 = vector.shape_cast %34 : vector<39xf32> to vector<39x1xf32>
    %cst_20 = arith.constant 1.600000e+01 : f32
    %36 = vector.broadcast %cst_20 : f32 to vector<39x1xf32>
    %37 = arith.divf %35, %36 : vector<39x1xf32>
    %38 = vector.broadcast %37 : vector<39x1xf32> to vector<39x16xf32>
    %39 = arith.subf %31, %38 : vector<39x16xf32>
    %40 = vector.broadcast %37 : vector<39x1xf32> to vector<39x16xf32>
    %41 = arith.subf %31, %40 : vector<39x16xf32>
    %42 = arith.mulf %39, %41 : vector<39x16xf32>
    %cst_21 = arith.constant dense<0.000000e+00> : vector<39xf32>
    %43 = vector.multi_reduction <add>, %42, %cst_21 [1] : vector<39x16xf32> to vector<39xf32>
    %44 = vector.shape_cast %43 : vector<39xf32> to vector<39x1xf32>
    %cst_22 = arith.constant 1.600000e+01 : f32
    %45 = vector.broadcast %cst_22 : f32 to vector<39x1xf32>
    %46 = arith.divf %44, %45 : vector<39x1xf32>
    %47 = vector.broadcast %37 : vector<39x1xf32> to vector<39x16xf32>
    %48 = arith.subf %31, %47 : vector<39x16xf32>
    %cst_23 = arith.constant 9.99999974E-6 : f32
    %49 = vector.broadcast %cst_23 : f32 to vector<39x1xf32>
    %50 = arith.addf %46, %49 : vector<39x1xf32>
    %51 = math.rsqrt %50 : vector<39x1xf32>
    %52 = vector.broadcast %51 : vector<39x1xf32> to vector<39x16xf32>
    %53 = arith.mulf %48, %52 : vector<39x16xf32>
    %54 = vector.broadcast %32 : vector<1x16xf32> to vector<39x16xf32>
    %55 = arith.mulf %53, %54 : vector<39x16xf32>
    %56 = vector.broadcast %33 : vector<1x16xf32> to vector<39x16xf32>
    %57 = arith.addf %55, %56 : vector<39x16xf32>
    %c0_24 = arith.constant 0 : index
    %c0_25 = arith.constant 0 : index
    %58 = vector.load %arg7[%c0_24, %c0_25] : memref<16x32xf32, #tpu.memory_space<vmem>>, vector<16x32xf32>
    %cst_26 = arith.constant dense<0.000000e+00> : vector<39x32xf32>
    %59 = tpu.matmul %57, %58, %cst_26 {dimension_numbers = #tpu.dot_dimension_numbers<[1], [0], [0], [1], [0, 0, 1, 1], [], []>} : vector<39x16xf32>, vector<16x32xf32>, vector<39x32xf32> -> vector<39x32xf32>
    %c0_27 = arith.constant 0 : index
    %c0_28 = arith.constant 0 : index
    %60 = vector.load %arg8[%c0_27, %c0_28] : memref<1x32xf32, #tpu.memory_space<vmem>>, vector<1x32xf32>
    %61 = vector.broadcast %60 : vector<1x32xf32> to vector<39x32xf32>
    %62 = arith.addf %59, %61 : vector<39x32xf32>
    %c0_29 = arith.constant 0 : index
    %c0_30 = arith.constant 0 : index
    %63 = vector.load %arg9[%c0_29, %c0_30] : memref<1x32xf32, #tpu.memory_space<vmem>>, vector<1x32xf32>
    %c0_31 = arith.constant 0 : index
    %c0_32 = arith.constant 0 : index
    %64 = vector.load %arg10[%c0_31, %c0_32] : memref<1x32xf32, #tpu.memory_space<vmem>>, vector<1x32xf32>
    %cst_33 = arith.constant dense<0.000000e+00> : vector<39xf32>
    %65 = vector.multi_reduction <add>, %62, %cst_33 [1] : vector<39x32xf32> to vector<39xf32>
    %66 = vector.shape_cast %65 : vector<39xf32> to vector<39x1xf32>
    %cst_34 = arith.constant 3.200000e+01 : f32
    %67 = vector.broadcast %cst_34 : f32 to vector<39x1xf32>
    %68 = arith.divf %66, %67 : vector<39x1xf32>
    %69 = vector.broadcast %68 : vector<39x1xf32> to vector<39x32xf32>
    %70 = arith.subf %62, %69 : vector<39x32xf32>
    %71 = vector.broadcast %68 : vector<39x1xf32> to vector<39x32xf32>
    %72 = arith.subf %62, %71 : vector<39x32xf32>
    %73 = arith.mulf %70, %72 : vector<39x32xf32>
    %cst_35 = arith.constant dense<0.000000e+00> : vector<39xf32>
    %74 = vector.multi_reduction <add>, %73, %cst_35 [1] : vector<39x32xf32> to vector<39xf32>
    %75 = vector.shape_cast %74 : vector<39xf32> to vector<39x1xf32>
    %cst_36 = arith.constant 3.200000e+01 : f32
    %76 = vector.broadcast %cst_36 : f32 to vector<39x1xf32>
    %77 = arith.divf %75, %76 : vector<39x1xf32>
    %78 = vector.broadcast %68 : vector<39x1xf32> to vector<39x32xf32>
    %79 = arith.subf %62, %78 : vector<39x32xf32>
    %cst_37 = arith.constant 9.99999974E-6 : f32
    %80 = vector.broadcast %cst_37 : f32 to vector<39x1xf32>
    %81 = arith.addf %77, %80 : vector<39x1xf32>
    %82 = math.rsqrt %81 : vector<39x1xf32>
    %83 = vector.broadcast %82 : vector<39x1xf32> to vector<39x32xf32>
    %84 = arith.mulf %79, %83 : vector<39x32xf32>
    %85 = vector.broadcast %63 : vector<1x32xf32> to vector<39x32xf32>
    %86 = arith.mulf %84, %85 : vector<39x32xf32>
    %87 = vector.broadcast %64 : vector<1x32xf32> to vector<39x32xf32>
    %88 = arith.addf %86, %87 : vector<39x32xf32>
    %c0_38 = arith.constant 0 : index
    %c0_39 = arith.constant 0 : index
    %89 = vector.load %arg11[%c0_38, %c0_39] : memref<32x96xf32, #tpu.memory_space<vmem>>, vector<32x96xf32>
    %cst_40 = arith.constant dense<0.000000e+00> : vector<39x96xf32>
    %90 = tpu.matmul %88, %89, %cst_40 {dimension_numbers = #tpu.dot_dimension_numbers<[1], [0], [0], [1], [0, 0, 1, 1], [], []>} : vector<39x32xf32>, vector<32x96xf32>, vector<39x96xf32> -> vector<39x96xf32>
    %c0_41 = arith.constant 0 : index
    %c0_42 = arith.constant 0 : index
    %91 = vector.load %arg12[%c0_41, %c0_42] : memref<1x96xf32, #tpu.memory_space<vmem>>, vector<1x96xf32>
    %92 = vector.broadcast %91 : vector<1x96xf32> to vector<39x96xf32>
    %93 = arith.addf %90, %92 : vector<39x96xf32>
    %94 = vector.extract_strided_slice %93 {offsets = [0, 0], sizes = [39, 32], strides = [1, 1]} : vector<39x96xf32> to vector<39x32xf32>
    %95 = vector.extract_strided_slice %93 {offsets = [0, 32], sizes = [39, 32], strides = [1, 1]} : vector<39x96xf32> to vector<39x32xf32>
    %96 = vector.extract_strided_slice %93 {offsets = [0, 64], sizes = [39, 32], strides = [1, 1]} : vector<39x96xf32> to vector<39x32xf32>
    %c0_43 = arith.constant 0 : index
    %c0_44 = arith.constant 0 : index
    %c0_45 = arith.constant 0 : index
    %97 = vector.load %arg2[%c0_43, %c0_44, %c0_45] : memref<1x1x39xf32, #tpu.memory_space<vmem>>, vector<1x1x39xf32>
    %98 = vector.shape_cast %97 : vector<1x1x39xf32> to vector<1x39xf32>
    %c0_46 = arith.constant 0 : index
    %c0_47 = arith.constant 0 : index
    %99 = vector.load %arg13[%c0_46, %c0_47] : memref<32x32xf32, #tpu.memory_space<vmem>>, vector<32x32xf32>
    %100 = vector.extract_strided_slice %94 {offsets = [0, 0], sizes = [39, 8], strides = [1, 1]} : vector<39x32xf32> to vector<39x8xf32>
    %101 = vector.extract_strided_slice %95 {offsets = [0, 0], sizes = [39, 8], strides = [1, 1]} : vector<39x32xf32> to vector<39x8xf32>
    %102 = vector.extract_strided_slice %96 {offsets = [0, 0], sizes = [39, 8], strides = [1, 1]} : vector<39x32xf32> to vector<39x8xf32>
    %cst_48 = arith.constant dense<0.000000e+00> : vector<39x39xf32>
    %103 = tpu.matmul %100, %101, %cst_48 {dimension_numbers = #tpu.dot_dimension_numbers<[1], [1], [0], [0], [0, 0, 1, 0], [], []>} : vector<39x8xf32>, vector<39x8xf32>, vector<39x39xf32> -> vector<39x39xf32>
    %cst_49 = arith.constant 0.353553385 : f32
    %104 = vector.broadcast %cst_49 : f32 to vector<39x39xf32>
    %105 = arith.mulf %103, %104 : vector<39x39xf32>
    %cst_50 = arith.constant 5.000000e-01 : f32
    %106 = vector.broadcast %cst_50 : f32 to vector<1x39xf32>
    %107 = arith.cmpf ogt, %98, %106 : vector<1x39xf32>
    %cst_51 = arith.constant -1.000000e+30 : f32
    %108 = vector.shape_cast %107 : vector<1x39xi1> to vector<1x39xi1>
    %109 = vector.broadcast %108 : vector<1x39xi1> to vector<39x39xi1>
    %110 = vector.broadcast %cst_51 : f32 to vector<39x39xf32>
    %111 = arith.select %109, %105, %110 : vector<39x39xi1>, vector<39x39xf32>
    %cst_52 = arith.constant dense<0xFF800000> : vector<39xf32>
    %112 = vector.multi_reduction <maximumf>, %111, %cst_52 [1] : vector<39x39xf32> to vector<39xf32>
    %113 = vector.shape_cast %112 : vector<39xf32> to vector<39x1xf32>
    %cst_53 = arith.constant -1.000000e+30 : f32
    %114 = vector.broadcast %cst_53 : f32 to vector<39x1xf32>
    %115 = arith.maximumf %113, %114 : vector<39x1xf32>
    %116 = vector.broadcast %115 : vector<39x1xf32> to vector<39x39xf32>
    %117 = arith.subf %111, %116 : vector<39x39xf32>
    %118 = math.exp %117 : vector<39x39xf32>
    %cst_54 = arith.constant dense<0.000000e+00> : vector<39xf32>
    %119 = vector.multi_reduction <add>, %118, %cst_54 [1] : vector<39x39xf32> to vector<39xf32>
    %120 = vector.shape_cast %119 : vector<39xf32> to vector<39x1xf32>
    %121 = tpu.reciprocal %120 {approx = true} : vector<39x1xf32> -> vector<39x1xf32>
    %122 = vector.broadcast %121 : vector<39x1xf32> to vector<39x39xf32>
    %123 = arith.mulf %118, %122 : vector<39x39xf32>
    %cst_55 = arith.constant dense<0.000000e+00> : vector<39x8xf32>
    %124 = tpu.matmul %123, %102, %cst_55 {dimension_numbers = #tpu.dot_dimension_numbers<[1], [0], [0], [1], [0, 0, 1, 1], [], []>} : vector<39x39xf32>, vector<39x8xf32>, vector<39x8xf32> -> vector<39x8xf32>
    %125 = vector.extract_strided_slice %99 {offsets = [0, 0], sizes = [8, 32], strides = [1, 1]} : vector<32x32xf32> to vector<8x32xf32>
    %cst_56 = arith.constant dense<0.000000e+00> : vector<39x32xf32>
    %126 = tpu.matmul %124, %125, %cst_56 {dimension_numbers = #tpu.dot_dimension_numbers<[1], [0], [0], [1], [0, 0, 1, 1], [], []>} : vector<39x8xf32>, vector<8x32xf32>, vector<39x32xf32> -> vector<39x32xf32>
    %127 = vector.extract_strided_slice %94 {offsets = [0, 8], sizes = [39, 8], strides = [1, 1]} : vector<39x32xf32> to vector<39x8xf32>
    %128 = vector.extract_strided_slice %95 {offsets = [0, 8], sizes = [39, 8], strides = [1, 1]} : vector<39x32xf32> to vector<39x8xf32>
    %129 = vector.extract_strided_slice %96 {offsets = [0, 8], sizes = [39, 8], strides = [1, 1]} : vector<39x32xf32> to vector<39x8xf32>
    %cst_57 = arith.constant dense<0.000000e+00> : vector<39x39xf32>
    %130 = tpu.matmul %127, %128, %cst_57 {dimension_numbers = #tpu.dot_dimension_numbers<[1], [1], [0], [0], [0, 0, 1, 0], [], []>} : vector<39x8xf32>, vector<39x8xf32>, vector<39x39xf32> -> vector<39x39xf32>
    %cst_58 = arith.constant 0.353553385 : f32
    %131 = vector.broadcast %cst_58 : f32 to vector<39x39xf32>
    %132 = arith.mulf %130, %131 : vector<39x39xf32>
    %cst_59 = arith.constant 5.000000e-01 : f32
    %133 = vector.broadcast %cst_59 : f32 to vector<1x39xf32>
    %134 = arith.cmpf ogt, %98, %133 : vector<1x39xf32>
    %cst_60 = arith.constant -1.000000e+30 : f32
    %135 = vector.shape_cast %134 : vector<1x39xi1> to vector<1x39xi1>
    %136 = vector.broadcast %135 : vector<1x39xi1> to vector<39x39xi1>
    %137 = vector.broadcast %cst_60 : f32 to vector<39x39xf32>
    %138 = arith.select %136, %132, %137 : vector<39x39xi1>, vector<39x39xf32>
    %cst_61 = arith.constant dense<0xFF800000> : vector<39xf32>
    %139 = vector.multi_reduction <maximumf>, %138, %cst_61 [1] : vector<39x39xf32> to vector<39xf32>
    %140 = vector.shape_cast %139 : vector<39xf32> to vector<39x1xf32>
    %cst_62 = arith.constant -1.000000e+30 : f32
    %141 = vector.broadcast %cst_62 : f32 to vector<39x1xf32>
    %142 = arith.maximumf %140, %141 : vector<39x1xf32>
    %143 = vector.broadcast %142 : vector<39x1xf32> to vector<39x39xf32>
    %144 = arith.subf %138, %143 : vector<39x39xf32>
    %145 = math.exp %144 : vector<39x39xf32>
    %cst_63 = arith.constant dense<0.000000e+00> : vector<39xf32>
    %146 = vector.multi_reduction <add>, %145, %cst_63 [1] : vector<39x39xf32> to vector<39xf32>
    %147 = vector.shape_cast %146 : vector<39xf32> to vector<39x1xf32>
    %148 = tpu.reciprocal %147 {approx = true} : vector<39x1xf32> -> vector<39x1xf32>
    %149 = vector.broadcast %148 : vector<39x1xf32> to vector<39x39xf32>
    %150 = arith.mulf %145, %149 : vector<39x39xf32>
    %cst_64 = arith.constant dense<0.000000e+00> : vector<39x8xf32>
    %151 = tpu.matmul %150, %129, %cst_64 {dimension_numbers = #tpu.dot_dimension_numbers<[1], [0], [0], [1], [0, 0, 1, 1], [], []>} : vector<39x39xf32>, vector<39x8xf32>, vector<39x8xf32> -> vector<39x8xf32>
    %152 = vector.extract_strided_slice %99 {offsets = [8, 0], sizes = [8, 32], strides = [1, 1]} : vector<32x32xf32> to vector<8x32xf32>
    %cst_65 = arith.constant dense<0.000000e+00> : vector<39x32xf32>
    %153 = tpu.matmul %151, %152, %cst_65 {dimension_numbers = #tpu.dot_dimension_numbers<[1], [0], [0], [1], [0, 0, 1, 1], [], []>} : vector<39x8xf32>, vector<8x32xf32>, vector<39x32xf32> -> vector<39x32xf32>
    %154 = arith.addf %126, %153 : vector<39x32xf32>
    %155 = vector.extract_strided_slice %94 {offsets = [0, 16], sizes = [39, 8], strides = [1, 1]} : vector<39x32xf32> to vector<39x8xf32>
    %156 = vector.extract_strided_slice %95 {offsets = [0, 16], sizes = [39, 8], strides = [1, 1]} : vector<39x32xf32> to vector<39x8xf32>
    %157 = vector.extract_strided_slice %96 {offsets = [0, 16], sizes = [39, 8], strides = [1, 1]} : vector<39x32xf32> to vector<39x8xf32>
    %cst_66 = arith.constant dense<0.000000e+00> : vector<39x39xf32>
    %158 = tpu.matmul %155, %156, %cst_66 {dimension_numbers = #tpu.dot_dimension_numbers<[1], [1], [0], [0], [0, 0, 1, 0], [], []>} : vector<39x8xf32>, vector<39x8xf32>, vector<39x39xf32> -> vector<39x39xf32>
    %cst_67 = arith.constant 0.353553385 : f32
    %159 = vector.broadcast %cst_67 : f32 to vector<39x39xf32>
    %160 = arith.mulf %158, %159 : vector<39x39xf32>
    %cst_68 = arith.constant 5.000000e-01 : f32
    %161 = vector.broadcast %cst_68 : f32 to vector<1x39xf32>
    %162 = arith.cmpf ogt, %98, %161 : vector<1x39xf32>
    %cst_69 = arith.constant -1.000000e+30 : f32
    %163 = vector.shape_cast %162 : vector<1x39xi1> to vector<1x39xi1>
    %164 = vector.broadcast %163 : vector<1x39xi1> to vector<39x39xi1>
    %165 = vector.broadcast %cst_69 : f32 to vector<39x39xf32>
    %166 = arith.select %164, %160, %165 : vector<39x39xi1>, vector<39x39xf32>
    %cst_70 = arith.constant dense<0xFF800000> : vector<39xf32>
    %167 = vector.multi_reduction <maximumf>, %166, %cst_70 [1] : vector<39x39xf32> to vector<39xf32>
    %168 = vector.shape_cast %167 : vector<39xf32> to vector<39x1xf32>
    %cst_71 = arith.constant -1.000000e+30 : f32
    %169 = vector.broadcast %cst_71 : f32 to vector<39x1xf32>
    %170 = arith.maximumf %168, %169 : vector<39x1xf32>
    %171 = vector.broadcast %170 : vector<39x1xf32> to vector<39x39xf32>
    %172 = arith.subf %166, %171 : vector<39x39xf32>
    %173 = math.exp %172 : vector<39x39xf32>
    %cst_72 = arith.constant dense<0.000000e+00> : vector<39xf32>
    %174 = vector.multi_reduction <add>, %173, %cst_72 [1] : vector<39x39xf32> to vector<39xf32>
    %175 = vector.shape_cast %174 : vector<39xf32> to vector<39x1xf32>
    %176 = tpu.reciprocal %175 {approx = true} : vector<39x1xf32> -> vector<39x1xf32>
    %177 = vector.broadcast %176 : vector<39x1xf32> to vector<39x39xf32>
    %178 = arith.mulf %173, %177 : vector<39x39xf32>
    %cst_73 = arith.constant dense<0.000000e+00> : vector<39x8xf32>
    %179 = tpu.matmul %178, %157, %cst_73 {dimension_numbers = #tpu.dot_dimension_numbers<[1], [0], [0], [1], [0, 0, 1, 1], [], []>} : vector<39x39xf32>, vector<39x8xf32>, vector<39x8xf32> -> vector<39x8xf32>
    %180 = vector.extract_strided_slice %99 {offsets = [16, 0], sizes = [8, 32], strides = [1, 1]} : vector<32x32xf32> to vector<8x32xf32>
    %cst_74 = arith.constant dense<0.000000e+00> : vector<39x32xf32>
    %181 = tpu.matmul %179, %180, %cst_74 {dimension_numbers = #tpu.dot_dimension_numbers<[1], [0], [0], [1], [0, 0, 1, 1], [], []>} : vector<39x8xf32>, vector<8x32xf32>, vector<39x32xf32> -> vector<39x32xf32>
    %182 = arith.addf %154, %181 : vector<39x32xf32>
    %183 = vector.extract_strided_slice %94 {offsets = [0, 24], sizes = [39, 8], strides = [1, 1]} : vector<39x32xf32> to vector<39x8xf32>
    %184 = vector.extract_strided_slice %95 {offsets = [0, 24], sizes = [39, 8], strides = [1, 1]} : vector<39x32xf32> to vector<39x8xf32>
    %185 = vector.extract_strided_slice %96 {offsets = [0, 24], sizes = [39, 8], strides = [1, 1]} : vector<39x32xf32> to vector<39x8xf32>
    %cst_75 = arith.constant dense<0.000000e+00> : vector<39x39xf32>
    %186 = tpu.matmul %183, %184, %cst_75 {dimension_numbers = #tpu.dot_dimension_numbers<[1], [1], [0], [0], [0, 0, 1, 0], [], []>} : vector<39x8xf32>, vector<39x8xf32>, vector<39x39xf32> -> vector<39x39xf32>
    %cst_76 = arith.constant 0.353553385 : f32
    %187 = vector.broadcast %cst_76 : f32 to vector<39x39xf32>
    %188 = arith.mulf %186, %187 : vector<39x39xf32>
    %cst_77 = arith.constant 5.000000e-01 : f32
    %189 = vector.broadcast %cst_77 : f32 to vector<1x39xf32>
    %190 = arith.cmpf ogt, %98, %189 : vector<1x39xf32>
    %cst_78 = arith.constant -1.000000e+30 : f32
    %191 = vector.shape_cast %190 : vector<1x39xi1> to vector<1x39xi1>
    %192 = vector.broadcast %191 : vector<1x39xi1> to vector<39x39xi1>
    %193 = vector.broadcast %cst_78 : f32 to vector<39x39xf32>
    %194 = arith.select %192, %188, %193 : vector<39x39xi1>, vector<39x39xf32>
    %cst_79 = arith.constant dense<0xFF800000> : vector<39xf32>
    %195 = vector.multi_reduction <maximumf>, %194, %cst_79 [1] : vector<39x39xf32> to vector<39xf32>
    %196 = vector.shape_cast %195 : vector<39xf32> to vector<39x1xf32>
    %cst_80 = arith.constant -1.000000e+30 : f32
    %197 = vector.broadcast %cst_80 : f32 to vector<39x1xf32>
    %198 = arith.maximumf %196, %197 : vector<39x1xf32>
    %199 = vector.broadcast %198 : vector<39x1xf32> to vector<39x39xf32>
    %200 = arith.subf %194, %199 : vector<39x39xf32>
    %201 = math.exp %200 : vector<39x39xf32>
    %cst_81 = arith.constant dense<0.000000e+00> : vector<39xf32>
    %202 = vector.multi_reduction <add>, %201, %cst_81 [1] : vector<39x39xf32> to vector<39xf32>
    %203 = vector.shape_cast %202 : vector<39xf32> to vector<39x1xf32>
    %204 = tpu.reciprocal %203 {approx = true} : vector<39x1xf32> -> vector<39x1xf32>
    %205 = vector.broadcast %204 : vector<39x1xf32> to vector<39x39xf32>
    %206 = arith.mulf %201, %205 : vector<39x39xf32>
    %cst_82 = arith.constant dense<0.000000e+00> : vector<39x8xf32>
    %207 = tpu.matmul %206, %185, %cst_82 {dimension_numbers = #tpu.dot_dimension_numbers<[1], [0], [0], [1], [0, 0, 1, 1], [], []>} : vector<39x39xf32>, vector<39x8xf32>, vector<39x8xf32> -> vector<39x8xf32>
    %208 = vector.extract_strided_slice %99 {offsets = [24, 0], sizes = [8, 32], strides = [1, 1]} : vector<32x32xf32> to vector<8x32xf32>
    %cst_83 = arith.constant dense<0.000000e+00> : vector<39x32xf32>
    %209 = tpu.matmul %207, %208, %cst_83 {dimension_numbers = #tpu.dot_dimension_numbers<[1], [0], [0], [1], [0, 0, 1, 1], [], []>} : vector<39x8xf32>, vector<8x32xf32>, vector<39x32xf32> -> vector<39x32xf32>
    %210 = arith.addf %182, %209 : vector<39x32xf32>
    %c0_84 = arith.constant 0 : index
    %c0_85 = arith.constant 0 : index
    %211 = vector.load %arg14[%c0_84, %c0_85] : memref<1x32xf32, #tpu.memory_space<vmem>>, vector<1x32xf32>
    %212 = vector.broadcast %211 : vector<1x32xf32> to vector<39x32xf32>
    %213 = arith.addf %210, %212 : vector<39x32xf32>
    %214 = arith.addf %88, %213 : vector<39x32xf32>
    %c0_86 = arith.constant 0 : index
    %c0_87 = arith.constant 0 : index
    %215 = vector.load %arg15[%c0_86, %c0_87] : memref<1x32xf32, #tpu.memory_space<vmem>>, vector<1x32xf32>
    %c0_88 = arith.constant 0 : index
    %c0_89 = arith.constant 0 : index
    %216 = vector.load %arg16[%c0_88, %c0_89] : memref<1x32xf32, #tpu.memory_space<vmem>>, vector<1x32xf32>
    %cst_90 = arith.constant dense<0.000000e+00> : vector<39xf32>
    %217 = vector.multi_reduction <add>, %214, %cst_90 [1] : vector<39x32xf32> to vector<39xf32>
    %218 = vector.shape_cast %217 : vector<39xf32> to vector<39x1xf32>
    %cst_91 = arith.constant 3.200000e+01 : f32
    %219 = vector.broadcast %cst_91 : f32 to vector<39x1xf32>
    %220 = arith.divf %218, %219 : vector<39x1xf32>
    %221 = vector.broadcast %220 : vector<39x1xf32> to vector<39x32xf32>
    %222 = arith.subf %214, %221 : vector<39x32xf32>
    %223 = vector.broadcast %220 : vector<39x1xf32> to vector<39x32xf32>
    %224 = arith.subf %214, %223 : vector<39x32xf32>
    %225 = arith.mulf %222, %224 : vector<39x32xf32>
    %cst_92 = arith.constant dense<0.000000e+00> : vector<39xf32>
    %226 = vector.multi_reduction <add>, %225, %cst_92 [1] : vector<39x32xf32> to vector<39xf32>
    %227 = vector.shape_cast %226 : vector<39xf32> to vector<39x1xf32>
    %cst_93 = arith.constant 3.200000e+01 : f32
    %228 = vector.broadcast %cst_93 : f32 to vector<39x1xf32>
    %229 = arith.divf %227, %228 : vector<39x1xf32>
    %230 = vector.broadcast %220 : vector<39x1xf32> to vector<39x32xf32>
    %231 = arith.subf %214, %230 : vector<39x32xf32>
    %cst_94 = arith.constant 9.99999974E-6 : f32
    %232 = vector.broadcast %cst_94 : f32 to vector<39x1xf32>
    %233 = arith.addf %229, %232 : vector<39x1xf32>
    %234 = math.rsqrt %233 : vector<39x1xf32>
    %235 = vector.broadcast %234 : vector<39x1xf32> to vector<39x32xf32>
    %236 = arith.mulf %231, %235 : vector<39x32xf32>
    %237 = vector.broadcast %215 : vector<1x32xf32> to vector<39x32xf32>
    %238 = arith.mulf %236, %237 : vector<39x32xf32>
    %239 = vector.broadcast %216 : vector<1x32xf32> to vector<39x32xf32>
    %240 = arith.addf %238, %239 : vector<39x32xf32>
    %c0_95 = arith.constant 0 : index
    %c0_96 = arith.constant 0 : index
    %241 = vector.load %arg17[%c0_95, %c0_96] : memref<32x64xf32, #tpu.memory_space<vmem>>, vector<32x64xf32>
    %cst_97 = arith.constant dense<0.000000e+00> : vector<39x64xf32>
    %242 = tpu.matmul %240, %241, %cst_97 {dimension_numbers = #tpu.dot_dimension_numbers<[1], [0], [0], [1], [0, 0, 1, 1], [], []>} : vector<39x32xf32>, vector<32x64xf32>, vector<39x64xf32> -> vector<39x64xf32>
    %c0_98 = arith.constant 0 : index
    %c0_99 = arith.constant 0 : index
    %243 = vector.load %arg18[%c0_98, %c0_99] : memref<1x64xf32, #tpu.memory_space<vmem>>, vector<1x64xf32>
    %244 = vector.broadcast %243 : vector<1x64xf32> to vector<39x64xf32>
    %245 = arith.addf %242, %244 : vector<39x64xf32>
    %cst_100 = arith.constant 5.000000e-01 : f32
    %246 = vector.broadcast %cst_100 : f32 to vector<39x64xf32>
    %247 = arith.mulf %246, %245 : vector<39x64xf32>
    %cst_101 = arith.constant 4.471500e-02 : f32
    %248 = vector.broadcast %cst_101 : f32 to vector<39x64xf32>
    %249 = arith.mulf %248, %245 : vector<39x64xf32>
    %250 = arith.mulf %249, %245 : vector<39x64xf32>
    %251 = arith.mulf %250, %245 : vector<39x64xf32>
    %252 = arith.addf %245, %251 : vector<39x64xf32>
    %cst_102 = arith.constant 0.797884583 : f32
    %253 = vector.broadcast %cst_102 : f32 to vector<39x64xf32>
    %254 = arith.mulf %253, %252 : vector<39x64xf32>
    %255 = math.tanh %254 : vector<39x64xf32>
    %cst_103 = arith.constant 1.000000e+00 : f32
    %256 = vector.broadcast %cst_103 : f32 to vector<39x64xf32>
    %257 = arith.addf %256, %255 : vector<39x64xf32>
    %258 = arith.mulf %247, %257 : vector<39x64xf32>
    %c0_104 = arith.constant 0 : index
    %c0_105 = arith.constant 0 : index
    %259 = vector.load %arg19[%c0_104, %c0_105] : memref<64x32xf32, #tpu.memory_space<vmem>>, vector<64x32xf32>
    %cst_106 = arith.constant dense<0.000000e+00> : vector<39x32xf32>
    %260 = tpu.matmul %258, %259, %cst_106 {dimension_numbers = #tpu.dot_dimension_numbers<[1], [0], [0], [1], [0, 0, 1, 1], [], []>} : vector<39x64xf32>, vector<64x32xf32>, vector<39x32xf32> -> vector<39x32xf32>
    %c0_107 = arith.constant 0 : index
    %c0_108 = arith.constant 0 : index
    %261 = vector.load %arg20[%c0_107, %c0_108] : memref<1x32xf32, #tpu.memory_space<vmem>>, vector<1x32xf32>
    %262 = vector.broadcast %261 : vector<1x32xf32> to vector<39x32xf32>
    %263 = arith.addf %260, %262 : vector<39x32xf32>
    %264 = arith.addf %240, %263 : vector<39x32xf32>
    %c0_109 = arith.constant 0 : index
    %c0_110 = arith.constant 0 : index
    %265 = vector.load %arg21[%c0_109, %c0_110] : memref<1x32xf32, #tpu.memory_space<vmem>>, vector<1x32xf32>
    %c0_111 = arith.constant 0 : index
    %c0_112 = arith.constant 0 : index
    %266 = vector.load %arg22[%c0_111, %c0_112] : memref<1x32xf32, #tpu.memory_space<vmem>>, vector<1x32xf32>
    %cst_113 = arith.constant dense<0.000000e+00> : vector<39xf32>
    %267 = vector.multi_reduction <add>, %264, %cst_113 [1] : vector<39x32xf32> to vector<39xf32>
    %268 = vector.shape_cast %267 : vector<39xf32> to vector<39x1xf32>
    %cst_114 = arith.constant 3.200000e+01 : f32
    %269 = vector.broadcast %cst_114 : f32 to vector<39x1xf32>
    %270 = arith.divf %268, %269 : vector<39x1xf32>
    %271 = vector.broadcast %270 : vector<39x1xf32> to vector<39x32xf32>
    %272 = arith.subf %264, %271 : vector<39x32xf32>
    %273 = vector.broadcast %270 : vector<39x1xf32> to vector<39x32xf32>
    %274 = arith.subf %264, %273 : vector<39x32xf32>
    %275 = arith.mulf %272, %274 : vector<39x32xf32>
    %cst_115 = arith.constant dense<0.000000e+00> : vector<39xf32>
    %276 = vector.multi_reduction <add>, %275, %cst_115 [1] : vector<39x32xf32> to vector<39xf32>
    %277 = vector.shape_cast %276 : vector<39xf32> to vector<39x1xf32>
    %cst_116 = arith.constant 3.200000e+01 : f32
    %278 = vector.broadcast %cst_116 : f32 to vector<39x1xf32>
    %279 = arith.divf %277, %278 : vector<39x1xf32>
    %280 = vector.broadcast %270 : vector<39x1xf32> to vector<39x32xf32>
    %281 = arith.subf %264, %280 : vector<39x32xf32>
    %cst_117 = arith.constant 9.99999974E-6 : f32
    %282 = vector.broadcast %cst_117 : f32 to vector<39x1xf32>
    %283 = arith.addf %279, %282 : vector<39x1xf32>
    %284 = math.rsqrt %283 : vector<39x1xf32>
    %285 = vector.broadcast %284 : vector<39x1xf32> to vector<39x32xf32>
    %286 = arith.mulf %281, %285 : vector<39x32xf32>
    %287 = vector.broadcast %265 : vector<1x32xf32> to vector<39x32xf32>
    %288 = arith.mulf %286, %287 : vector<39x32xf32>
    %289 = vector.broadcast %266 : vector<1x32xf32> to vector<39x32xf32>
    %290 = arith.addf %288, %289 : vector<39x32xf32>
    %c0_118 = arith.constant 0 : index
    %c0_119 = arith.constant 0 : index
    %291 = vector.load %arg23[%c0_118, %c0_119] : memref<32x32xf32, #tpu.memory_space<vmem>>, vector<32x32xf32>
    %cst_120 = arith.constant dense<0.000000e+00> : vector<39x32xf32>
    %292 = tpu.matmul %290, %291, %cst_120 {dimension_numbers = #tpu.dot_dimension_numbers<[1], [0], [0], [1], [0, 0, 1, 1], [], []>} : vector<39x32xf32>, vector<32x32xf32>, vector<39x32xf32> -> vector<39x32xf32>
    %c0_121 = arith.constant 0 : index
    %c0_122 = arith.constant 0 : index
    %293 = vector.load %arg24[%c0_121, %c0_122] : memref<1x32xf32, #tpu.memory_space<vmem>>, vector<1x32xf32>
    %294 = vector.broadcast %293 : vector<1x32xf32> to vector<39x32xf32>
    %295 = arith.addf %292, %294 : vector<39x32xf32>
    %c0_123 = arith.constant 0 : index
    %c0_124 = arith.constant 0 : index
    %c0_125 = arith.constant 0 : index
    %296 = vector.load %arg25[%c0_123, %c0_124, %c0_125] : memref<1x39x32xf32, #tpu.memory_space<vmem>>, vector<1x39x32xf32>
    %297 = vector.shape_cast %296 : vector<1x39x32xf32> to vector<39x32xf32>
    %298 = vector.shape_cast %295 : vector<39x32xf32> to vector<1x39x32xf32>
    tpu.vector_store %arg25[%c0_123, %c0_124, %c0_125], %298 {strides = array<i32>} : memref<1x39x32xf32, #tpu.memory_space<vmem>>, vector<1x39x32xf32>,
    %cst_126 = arith.constant dense<0xFF800000> : vector<39xf32>
    %299 = vector.multi_reduction <maximumf>, %295, %cst_126 [1] : vector<39x32xf32> to vector<39xf32>
    %300 = vector.shape_cast %299 : vector<39xf32> to vector<39x1xf32>
    %301 = vector.broadcast %300 : vector<39x1xf32> to vector<39x32xf32>
    %302 = arith.subf %295, %301 : vector<39x32xf32>
    %303 = math.exp %302 : vector<39x32xf32>
    %cst_127 = arith.constant dense<0.000000e+00> : vector<39xf32>
    %304 = vector.multi_reduction <add>, %303, %cst_127 [1] : vector<39x32xf32> to vector<39xf32>
    %305 = vector.shape_cast %304 : vector<39xf32> to vector<39x1xf32>
    %306 = math.log %305 : vector<39x1xf32>
    %307 = vector.broadcast %306 : vector<39x1xf32> to vector<39x32xf32>
    %308 = arith.subf %302, %307 : vector<39x32xf32>
    %c0_128 = arith.constant 0 : index
    %c0_129 = arith.constant 0 : index
    %c0_130 = arith.constant 0 : index
    %309 = vector.load %arg26[%c0_128, %c0_129, %c0_130] : memref<1x39x32xf32, #tpu.memory_space<vmem>>, vector<1x39x32xf32>
    %310 = vector.shape_cast %309 : vector<1x39x32xf32> to vector<39x32xf32>
    %311 = vector.shape_cast %308 : vector<39x32xf32> to vector<1x39x32xf32>
    tpu.vector_store %arg26[%c0_128, %c0_129, %c0_130], %311 {strides = array<i32>} : memref<1x39x32xf32, #tpu.memory_space<vmem>>, vector<1x39x32xf32>,
    return
  }
  func.func @transform_0(%arg0: i32) -> (i32, i32, i32) {
    %c0_i32 = arith.constant 0 : i32
    %c0_i32_0 = arith.constant 0 : i32
    %c0_i32_1 = arith.constant 0 : i32
    return %arg0, %c0_i32, %c0_i32_0 : i32, i32, i32
  }
  func.func @transform_1(%arg0: i32) -> (i32, i32, i32) {
    %c0_i32 = arith.constant 0 : i32
    %c0_i32_0 = arith.constant 0 : i32
    %c0_i32_1 = arith.constant 0 : i32
    return %arg0, %c0_i32, %c0_i32_0 : i32, i32, i32
  }
  func.func @transform_2(%arg0: i32) -> (i32, i32) {
    %c0_i32 = arith.constant 0 : i32
    %c0_i32_0 = arith.constant 0 : i32
    %c0_i32_1 = arith.constant 0 : i32
    return %c0_i32, %c0_i32_0 : i32, i32
  }
  func.func @transform_3(%arg0: i32) -> (i32, i32) {
    %c0_i32 = arith.constant 0 : i32
    %c0_i32_0 = arith.constant 0 : i32
    %c0_i32_1 = arith.constant 0 : i32
    return %c0_i32, %c0_i32_0 : i32, i32
  }
  func.func @transform_4(%arg0: i32) -> (i32, i32) {
    %c0_i32 = arith.constant 0 : i32
    %c0_i32_0 = arith.constant 0 : i32
    %c0_i32_1 = arith.constant 0 : i32
    return %c0_i32, %c0_i32_0 : i32, i32
  }
  func.func @transform_5(%arg0: i32) -> (i32, i32) {
    %c0_i32 = arith.constant 0 : i32
    %c0_i32_0 = arith.constant 0 : i32
    %c0_i32_1 = arith.constant 0 : i32
    return %c0_i32, %c0_i32_0 : i32, i32
  }
  func.func @transform_6(%arg0: i32) -> (i32, i32) {
    %c0_i32 = arith.constant 0 : i32
    %c0_i32_0 = arith.constant 0 : i32
    %c0_i32_1 = arith.constant 0 : i32
    return %c0_i32, %c0_i32_0 : i32, i32
  }
  func.func @transform_7(%arg0: i32) -> (i32, i32) {
    %c0_i32 = arith.constant 0 : i32
    %c0_i32_0 = arith.constant 0 : i32
    %c0_i32_1 = arith.constant 0 : i32
    return %c0_i32, %c0_i32_0 : i32, i32
  }
  func.func @transform_8(%arg0: i32) -> (i32, i32) {
    %c0_i32 = arith.constant 0 : i32
    %c0_i32_0 = arith.constant 0 : i32
    %c0_i32_1 = arith.constant 0 : i32
    return %c0_i32, %c0_i32_0 : i32, i32
  }
  func.func @transform_9(%arg0: i32) -> (i32, i32) {
    %c0_i32 = arith.constant 0 : i32
    %c0_i32_0 = arith.constant 0 : i32
    %c0_i32_1 = arith.constant 0 : i32
    return %c0_i32, %c0_i32_0 : i32, i32
  }
  func.func @transform_10(%arg0: i32) -> (i32, i32) {
    %c0_i32 = arith.constant 0 : i32
    %c0_i32_0 = arith.constant 0 : i32
    %c0_i32_1 = arith.constant 0 : i32
    return %c0_i32, %c0_i32_0 : i32, i32
  }
  func.func @transform_11(%arg0: i32) -> (i32, i32) {
    %c0_i32 = arith.constant 0 : i32
    %c0_i32_0 = arith.constant 0 : i32
    %c0_i32_1 = arith.constant 0 : i32
    return %c0_i32, %c0_i32_0 : i32, i32
  }
  func.func @transform_12(%arg0: i32) -> (i32, i32) {
    %c0_i32 = arith.constant 0 : i32
    %c0_i32_0 = arith.constant 0 : i32
    %c0_i32_1 = arith.constant 0 : i32
    return %c0_i32, %c0_i32_0 : i32, i32
  }
  func.func @transform_13(%arg0: i32) -> (i32, i32) {
    %c0_i32 = arith.constant 0 : i32
    %c0_i32_0 = arith.constant 0 : i32
    %c0_i32_1 = arith.constant 0 : i32
    return %c0_i32, %c0_i32_0 : i32, i32
  }
  func.func @transform_14(%arg0: i32) -> (i32, i32) {
    %c0_i32 = arith.constant 0 : i32
    %c0_i32_0 = arith.constant 0 : i32
    %c0_i32_1 = arith.constant 0 : i32
    return %c0_i32, %c0_i32_0 : i32, i32
  }
  func.func @transform_15(%arg0: i32) -> (i32, i32) {
    %c0_i32 = arith.constant 0 : i32
    %c0_i32_0 = arith.constant 0 : i32
    %c0_i32_1 = arith.constant 0 : i32
    return %c0_i32, %c0_i32_0 : i32, i32
  }
  func.func @transform_16(%arg0: i32) -> (i32, i32) {
    %c0_i32 = arith.constant 0 : i32
    %c0_i32_0 = arith.constant 0 : i32
    %c0_i32_1 = arith.constant 0 : i32
    return %c0_i32, %c0_i32_0 : i32, i32
  }
  func.func @transform_17(%arg0: i32) -> (i32, i32) {
    %c0_i32 = arith.constant 0 : i32
    %c0_i32_0 = arith.constant 0 : i32
    %c0_i32_1 = arith.constant 0 : i32
    return %c0_i32, %c0_i32_0 : i32, i32
  }
  func.func @transform_18(%arg0: i32) -> (i32, i32) {
    %c0_i32 = arith.constant 0 : i32
    %c0_i32_0 = arith.constant 0 : i32
    %c0_i32_1 = arith.constant 0 : i32
    return %c0_i32, %c0_i32_0 : i32, i32
  }
  func.func @transform_19(%arg0: i32) -> (i32, i32) {
    %c0_i32 = arith.constant 0 : i32
    %c0_i32_0 = arith.constant 0 : i32
    %c0_i32_1 = arith.constant 0 : i32
    return %c0_i32, %c0_i32_0 : i32, i32
  }
  func.func @transform_20(%arg0: i32) -> (i32, i32) {
    %c0_i32 = arith.constant 0 : i32
    %c0_i32_0 = arith.constant 0 : i32
    %c0_i32_1 = arith.constant 0 : i32
    return %c0_i32, %c0_i32_0 : i32, i32
  }
  func.func @transform_21(%arg0: i32) -> (i32, i32) {
    %c0_i32 = arith.constant 0 : i32
    %c0_i32_0 = arith.constant 0 : i32
    %c0_i32_1 = arith.constant 0 : i32
    return %c0_i32, %c0_i32_0 : i32, i32
  }
  func.func @transform_22(%arg0: i32) -> (i32, i32) {
    %c0_i32 = arith.constant 0 : i32
    %c0_i32_0 = arith.constant 0 : i32
    %c0_i32_1 = arith.constant 0 : i32
    return %c0_i32, %c0_i32_0 : i32, i32
  }
  func.func @transform_23(%arg0: i32) -> (i32, i32) {
    %c0_i32 = arith.constant 0 : i32
    %c0_i32_0 = arith.constant 0 : i32
    %c0_i32_1 = arith.constant 0 : i32
    return %c0_i32, %c0_i32_0 : i32, i32
  }
  func.func @transform_24(%arg0: i32) -> (i32, i32, i32) {
    %c0_i32 = arith.constant 0 : i32
    %c0_i32_0 = arith.constant 0 : i32
    %c0_i32_1 = arith.constant 0 : i32
    return %arg0, %c0_i32, %c0_i32_0 : i32, i32, i32
  }
  func.func @transform_25(%arg0: i32) -> (i32, i32, i32) {
    %c0_i32 = arith.constant 0 : i32
    %c0_i32_0 = arith.constant 0 : i32
    %c0_i32_1 = arith.constant 0 : i32
    return %arg0, %c0_i32, %c0_i32_0 : i32, i32, i32
  }
}

</mosaic_0001>

<bundles_post_ra>
// kernel: forward.1
= control target key start
LH: loop header
LB: loop body
LE: loop exit
PB: predicated region body
PF: predicated region fallthrough
CT: control target
= control target key end

     0   :  { %s5309_s29 = smov 0   ;;  %s6216_s0 = inlined_call_operand.vmem [shape: f32[2,39,30], index: 0, kind: input, shape index: {}]   ;;  %s6217_s1 = inlined_call_operand.vmem [shape: f32[2,1,39], index: 1, kind: input, shape index: {}]   ;;  %s6218_s2 = inlined_call_operand.vmem [shape: f32[30,48], index: 2, kind: input, shape index: {}]   ;;  %s6219_s3 = inlined_call_operand.vmem [shape: f32[48,16], index: 3, kind: input, shape index: {}]   ;;  %s6220_s4 = inlined_call_operand.vmem [shape: f32[1,16], index: 4, kind: input, shape index: {}]   ;;  %s6221_s5 = inlined_call_operand.vmem [shape: f32[1,16], index: 5, kind: input, shape index: {}]   ;;  %s6222_s6 = inlined_call_operand.vmem [shape: f32[16,32], index: 6, kind: input, shape index: {}]   ;;  %s6223_s7 = inlined_call_operand.vmem [shape: f32[1,32], index: 7, kind: input, shape index: {}]   ;;  %s6224_s8 = inlined_call_operand.vmem [shape: f32[1,32], index: 8, kind: input, shape index: {}]   ;;  %s6225_s9 = inlined_call_operand.vmem [shape: f32[1,32], index: 9, kind: input, shape index: {}]   ;;  %s6226_s10 = inlined_call_operand.vmem [shape: f32[32,96], index: 10, kind: input, shape index: {}]   ;;  %s6227_s11 = inlined_call_operand.vmem [shape: f32[1,96], index: 11, kind: input, shape index: {}]   ;;  %s6228_s12 = inlined_call_operand.vmem [shape: f32[32,32], index: 12, kind: input, shape index: {}]   ;;  %s6229_s13 = inlined_call_operand.vmem [shape: f32[1,32], index: 13, kind: input, shape index: {}]   ;;  %s6230_s14 = inlined_call_operand.vmem [shape: f32[1,32], index: 14, kind: input, shape index: {}]   ;;  %s6231_s15 = inlined_call_operand.vmem [shape: f32[1,32], index: 15, kind: input, shape index: {}]   ;;  %s6232_s16 = inlined_call_operand.vmem [shape: f32[32,64], index: 16, kind: input, shape index: {}]   ;;  %s6233_s17 = inlined_call_operand.vmem [shape: f32[1,64], index: 17, kind: input, shape index: {}]   ;;  %s6234_s18 = inlined_call_operand.vmem [shape: f32[64,32], index: 18, kind: input, shape index: {}]   ;;  %s6235_s19 = inlined_call_operand.vmem [shape: f32[1,32], index: 19, kind: input, shape index: {}]   ;;  %s6236_s20 = inlined_call_operand.vmem [shape: f32[1,32], index: 20, kind: input, shape index: {}]   ;;  %s6237_s21 = inlined_call_operand.vmem [shape: f32[1,32], index: 21, kind: input, shape index: {}]   ;;  %s6238_s22 = inlined_call_operand.vmem [shape: f32[32,32], index: 22, kind: input, shape index: {}]   ;;  %s6239_s23 = inlined_call_operand.vmem [shape: f32[1,32], index: 23, kind: input, shape index: {}]   ;;  %s6240_s24 = inlined_call_operand.vmem [shape: f32[2,39,32], index: 24, kind: output, shape index: {0}]   ;;  %s6241_s25 = inlined_call_operand.vmem [shape: f32[2,39,32], index: 25, kind: output, shape index: {1}]  }
   0x1   :  { %6245 = sst [smem:[#allocation2_spill]] %s6216_s0 }
   0x2   :  { %6246 = sst [smem:[#allocation3_spill]] %s6217_s1 }
   0x3   :  { %6247 = sst [smem:[#allocation4_spill]] %s6218_s2 }
   0x4   :  { %6248 = sst [smem:[#allocation5_spill]] %s6219_s3 }
   0x5   :  { %6249 = sst [smem:[#allocation6_spill]] %s6220_s4 }
   0x6   :  { %6250 = sst [smem:[#allocation7_spill]] %s6221_s5 }
   0x7   :  { %6251 = sst [smem:[#allocation8_spill]] %s6222_s6 }
   0x8   :  { %6252 = sst [smem:[#allocation9_spill]] %s6223_s7 }
   0x9   :  { %6253 = sst [smem:[#allocation10_spill]] %s6224_s8 }
   0xa   :  { %6254 = sst [smem:[#allocation11_spill]] %s6225_s9 }
   0xb LB: > { %s4017_s2 = sadd.s32 4294967295, %s5161_s29   ;;  %p4021_p0 = scmp.ge.s32.totalorder %s5161_s29, 1  ;;  %s5161_s29 = sphi %s5309_s29, %s36_s29  }
   0xc   : > { %p698_p1 = scmp.lt.s32.totalorder %s5161_s29, 3 }
   0xe   : > { %p699_p2 = pnand %p4021_p0, %p698_p1 }
   0xf   : > { %s6255_s7 = sld [smem:[#allocation4_spill]] (!%p699_p2)  ;;  %vm817_vm0 = vcmask (!%p699_p2), 1045504   ;;  %v5163_v3 = vmov (!%p699_p2), 0.0|0.0   ;;  %p774_p3 = scmp.lt.s32.totalorder (!%p699_p2), %s4017_s2, 1  ;;  %vm5164_vm1 = vmmov (!%p699_p2), 0   ;;  %v5165_v6 = vmov (!%p699_p2), 0.0  }
  0x10   : > { %702 = sbr.rel (%p699_p2) target bundleno = 5717 (0x1655), region = 116  ;;  %4769 = vmatprep.subr.bf16.mxu0 (!%p699_p2), %v5163_v3  ;;  %4776 = vmatprep.subr.bf16.mxu1 (!%p699_p2), %v5163_v3  ;;  %vm5166_vm2 = vmmov (!%p699_p2), 1   ;;  %s6256_s0 = sld [smem:[#allocation2_spill]] (!%p699_p2)  ;;  %vm801_vm4 = vcmask (!%p699_p2), 244736   ;;  %vm962_vm5 = vcmask (!%p699_p2), 392192   ;;  %vm1115_vm6 = vcmask (!%p699_p2), 130048  }
  0x11   : > { %4340 = vmatprep.mubr.msk.f32.mxu0 (!%p699_p2), %vm5164_vm1, %v5165_v6  ;;  %4367 = vmatprep.mubr.msk.f32.mxu1 (!%p699_p2), %vm5164_vm1, %v5165_v6  ;;  %vm4774_vm3 = vmpackc.low (!%p699_p2), %vm817_vm0, %vm5166_vm2  ;;  %s6257_s26 = sld [smem:[#allocation5_spill]] (!%p699_p2)  ;;  %vm1128_vm7 = vcmask (!%p699_p2), 129024   ;;  %s6258_s27 = sld [smem:[#allocation8_spill]] (!%p699_p2)  ;;  %vm1321_vm8 = vcmask (!%p699_p2), 261120   ;;  %vm1334_vm9 = vcmask (!%p699_p2), 260096   ;;  %vm1547_vm10 = vcmask (!%p699_p2), 64512  }
  0x12   : > { %s6260_s1 = sld [smem:[#allocation7_spill]] (!%p699_p2)  ;;  %s6261_s9 = sld [smem:[#allocation9_spill]] (!%p699_p2)  ;;  %vm5528_vm11 = vmpackc.low (!%p699_p2), %vm1547_vm10, %vm1547_vm10  ;;  %vm1675_vm14 = vcmask (!%p699_p2), 318464   ;;  %vm1688_vm15 = vcmask (!%p699_p2), 317440   ;;  %vm1766_vm0 = vcmask (!%p699_p2), 1046528   ;;  %vm3534_vm2 = vcmask (!%p699_p2), 523264  }
  0x13   : > { %s6263_s3 = sld [smem:[#allocation11_spill]] (!%p699_p2)  ;;  %s5167_s4 = smov (!%p699_p2), 96  }
  0x14   : > { %s5169_s5 = smov (!%p699_p2), 120   ;;  %s6266_s30 = sld [smem:[#allocation3_spill]] (!%p699_p2) }
  0x15   : > { %v797_v0 = vld [vmem:[%s6255_s7] sm:$0xff] (!%p699_p2)  ;;  %v798_v1 = vld [vmem:[%s6255_s7 + $0x8] sm:$0xff] (!%p699_p2)  ;;  %v799_v2 = vld [vmem:[%s6255_s7 + $0x10] sm:$0xff] (!%p699_p2)  ;;  %s5173_s8 = smov (!%p699_p2), 80  }
  0x16   : > { %v4770_v4 = vpack.c.bf16 (!%p699_p2), %v798_v1, %v797_v0  ;;  %v800_v5 = vld [vmem:[%s6255_s7 + $0x18] sm:$0x3f] (!%p699_p2) }
  0x17   : > { %v4773_v7 = vpack.c.bf16 %v800_v5, %v799_v2  ;;  %s6268_s2 = smov (!%p774_p3, %s4017_s2), 1  ;;  %v956_v13 = vld [vmem:[%s6257_s26] sm:$0xff]  ;;  %v957_v14 = vld [vmem:[%s6257_s26 + $0x8] sm:$0xff]  ;;  %v958_v16 = vld [vmem:[%s6257_s26 + $0x10] sm:$0xff] }
  0x18   : > { %4771 = vmatpush3.bf16.msra.mxu0 %v4770_v4  ;;  %s5340_s28 = smul.u32 40, %s6268_s2  ;;  %v4777_v15 = vpack.c.bf16 %v957_v14, %v956_v13  ;;  %v959_v17 = vld [vmem:[%s6257_s26 + $0x18] sm:$0xff]  ;;  %v960_v19 = vld [vmem:[%s6257_s26 + $0x20] sm:$0xff]  ;;  %v961_v20 = vld [vmem:[%s6257_s26 + $0x28] sm:$0xff] }
  0x19   : > { %4772 = vmatprep.subr.bf16.mxu0 %v5163_v3  ;;  %v4780_v18 = vpack.c.bf16 %v959_v17, %v958_v16  ;;  %v4783_v21 = vpack.c.bf16 %v961_v20, %v960_v19 }
  0x1a   : > { %s778_s6 = scalar_lea.vmem %s6256_s0, %s5340_s28  ;;  %4778 = vmatpush3.bf16.msra.mxu1 %v4777_v15  ;;  %s6262_s0 = sld [smem:[#allocation10_spill]] }
  0x1b   : > { %v792_v8 = vld [vmem:[%s778_s6] sm:$0xff]  ;;  %v793_v9 = vld [vmem:[%s778_s6 + $0x8] sm:$0xff]  ;;  %v794_v10 = vld [vmem:[%s778_s6 + $0x10] sm:$0xff]  ;;  %4779 = vmatprep.subr.bf16.mxu1 %v5163_v3 }
  0x1c   : > { %4775 = vmatpush3.bf16.msk.msra.mxu0 %vm4774_vm3, %v4773_v7  ;;  %v795_v11 = vld [vmem:[%s778_s6 + $0x18] sm:$0xff]  ;;  %v796_v12 = vld [vmem:[%s778_s6 + $0x20] sm:$0x7f]  ;;  %s6259_s6 = sld [smem:[#allocation6_spill]] }
  0x1d   : > { %4785 = vmatprep.subr.bf16.mxu0 %v5163_v3 }
  0x1e   : > { %4781 = vmatpush3.bf16.msra.mxu1 %v4780_v18 }
  0x1f   : > { %4341 = vmatmul.mubr.msk.f32.vlgmr.msra.gmra.mrb[0].mxu0 %vm801_vm4, %v792_v8  ;;  %4782 = vmatprep.subr.bf16.mxu1 %v5163_v3 }
  0x20   : > { %4343 = vmatprep.mubr.msk.f32.mxu0 %vm5164_vm1, %v5165_v6 }
  0x22   : > { %4784 = vmatpush3.bf16.msra.mxu1 %v4783_v21 }
  0x23   : > { %4344 = vmatmul.mubr.msk.f32.gmra.mrb[2].mxu0 %vm801_vm4, %v793_v9  ;;  %4788 = vmatprep.subr.bf16.mxu1 %v5163_v3 }
  0x24   : > { %4346 = vmatprep.mubr.msk.f32.mxu0 %vm5164_vm1, %v5165_v6 }
  0x27   : > { %4347 = vmatmul.mubr.msk.f32.gmra.mrb[4].mxu0 %vm801_vm4, %v794_v10 }
  0x28   : > { %4349 = vmatprep.mubr.msk.f32.mxu0 %vm5164_vm1, %v5165_v6 }
  0x2b   : > { %4350 = vmatmul.mubr.msk.f32.gmra.mrb[6].mxu0 %vm801_vm4, %v795_v11 }
  0x2c   : > { %4352 = vmatprep.mubr.msk.f32.mxu0 %vm5164_vm1, %v5165_v6 }
  0x2f   : > { %4353 = vmatmul.mubr.msk.f32.gmra.mrb[8].mxu0 %vm801_vm4, %v796_v12 }
  0x30   : > { %4386 = vmatprep.mubr.msk.f32.mxu0 %vm5164_vm1, %v5165_v6 }
  0xf2   : > { %v887_v22 = vpop.f32.mrb[0].mxu0 }
  0xf3   : > { %v916_v23 = vmul.f32 0.044715, %v887_v22  ;;  %v4342_v24 = vpop.f32.mrb[1].mxu0  ;;  %v911_v56 = vmul.f32 0.5, %v887_v22 }
  0xf5   : > { %v921_v25 = vmul.f32 %v916_v23, %v887_v22 }
  0xf6   : > { %v892_v26 = vpop.f32.mrb[2].mxu0 }
  0xf7   : > { %v926_v27 = vmul.f32 %v921_v25, %v887_v22  ;;  %v917_v28 = vmul.f32 0.044715, %v892_v26  ;;  %v4345_v29 = vpop.f32.mrb[3].mxu0  ;;  %v912_v62 = vmul.f32 0.5, %v892_v26 }
  0xf9   : > { %v931_v30 = vadd.f32 %v926_v27, %v887_v22  ;;  %v922_v31 = vmul.f32 %v917_v28, %v892_v26 }
  0xfa   : > { %v897_v32 = vpop.f32.mrb[4].mxu0 }
  0xfb   : > { %v936_v33 = vmul.f32 0.7978846, %v931_v30  ;;  %v927_v34 = vmul.f32 %v922_v31, %v892_v26  ;;  %v918_v35 = vmul.f32 0.044715, %v897_v32  ;;  %v4348_v36 = vpop.f32.mrb[5].mxu0  ;;  %v913_v2 = vmul.f32 0.5, %v897_v32 }
  0xfd   : > { %4985 = vtanh.f32 %v936_v33  ;;  %v932_v37 = vadd.f32 %v927_v34, %v892_v26  ;;  %v923_v38 = vmul.f32 %v918_v35, %v897_v32 }
  0xfe   : > { %v902_v39 = vpop.f32.mrb[6].mxu0 }
  0xff   : > { %v937_v40 = vmul.f32 0.7978846, %v932_v37  ;;  %v928_v41 = vmul.f32 %v923_v38, %v897_v32  ;;  %v919_v42 = vmul.f32 0.044715, %v902_v39  ;;  %v4351_v43 = vpop.f32.mrb[7].mxu0  ;;  %v914_v8 = vmul.f32 0.5, %v902_v39 }
 0x101   : > { %4987 = vtanh.f32 %v937_v40  ;;  %v933_v44 = vadd.f32 %v928_v41, %v897_v32  ;;  %v924_v45 = vmul.f32 %v919_v42, %v902_v39 }
 0x102   : > { %v907_v46 = vpop.f32.mrb[8].mxu0 }
 0x103   : > { %v938_v47 = vmul.f32 0.7978846, %v933_v44  ;;  %v929_v48 = vmul.f32 %v924_v45, %v902_v39  ;;  %v920_v49 = vmul.f32 0.044715, %v907_v46  ;;  %v4354_v50 = vpop.f32.mrb[9].mxu0  ;;  %v915_v12 = vmul.f32 0.5, %v907_v46 }
 0x105   : > { %4989 = vtanh.f32 %v938_v47  ;;  %v934_v51 = vadd.f32 %v929_v48, %v902_v39  ;;  %v925_v52 = vmul.f32 %v920_v49, %v907_v46 }
 0x107   : > { %v4986_v53 = vpop.eup %4985  ;;  %v939_v54 = vmul.f32 0.7978846, %v934_v51  ;;  %v930_v55 = vmul.f32 %v925_v52, %v907_v46 }
 0x108   : > { %v946_v57 = vadd.f32 1.0, %v4986_v53 }
 0x109   : > { %4991 = vtanh.f32 %v939_v54  ;;  %v935_v58 = vadd.f32 %v930_v55, %v907_v46 }
 0x10a   : > { %v951_v59 = vmul.f32 %v946_v57, %v911_v56 }
 0x10b   : > { %v4988_v60 = vpop.eup %4987  ;;  %v940_v61 = vmul.f32 0.7978846, %v935_v58 }
 0x10c   : > { %4368 = vmatmul.mubr.msk.f32.vlgmr.msra.gmra.mrb[0].mxu1 %vm962_vm5, %v951_v59  ;;  %v947_v63 = vadd.f32 1.0, %v4988_v60 }
 0x10d   : > { %4993 = vtanh.f32 %v940_v61  ;;  %4370 = vmatprep.mubr.msk.f32.mxu1 %vm5164_vm1, %v5165_v6 }
 0x10e   : > { %v952_v0 = vmul.f32 %v947_v63, %v912_v62 }
 0x10f   : > { %v4990_v1 = vpop.eup %4989 }
 0x110   : > { %4371 = vmatmul.mubr.msk.f32.gmra.mrb[2].mxu1 %vm962_vm5, %v952_v0  ;;  %v948_v4 = vadd.f32 1.0, %v4990_v1 }
 0x111   : > { %4373 = vmatprep.mubr.msk.f32.mxu1 %vm5164_vm1, %v5165_v6 }
 0x112   : > { %v953_v5 = vmul.f32 %v948_v4, %v913_v2 }
 0x113   : > { %v4992_v7 = vpop.eup %4991 }
 0x114   : > { %4374 = vmatmul.mubr.msk.f32.gmra.mrb[4].mxu1 %vm962_vm5, %v953_v5  ;;  %v949_v9 = vadd.f32 1.0, %v4992_v7 }
 0x115   : > { %4376 = vmatprep.mubr.msk.f32.mxu1 %vm5164_vm1, %v5165_v6 }
 0x116   : > { %v954_v10 = vmul.f32 %v949_v9, %v914_v8 }
 0x117   : > { %v4994_v11 = vpop.eup %4993 }
 0x118   : > { %4377 = vmatmul.mubr.msk.f32.gmra.mrb[6].mxu1 %vm962_vm5, %v954_v10  ;;  %v950_v13 = vadd.f32 1.0, %v4994_v11 }
 0x119   : > { %4379 = vmatprep.mubr.msk.f32.mxu1 %vm5164_vm1, %v5165_v6 }
 0x11a   : > { %v955_v14 = vmul.f32 %v950_v13, %v915_v12 }
 0x11c   : > { %4380 = vmatmul.mubr.msk.f32.gmra.mrb[8].mxu1 %vm962_vm5, %v955_v14 }
 0x11d   : > { %4409 = vmatprep.mubr.msk.f32.mxu1 %vm5164_vm1, %v5165_v6 }
 0x1df   : > { %v1044_v15 = vpop.f32.mrb[0].mxu1 }
 0x1e0   : > { %v1073_v16 = vmul.f32 0.044715, %v1044_v15  ;;  %v4369_v17 = vpop.f32.mrb[1].mxu1  ;;  %v1068_v49 = vmul.f32 0.5, %v1044_v15 }
 0x1e2   : > { %v1078_v18 = vmul.f32 %v1073_v16, %v1044_v15 }
 0x1e3   : > { %v1049_v19 = vpop.f32.mrb[2].mxu1 }
 0x1e4   : > { %v1083_v20 = vmul.f32 %v1078_v18, %v1044_v15  ;;  %v1074_v21 = vmul.f32 0.044715, %v1049_v19  ;;  %v4372_v22 = vpop.f32.mrb[3].mxu1  ;;  %v1069_v56 = vmul.f32 0.5, %v1049_v19 }
 0x1e6   : > { %v1079_v23 = vmul.f32 %v1074_v21, %v1049_v19  ;;  %v1088_v24 = vadd.f32 %v1083_v20, %v1044_v15 }
 0x1e7   : > { %v1054_v25 = vpop.f32.mrb[4].mxu1 }
 0x1e8   : > { %v1084_v26 = vmul.f32 %v1079_v23, %v1049_v19  ;;  %v1075_v27 = vmul.f32 0.044715, %v1054_v25  ;;  %v4375_v28 = vpop.f32.mrb[5].mxu1  ;;  %v1093_v29 = vmul.f32 0.7978846, %v1088_v24  ;;  %v1070_v61 = vmul.f32 0.5, %v1054_v25 }
 0x1ea   : > { %v1080_v30 = vmul.f32 %v1075_v27, %v1054_v25  ;;  %4995 = vtanh.f32 %v1093_v29  ;;  %v1089_v31 = vadd.f32 %v1084_v26, %v1049_v19 }
 0x1eb   : > { %v1059_v32 = vpop.f32.mrb[6].mxu1 }
 0x1ec   : > { %v1085_v33 = vmul.f32 %v1080_v30, %v1054_v25  ;;  %v1076_v34 = vmul.f32 0.044715, %v1059_v32  ;;  %v4378_v35 = vpop.f32.mrb[7].mxu1  ;;  %v1094_v36 = vmul.f32 0.7978846, %v1089_v31  ;;  %v1071_v2 = vmul.f32 0.5, %v1059_v32 }
 0x1ee   : > { %v1081_v37 = vmul.f32 %v1076_v34, %v1059_v32  ;;  %4997 = vtanh.f32 %v1094_v36  ;;  %v1090_v38 = vadd.f32 %v1085_v33, %v1054_v25 }
 0x1ef   : > { %v1064_v39 = vpop.f32.mrb[8].mxu1 }
 0x1f0   : > { %v1086_v40 = vmul.f32 %v1081_v37, %v1059_v32  ;;  %v1077_v41 = vmul.f32 0.044715, %v1064_v39  ;;  %v4381_v42 = vpop.f32.mrb[9].mxu1  ;;  %v1095_v43 = vmul.f32 0.7978846, %v1090_v38  ;;  %v1072_v9 = vmul.f32 0.5, %v1064_v39 }
 0x1f1   : > { %v1205_v38 = vld [vmem:[%s6258_s27] sm:$0xff] }
 0x1f2   : > { %v1082_v44 = vmul.f32 %v1077_v41, %v1064_v39  ;;  %4999 = vtanh.f32 %v1095_v43  ;;  %v1091_v45 = vadd.f32 %v1086_v40, %v1059_v32 }
 0x1f4   : > { %v4996_v46 = vpop.eup %4995  ;;  %v1087_v47 = vmul.f32 %v1082_v44, %v1064_v39  ;;  %v1096_v48 = vmul.f32 0.7978846, %v1091_v45 }
 0x1f5   : > { %v1103_v50 = vadd.f32 1.0, %v4996_v46 }
 0x1f6   : > { %5001 = vtanh.f32 %v1096_v48  ;;  %v1092_v51 = vadd.f32 %v1087_v47, %v1064_v39  ;;  %v1206_v39 = vld [vmem:[%s6258_s27 + $0x8] sm:$0xff] }
 0x1f7   : > { %v1108_v52 = vmul.f32 %v1103_v50, %v1068_v49  ;;  %v4786_v40 = vpack.c.bf16 %v1206_v39, %v1205_v38 }
 0x1f8   : > { %v4998_v53 = vpop.eup %4997  ;;  %v1097_v54 = vmul.f32 0.7978846, %v1092_v51 }
 0x1f9   : > { %v1116_v55 = vsel %vm1115_vm6, %v1108_v52, 0.0  ;;  %v1104_v57 = vadd.f32 1.0, %v4998_v53  ;;  %4787 = vmatpush3.bf16.msra.mxu0 %v4786_v40  ;;  %v4036_v53 = vld [vmem:[%s6259_s6] ss:$0 sm:$0xff] }
 0x1fa   : > { %1117 = vadd.xlane.f32.xlu0 %v1116_v55  ;;  %5003 = vtanh.f32 %v1097_v54  ;;  %4794 = vmatprep.subr.bf16.mxu0 %v5163_v3 }
 0x1fb   : > { %v1109_v58 = vmul.f32 %v1104_v57, %v1069_v56 }
 0x1fc   : > { %v5000_v59 = vpop.eup %4999 }
 0x1fd   : > { %v1119_v60 = vsel %vm1115_vm6, %v1109_v58, 0.0  ;;  %v1105_v62 = vadd.f32 1.0, %v5000_v59 }
 0x1fe   : > { %1120 = vadd.xlane.f32.xlu0 %v1119_v60 }
 0x1ff   : > { %v1110_v63 = vmul.f32 %v1105_v62, %v1070_v61 }
 0x200   : > { %v5002_v0 = vpop.eup %5001 }
 0x201   : > { %v1122_v1 = vsel %vm1115_vm6, %v1110_v63, 0.0  ;;  %v1106_v4 = vadd.f32 1.0, %v5002_v0 }
 0x202   : > { %1123 = vadd.xlane.f32.xlu1 %v1122_v1 }
 0x203   : > { %v1111_v5 = vmul.f32 %v1106_v4, %v1071_v2 }
 0x204   : > { %v5004_v7 = vpop.eup %5003 }
 0x205   : > { %v1125_v8 = vsel %vm1115_vm6, %v1111_v5, 0.0  ;;  %v1107_v10 = vadd.f32 1.0, %v5004_v7 }
 0x206   : > { %1126 = vadd.xlane.f32.xlu1 %v1125_v8 }
 0x207   : > { %v1112_v11 = vmul.f32 %v1107_v10, %v1072_v9 }
 0x209   : > { %v1129_v12 = vsel %vm1128_vm7, %v1112_v11, 0.0 }
 0x20a   : > { %1130 = vadd.xlane.f32.xlu0 %v1129_v12 }
 0x287   : > { %v1118_v13 = vpop.xlane.xlu0 %1117 }
 0x288   : > { %v1133_v14 = vmul.f32 0.0625, %v1118_v13 }
 0x28a   : > { %v1138_v15 = vsub.f32 %v1108_v52, %v1133_v14 }
 0x28b   : > { %v1121_v16 = vpop.xlane.xlu0 %1120 }
 0x28c   : > { %v1134_v17 = vmul.f32 0.0625, %v1121_v16  ;;  %v1143_v18 = vmul.f32 %v1138_v15, %v1138_v15  ;;  %v4038_v16 = vld [vmem:[%s6261_s9] ss:$0 sm:$0xff]  ;;  %s5168_s9 = smov 88  }
 0x28e   : > { %v1139_v19 = vsub.f32 %v1109_v58, %v1134_v17  ;;  %v1148_v20 = vsel %vm1115_vm6, %v1143_v18, 0.0  ;;  %v4037_v58 = vld [vmem:[%s6260_s1] ss:$0 sm:$0xff]  ;;  %s5172_s1 = smov 56  }
 0x28f   : > { %v1124_v21 = vpop.xlane.xlu1 %1123  ;;  %1149 = vadd.xlane.f32.xlu1 %v1148_v20 }
 0x290   : > { %v1135_v22 = vmul.f32 0.0625, %v1124_v21  ;;  %v1144_v23 = vmul.f32 %v1139_v19, %v1139_v19 }
 0x292   : > { %v1140_v24 = vsub.f32 %v1110_v63, %v1135_v22  ;;  %v1151_v25 = vsel %vm1115_vm6, %v1144_v23, 0.0 }
 0x293   : > { %v1127_v26 = vpop.xlane.xlu1 %1126  ;;  %1152 = vadd.xlane.f32.xlu0 %v1151_v25 }
 0x294   : > { %v1136_v27 = vmul.f32 0.0625, %v1127_v26  ;;  %v1145_v28 = vmul.f32 %v1140_v24, %v1140_v24 }
 0x296   : > { %v1141_v29 = vsub.f32 %v1111_v5, %v1136_v27  ;;  %v1154_v30 = vsel %vm1115_vm6, %v1145_v28, 0.0 }
 0x297   : > { %1155 = vadd.xlane.f32.xlu1 %v1154_v30  ;;  %v1131_v31 = vpop.xlane.xlu0 %1130 }
 0x298   : > { %v1137_v32 = vmul.f32 0.0625, %v1131_v31  ;;  %v1146_v33 = vmul.f32 %v1141_v29, %v1141_v29 }
 0x29a   : > { %v1142_v34 = vsub.f32 %v1112_v11, %v1137_v32  ;;  %v1157_v35 = vsel %vm1115_vm6, %v1146_v33, 0.0 }
 0x29b   : > { %1158 = vadd.xlane.f32.xlu0 %v1157_v35 }
 0x29c   : > { %v1147_v36 = vmul.f32 %v1142_v34, %v1142_v34 }
 0x29e   : > { %v1160_v37 = vsel %vm1128_vm7, %v1147_v36, 0.0 }
 0x29f   : > { %1161 = vadd.xlane.f32.xlu1 %v1160_v37 }
 0x31c   : > { %v1150_v41 = vpop.xlane.xlu1 %1149 }
 0x31d   : > { %v1163_v42 = vmul.f32 0.0625, %v1150_v41 }
 0x31f   : > { %v1168_v43 = vadd.f32 1e-05, %v1163_v42 }
 0x320   : > { %v1153_v44 = vpop.xlane.xlu0 %1152 }
 0x321   : > { %5005 = vrsqrt.f32 %v1168_v43  ;;  %v1164_v45 = vmul.f32 0.0625, %v1153_v44 }
 0x323   : > { %v1169_v46 = vadd.f32 1e-05, %v1164_v45 }
 0x324   : > { %v1156_v47 = vpop.xlane.xlu1 %1155 }
 0x325   : > { %5007 = vrsqrt.f32 %v1169_v46  ;;  %v1165_v48 = vmul.f32 0.0625, %v1156_v47 }
 0x327   : > { %v1170_v49 = vadd.f32 1e-05, %v1165_v48 }
 0x328   : > { %v1159_v50 = vpop.xlane.xlu0 %1158 }
 0x329   : > { %5009 = vrsqrt.f32 %v1170_v49  ;;  %v1166_v51 = vmul.f32 0.0625, %v1159_v50 }
 0x32b   : > { %v5006_v52 = vpop.eup %5005  ;;  %v1171_v54 = vadd.f32 1e-05, %v1166_v51 }
 0x32c   : > { %v1178_v55 = vmul.f32 %v5006_v52, %v1138_v15  ;;  %v1162_v56 = vpop.xlane.xlu1 %1161 }
 0x32d   : > { %5011 = vrsqrt.f32 %v1171_v54  ;;  %v1167_v57 = vmul.f32 0.0625, %v1162_v56 }
 0x32e   : > { %v1189_v59 = vmul.f32 %v4036_v53, %v1178_v55 }
 0x32f   : > { %v5008_v60 = vpop.eup %5007  ;;  %v1172_v61 = vadd.f32 1e-05, %v1167_v57 }
 0x330   : > { %v1200_v62 = vadd.f32 %v4037_v58, %v1189_v59  ;;  %v1179_v63 = vmul.f32 %v5008_v60, %v1139_v19 }
 0x331   : > { %5013 = vrsqrt.f32 %v1172_v61 }
 0x332   : > { %4387 = vmatmul.mubr.msk.f32.vlgmr.msra.gmra.mrb[10].mxu0 %vm1115_vm6, %v1200_v62  ;;  %v1190_v0 = vmul.f32 %v4036_v53, %v1179_v63  ;;  %v1411_v62 = vld [vmem:[%s6226_s10] sm:$0xff]  ;;  %v1412_v63 = vld [vmem:[%s6226_s10 + $0x8] sm:$0xff] }
 0x333   : > { %v5010_v1 = vpop.eup %5009  ;;  %4389 = vmatprep.mubr.msk.f32.mxu0 %vm5164_vm1, %v5165_v6 }
 0x334   : > { %v1201_v2 = vadd.f32 %v4037_v58, %v1190_v0  ;;  %v1180_v4 = vmul.f32 %v5010_v1, %v1140_v24  ;;  %v4789_v0 = vpack.c.bf16 %v1412_v63, %v1411_v62  ;;  %v1413_v1 = vld [vmem:[%s6226_s10 + $0x10] sm:$0xff] }
 0x336   : > { %4390 = vmatmul.mubr.msk.f32.gmra.mrb[12].mxu0 %vm1115_vm6, %v1201_v2  ;;  %v1191_v5 = vmul.f32 %v4036_v53, %v1180_v4  ;;  %4790 = vmatpush3.bf16.msra.mxu1 %v4789_v0  ;;  %v1414_v2 = vld [vmem:[%s6226_s10 + $0x18] sm:$0xff] }
 0x337   : > { %v5012_v7 = vpop.eup %5011  ;;  %4392 = vmatprep.mubr.msk.f32.mxu0 %vm5164_vm1, %v5165_v6  ;;  %4791 = vmatprep.subr.bf16.mxu1 %v5163_v3  ;;  %v4792_v4 = vpack.c.bf16 %v1414_v2, %v1413_v1 }
 0x338   : > { %v1202_v8 = vadd.f32 %v4037_v58, %v1191_v5  ;;  %v1181_v9 = vmul.f32 %v5012_v7, %v1141_v29 }
 0x33a   : > { %4393 = vmatmul.mubr.msk.f32.gmra.mrb[14].mxu0 %vm1115_vm6, %v1202_v8  ;;  %v1192_v10 = vmul.f32 %v4036_v53, %v1181_v9  ;;  %4793 = vmatpush3.bf16.msra.mxu1 %v4792_v4 }
 0x33b   : > { %v5014_v11 = vpop.eup %5013  ;;  %4395 = vmatprep.mubr.msk.f32.mxu0 %vm5164_vm1, %v5165_v6  ;;  %4802 = vmatprep.subr.bf16.mxu1 %v5163_v3 }
 0x33c   : > { %v1203_v12 = vadd.f32 %v4037_v58, %v1192_v10  ;;  %v1182_v13 = vmul.f32 %v5014_v11, %v1142_v34 }
 0x33e   : > { %4396 = vmatmul.mubr.msk.f32.gmra.mrb[16].mxu0 %vm1115_vm6, %v1203_v12  ;;  %v1193_v14 = vmul.f32 %v4036_v53, %v1182_v13 }
 0x33f   : > { %4398 = vmatprep.mubr.msk.f32.mxu0 %vm5164_vm1, %v5165_v6 }
 0x340   : > { %v1204_v15 = vadd.f32 %v4037_v58, %v1193_v14 }
 0x342   : > { %4399 = vmatmul.mubr.msk.f32.gmra.mrb[18].mxu0 %vm1115_vm6, %v1204_v15 }
 0x343   : > { %4434 = vmatprep.mubr.msk.f32.mxu0 %vm5164_vm1, %v5165_v6 }
 0x405   : > { %v1295_v17 = vpop.f32.mrb[10].mxu0 }
 0x406   : > { %v1296_v18 = vadd.f32 %v4038_v16, %v1295_v17  ;;  %v4388_v19 = vpop.f32.mrb[11].mxu0 }
 0x408   : > { %v1322_v20 = vsel %vm1321_vm8, %v1296_v18, 0.0 }
 0x409   : > { %1323 = vadd.xlane.f32.xlu0 %v1322_v20  ;;  %v1300_v21 = vpop.f32.mrb[12].mxu0 }
 0x40a   : > { %v1301_v22 = vadd.f32 %v4038_v16, %v1300_v21  ;;  %v4391_v23 = vpop.f32.mrb[13].mxu0 }
 0x40b   : > { %v4045_v23 = vld [vmem:[%s6263_s3] ss:$0 sm:$0xff]  ;;  %s781_s3 = scalar_lea.vmem %s6266_s30, %s6268_s2  ;;  %s5171_s2 = smov 64  }
 0x40c   : > { %v1325_v24 = vsel %vm1321_vm8, %v1301_v22, 0.0  ;;  %s5175_s30 = smov 48  }
 0x40d   : > { %1326 = vadd.xlane.f32.xlu1 %v1325_v24  ;;  %v1305_v25 = vpop.f32.mrb[14].mxu0 }
 0x40e   : > { %v1306_v26 = vadd.f32 %v4038_v16, %v1305_v25  ;;  %v4394_v27 = vpop.f32.mrb[15].mxu0 }
 0x410   : > { %v1328_v28 = vsel %vm1321_vm8, %v1306_v26, 0.0 }
 0x411   : > { %1329 = vadd.xlane.f32.xlu0 %v1328_v28  ;;  %v1310_v29 = vpop.f32.mrb[16].mxu0 }
 0x412   : > { %v1311_v30 = vadd.f32 %v4038_v16, %v1310_v29  ;;  %v4397_v31 = vpop.f32.mrb[17].mxu0 }
 0x414   : > { %v1331_v32 = vsel %vm1321_vm8, %v1311_v30, 0.0 }
 0x415   : > { %1332 = vadd.xlane.f32.xlu1 %v1331_v32  ;;  %v1315_v33 = vpop.f32.mrb[18].mxu0 }
 0x416   : > { %v1316_v34 = vadd.f32 %v4038_v16, %v1315_v33  ;;  %v4400_v35 = vpop.f32.mrb[19].mxu0 }
 0x418   : > { %v1335_v36 = vsel %vm1334_vm9, %v1316_v34, 0.0 }
 0x419   : > { %1336 = vadd.xlane.f32.xlu0 %v1335_v36 }
 0x496   : > { %v1324_v37 = vpop.xlane.xlu0 %1323 }
 0x497   : > { %v1339_v38 = vmul.f32 0.03125, %v1324_v37 }
 0x499   : > { %v1344_v39 = vsub.f32 %v1296_v18, %v1339_v38  ;;  %v4044_v18 = vld [vmem:[%s6262_s0] ss:$0 sm:$0xff]  ;;  %s786_s0 = scalar_lea.vmem %s6240_s24, %s5340_s28 }
 0x49a   : > { %v1327_v40 = vpop.xlane.xlu1 %1326 }
 0x49b   : > { %v1340_v41 = vmul.f32 0.03125, %v1327_v40  ;;  %v1349_v42 = vmul.f32 %v1344_v39, %v1344_v39 }
 0x49d   : > { %v1345_v43 = vsub.f32 %v1301_v22, %v1340_v41  ;;  %v1354_v44 = vsel %vm1321_vm8, %v1349_v42, 0.0 }
 0x49e   : > { %v1330_v45 = vpop.xlane.xlu0 %1329  ;;  %1355 = vadd.xlane.f32.xlu1 %v1354_v44 }
 0x49f   : > { %v1341_v46 = vmul.f32 0.03125, %v1330_v45  ;;  %v1350_v47 = vmul.f32 %v1345_v43, %v1345_v43  ;;  %v4046_v45 = vld [vmem:[%s6227_s11] ss:$0 sm:$0xff] }
 0x4a1   : > { %v1346_v48 = vsub.f32 %v1306_v26, %v1341_v46  ;;  %v1357_v49 = vsel %vm1321_vm8, %v1350_v47, 0.0 }
 0x4a2   : > { %v1333_v50 = vpop.xlane.xlu1 %1332  ;;  %1358 = vadd.xlane.f32.xlu0 %v1357_v49 }
 0x4a3   : > { %v1342_v51 = vmul.f32 0.03125, %v1333_v50  ;;  %v1351_v52 = vmul.f32 %v1346_v48, %v1346_v48 }
 0x4a5   : > { %v1347_v53 = vsub.f32 %v1311_v30, %v1342_v51  ;;  %v1360_v54 = vsel %vm1321_vm8, %v1351_v52, 0.0 }
 0x4a6   : > { %1361 = vadd.xlane.f32.xlu1 %v1360_v54  ;;  %v1337_v55 = vpop.xlane.xlu0 %1336 }
 0x4a7   : > { %v1343_v56 = vmul.f32 0.03125, %v1337_v55  ;;  %v1352_v57 = vmul.f32 %v1347_v53, %v1347_v53 }
 0x4a9   : > { %v1348_v58 = vsub.f32 %v1316_v34, %v1343_v56  ;;  %v1363_v59 = vsel %vm1321_vm8, %v1352_v57, 0.0 }
 0x4aa   : > { %1364 = vadd.xlane.f32.xlu0 %v1363_v59 }
 0x4ab   : > { %v1353_v60 = vmul.f32 %v1348_v58, %v1348_v58 }
 0x4ad   : > { %v1366_v61 = vsel %vm1334_vm9, %v1353_v60, 0.0 }
 0x4ae   : > { %1367 = vadd.xlane.f32.xlu1 %v1366_v61 }
 0x52b   : > { %v1356_v5 = vpop.xlane.xlu1 %1355 }
 0x52c   : > { %v1369_v7 = vmul.f32 0.03125, %v1356_v5 }
 0x52e   : > { %v1374_v8 = vadd.f32 1e-05, %v1369_v7 }
 0x52f   : > { %v1359_v9 = vpop.xlane.xlu0 %1358 }
 0x530   : > { %5015 = vrsqrt.f32 %v1374_v8  ;;  %v1370_v10 = vmul.f32 0.03125, %v1359_v9 }
 0x532   : > { %v1375_v11 = vadd.f32 1e-05, %v1370_v10 }
 0x533   : > { %v1362_v12 = vpop.xlane.xlu1 %1361 }
 0x534   : > { %5017 = vrsqrt.f32 %v1375_v11  ;;  %v1371_v13 = vmul.f32 0.03125, %v1362_v12 }
 0x536   : > { %v1376_v14 = vadd.f32 1e-05, %v1371_v13 }
 0x537   : > { %v1365_v15 = vpop.xlane.xlu0 %1364 }
 0x538   : > { %5019 = vrsqrt.f32 %v1376_v14  ;;  %v1372_v16 = vmul.f32 0.03125, %v1365_v15 }
 0x53a   : > { %v5016_v17 = vpop.eup %5015  ;;  %v1377_v19 = vadd.f32 1e-05, %v1372_v16 }
 0x53b   : > { %v1384_v20 = vmul.f32 %v5016_v17, %v1344_v39  ;;  %v1368_v21 = vpop.xlane.xlu1 %1367 }
 0x53c   : > { %5021 = vrsqrt.f32 %v1377_v19  ;;  %v1373_v22 = vmul.f32 0.03125, %v1368_v21 }
 0x53d   : > { %v1395_v24 = vmul.f32 %v4044_v18, %v1384_v20 }
 0x53e   : > { %v5018_v25 = vpop.eup %5017  ;;  %v1378_v26 = vadd.f32 1e-05, %v1373_v22 }
 0x53f   : > { %v5464_v27 = vadd.f32 %v4045_v23, %v1395_v24  ;;  %v1385_v28 = vmul.f32 %v5018_v25, %v1345_v43  ;;  %v1527_v24 = vld [vmem:[%s781_s3] sm:$0x1]  ;;  %s5176_s3 = smov 104  }
 0x540   : > { %5023 = vrsqrt.f32 %v1378_v26  ;;  %vm1663_vm12 = vcmp.gt.f32.partialorder %v1527_v24, 0.5 }
 0x541   : > { %4410 = vmatmul.mubr.msk.f32.vlgmr.msra.gmra.mrb[10].mxu1 %vm1321_vm8, %v5464_v27  ;;  %v1396_v29 = vmul.f32 %v4044_v18, %v1385_v28  ;;  %v5170_v28 = vmov 0  }
 0x542   : > { %v5020_v30 = vpop.eup %5019  ;;  %4412 = vmatprep.mubr.msk.f32.mxu1 %vm5164_vm1, %v5165_v6 }
 0x543   : > { %v5470_v31 = vadd.f32 %v4045_v23, %v1396_v29  ;;  %v1386_v32 = vmul.f32 %v5020_v30, %v1346_v48  ;;  %v1664_v29 = vsel %vm1663_vm12, 1, %v5170_v28 }
 0x545   : > { %4413 = vmatmul.mubr.msk.f32.gmra.mrb[12].mxu1 %vm1321_vm8, %v5470_v31  ;;  %v1397_v33 = vmul.f32 %v4044_v18, %v1386_v32 }
 0x546   : > { %v5022_v34 = vpop.eup %5021  ;;  %4415 = vmatprep.mubr.msk.f32.mxu1 %vm5164_vm1, %v5165_v6 }
 0x547   : > { %v5476_v35 = vadd.f32 %v4045_v23, %v1397_v33  ;;  %v1387_v36 = vmul.f32 %v5022_v34, %v1347_v53 }
 0x549   : > { %4416 = vmatmul.mubr.msk.f32.gmra.mrb[14].mxu1 %vm1321_vm8, %v5476_v35  ;;  %v1398_v37 = vmul.f32 %v4044_v18, %v1387_v36 }
 0x54a   : > { %v5024_v38 = vpop.eup %5023  ;;  %4418 = vmatprep.mubr.msk.f32.mxu1 %vm5164_vm1, %v5165_v6 }
 0x54b   : > { %v5482_v39 = vadd.f32 %v4045_v23, %v1398_v37  ;;  %v1388_v40 = vmul.f32 %v5024_v38, %v1348_v58 }
 0x54d   : > { %4419 = vmatmul.mubr.msk.f32.gmra.mrb[16].mxu1 %vm1321_vm8, %v5482_v39  ;;  %v1399_v41 = vmul.f32 %v4044_v18, %v1388_v40 }
 0x54e   : > { %4421 = vmatprep.mubr.msk.f32.mxu1 %vm5164_vm1, %v5165_v6 }
 0x54f   : > { %v5488_v42 = vadd.f32 %v4045_v23, %v1399_v41  ;;  %v1665_v23 = vlaneseq }
 0x551   : > { %4422 = vmatmul.mubr.msk.f32.gmra.mrb[18].mxu1 %vm1321_vm8, %v5488_v42  ;;  %v1666_v25 = vshrl.u32 %v1665_v23, 7 }
 0x552   : > { %4459 = vmatprep.mubr.msk.f32.mxu1 %vm5164_vm1, %v5165_v6 }
 0x553   : > { %v1667_v26 = vsub.s32 0, %v1666_v25 }
 0x555   : > { %v5587_v30 = vrot.slane %v1664_v29, %v1667_v26 }
 0x557   : > { %vm1669_vm13 = vcmp.eq.s32.totalorder %v5587_v30, 1 }
 0x614   : > { %v1503_v43 = vpop.f32.mrb[10].mxu1 }
 0x615   : > { %v4411_v44 = vpop.f32.mrb[11].mxu1  ;;  %v5497_v47 = vadd.f32 %v4046_v45, %v1503_v43 }
 0x618   : > { %v1508_v46 = vpop.f32.mrb[12].mxu1 }
 0x619   : > { %v5499_v48 = vadd.f32 %v4046_v45, %v1508_v46  ;;  %v4414_v49 = vpop.f32.mrb[13].mxu1 }
 0x61b   : > { %v5503_v50 = vpack.i.bf16 %v5499_v48, %v5497_v47 }
 0x61c   : > { %v1513_v51 = vpop.f32.mrb[14].mxu1 }
 0x61d   : > { %4906 = vrot.lane.b32.xlu0 %v5503_v50, %s5167_s4  ;;  %v4417_v52 = vpop.f32.mrb[15].mxu1  ;;  %v5506_v54 = vadd.f32 %v4046_v45, %v1513_v51 }
 0x620   : > { %v1518_v53 = vpop.f32.mrb[16].mxu1 }
 0x621   : > { %v5508_v55 = vadd.f32 %v4046_v45, %v1518_v53  ;;  %v4420_v56 = vpop.f32.mrb[17].mxu1 }
 0x623   : > { %v5512_v57 = vpack.i.bf16 %v5508_v55, %v5506_v54 }
 0x624   : > { %v1523_v58 = vpop.f32.mrb[18].mxu1 }
 0x625   : > { %4921 = vrot.lane.b32.xlu0 %v5512_v57, %s5168_s9  ;;  %4911 = vrot.lane.b32.xlu1 %v5512_v57, %s5167_s4  ;;  %v4423_v59 = vpop.f32.mrb[19].mxu1  ;;  %v5516_v60 = vadd.f32 %v4046_v45, %v1523_v58 }
 0x629   : > { %1859 = vrot.lane.b32.xlu0 %v5497_v47, %s5169_s5  ;;  %1545 = vrot.lane.b32.xlu1 %v5516_v60, %s5167_s4  ;;  %s5174_s4 = smov 112  }
 0x62d   : > { %1863 = vrot.lane.b32.xlu0 %v5506_v54, %s5169_s5  ;;  %4916 = vrot.lane.b32.xlu1 %v5503_v50, %s5168_s9 }
 0x631   : > { %1867 = vrot.lane.b32.xlu0 %v5516_v60, %s5169_s5  ;;  %1877 = vrot.lane.b32.xlu1 %v5516_v60, %s5168_s9 }
 0x635   : > { %1861 = vrot.lane.b32.xlu1 %v5499_v48, %s5169_s5 }
 0x639   : > { %1865 = vrot.lane.b32.xlu1 %v5508_v55, %s5169_s5 }
 0x68f   : > { %v4907_v61 = vpop.permute.xlu0 %4906 }
 0x690   : > { %v4909_v62 = vunpack.i.h.bf16 %v4907_v61  ;;  %v4908_v63 = vunpack.i.l.bf16 %v4907_v61 }
 0x692   : > { %v4795_v1 = vpack.c.bf16 %v4909_v62, %v4908_v63 }
 0x694   : > { %4797 = vmatpush3.bf16.xpose.msk.msra.mxu0 %vm5528_vm11, %v4795_v1 }
 0x695   : > { %4798 = vmatprep.subr.bf16.mxu0 %v5163_v3 }
 0x697   : > { %v4912_v2 = vpop.permute.xlu1 %4911  ;;  %v4922_v13 = vpop.permute.xlu0 %4921 }
 0x698   : > { %v4914_v4 = vunpack.i.h.bf16 %v4912_v2  ;;  %v4913_v5 = vunpack.i.l.bf16 %v4912_v2  ;;  %v4924_v14 = vunpack.i.h.bf16 %v4922_v13  ;;  %v4923_v15 = vunpack.i.l.bf16 %v4922_v13 }
 0x69a   : > { %v4799_v7 = vpack.c.bf16 %v4914_v4, %v4913_v5  ;;  %v4813_v16 = vpack.c.bf16 %v4924_v14, %v4923_v15 }
 0x69b   : > { %v1546_v8 = vpop.permute.xlu1 %1545  ;;  %v1860_v18 = vpop.permute.xlu0 %1859 }
 0x69c   : > { %4801 = vmatpush3.bf16.xpose.msk.msra.mxu0 %vm5528_vm11, %v4799_v7 }
 0x69d   : > { %4432 = vmatprep.subr.mxu0 %v5165_v6 }
 0x69f   : > { %v4917_v9 = vpop.permute.xlu1 %4916  ;;  %v1864_v20 = vpop.permute.xlu0 %1863 }
 0x6a0   : > { %v4919_v10 = vunpack.i.h.bf16 %v4917_v9  ;;  %v4918_v11 = vunpack.i.l.bf16 %v4917_v9 }
 0x6a2   : > { %v4809_v12 = vpack.c.bf16 %v4919_v10, %v4918_v11 }
 0x6a3   : > { %v1878_v17 = vpop.permute.xlu1 %1877  ;;  %v1868_v22 = vpop.permute.xlu0 %1867 }
 0x6a4   : > { %4433 = vmatpush3.xpose.msk.msra.mxu0 %vm1547_vm10, %v1546_v8 }
 0x6a5   : > { %4808 = vmatprep.subr.bf16.mxu0 %v5163_v3 }
 0x6a7   : > { %4435 = vmatmul.mubr.msk.f32.vlgmr.msra.gmra.mrb[20].mxu0 %vm1547_vm10, %v5497_v47  ;;  %v1862_v19 = vpop.permute.xlu1 %1861 }
 0x6a8   : > { %4811 = vmatpush3.bf16.xpose.msk.msra.mxu0 %vm5528_vm11, %v4809_v12  ;;  %4437 = vmatprep.mubr.msk.f32.mxu0 %vm5164_vm1, %v5165_v6 }
 0x6a9   : > { %4812 = vmatprep.subr.bf16.mxu0 %v5163_v3 }
 0x6ab   : > { %4438 = vmatmul.mubr.msk.f32.gmra.mrb[22].mxu0 %vm1547_vm10, %v5499_v48  ;;  %v1866_v21 = vpop.permute.xlu1 %1865 }
 0x6ac   : > { %4440 = vmatprep.mubr.msk.f32.mxu0 %vm5164_vm1, %v5165_v6 }
 0x6af   : > { %4441 = vmatmul.mubr.msk.f32.gmra.mrb[24].mxu0 %vm1547_vm10, %v5506_v54 }
 0x6b0   : > { %4815 = vmatpush3.bf16.xpose.msk.msra.mxu0 %vm5528_vm11, %v4813_v16  ;;  %4443 = vmatprep.mubr.msk.f32.mxu0 %vm5164_vm1, %v5165_v6 }
 0x6b1   : > { %4482 = vmatprep.subr.mxu0 %v5165_v6 }
 0x6b3   : > { %4444 = vmatmul.mubr.msk.f32.gmra.mrb[26].mxu0 %vm1547_vm10, %v5508_v55 }
 0x6b4   : > { %4446 = vmatprep.mubr.msk.f32.mxu0 %vm5164_vm1, %v5165_v6 }
 0x6b7   : > { %4447 = vmatmul.mubr.msk.f32.gmra.mrb[28].mxu0 %vm1547_vm10, %v5516_v60 }
 0x6b8   : > { %4483 = vmatpush3.xpose.msk.msra.mxu0 %vm1547_vm10, %v1878_v17  ;;  %4484 = vmatprep.mubr.msk.f32.mxu0 %vm5164_vm1, %v5165_v6 }
 0x6b9   : > { %4524 = vmatprep.subr.mxu0 %v5165_v6 }
 0x6bb   : > { %4485 = vmatmul.mubr.msk.f32.vlgmr.msra.gmra.mrb[30].mxu0 %vm1547_vm10, %v1860_v18 }
 0x6bc   : > { %4487 = vmatprep.mubr.msk.f32.mxu0 %vm5164_vm1, %v5165_v6 }
 0x6bf   : > { %4488 = vmatmul.mubr.msk.f32.gmra.mrb[32].mxu0 %vm1547_vm10, %v1862_v19 }
 0x6c0   : > { %4490 = vmatprep.mubr.msk.f32.mxu0 %vm5164_vm1, %v5165_v6 }
 0x6c3   : > { %4491 = vmatmul.mubr.msk.f32.gmra.mrb[34].mxu0 %vm1547_vm10, %v1864_v20 }
 0x6c4   : > { %4493 = vmatprep.mubr.msk.f32.mxu0 %vm5164_vm1, %v5165_v6 }
 0x6c7   : > { %4494 = vmatmul.mubr.msk.f32.gmra.mrb[36].mxu0 %vm1547_vm10, %v1866_v21 }
 0x6c8   : > { %4496 = vmatprep.mubr.msk.f32.mxu0 %vm5164_vm1, %v5165_v6 }
 0x6cb   : > { %4497 = vmatmul.mubr.msk.f32.gmra.mrb[38].mxu0 %vm1547_vm10, %v1868_v22 }
 0x6cc   : > { %4526 = vmatprep.mubr.msk.f32.mxu0 %vm5164_vm1, %v5165_v6 }
 0x77a   : > { %v1634_v32 = vpop.f32.mrb[20].mxu0 }
 0x77b   : > { %v1658_v33 = vmul.f32 0.35355338, %v1634_v32  ;;  %v4436_v34 = vpop.f32.mrb[21].mxu0 }
 0x77d   : > { %v5592_v36 = vsel %vm1669_vm13, %v1658_v33, -1e+30 }
 0x77e   : > { %v1639_v37 = vpop.f32.mrb[22].mxu0  ;;  %v1676_v38 = vsel %vm1675_vm14, %v5592_v36, -inf }
 0x77f   : > { %v1659_v40 = vmul.f32 0.35355338, %v1639_v37  ;;  %1677 = vmax.xlane.f32.xlu1 %v1676_v38  ;;  %v4439_v41 = vpop.f32.mrb[23].mxu0 }
 0x781   : > { %v5598_v43 = vsel %vm1669_vm13, %v1659_v40, -1e+30 }
 0x782   : > { %v1644_v44 = vpop.f32.mrb[24].mxu0  ;;  %v1679_v45 = vsel %vm1675_vm14, %v5598_v43, -inf }
 0x783   : > { %v1660_v46 = vmul.f32 0.35355338, %v1644_v44  ;;  %1680 = vmax.xlane.f32.xlu0 %v1679_v45  ;;  %v4442_v49 = vpop.f32.mrb[25].mxu0 }
 0x785   : > { %v1672_v51 = vsel %vm1669_vm13, %v1660_v46, -1e+30 }
 0x786   : > { %v1649_v52 = vpop.f32.mrb[26].mxu0  ;;  %v1682_v53 = vsel %vm1675_vm14, %v1672_v51, -inf }
 0x787   : > { %v1661_v56 = vmul.f32 0.35355338, %v1649_v52  ;;  %1683 = vmax.xlane.f32.xlu0 %v1682_v53  ;;  %v4445_v58 = vpop.f32.mrb[27].mxu0 }
 0x789   : > { %v1673_v59 = vsel %vm1669_vm13, %v1661_v56, -1e+30 }
 0x78a   : > { %v1654_v61 = vpop.f32.mrb[28].mxu0  ;;  %v1685_v62 = vsel %vm1675_vm14, %v1673_v59, -inf }
 0x78b   : > { %v1662_v63 = vmul.f32 0.35355338, %v1654_v61  ;;  %1686 = vmax.xlane.f32.xlu0 %v1685_v62  ;;  %v4448_v1 = vpop.f32.mrb[29].mxu0 }
 0x78d   : > { %v1674_v2 = vsel %vm1669_vm13, %v1662_v63, -1e+30 }
 0x78e   : > { %v1965_v4 = vpop.f32.mrb[30].mxu0  ;;  %v1689_v5 = vsel %vm1688_vm15, %v1674_v2, -inf }
 0x78f   : > { %v1989_v7 = vmul.f32 0.35355338, %v1965_v4  ;;  %1690 = vmax.xlane.f32.xlu1 %v1689_v5  ;;  %v4486_v8 = vpop.f32.mrb[31].mxu0 }
 0x791   : > { %v5613_v9 = vsel %vm1669_vm13, %v1989_v7, -1e+30 }
 0x792   : > { %v1970_v10 = vpop.f32.mrb[32].mxu0  ;;  %v1999_v11 = vsel %vm1675_vm14, %v5613_v9, -inf }
 0x793   : > { %v1990_v12 = vmul.f32 0.35355338, %v1970_v10  ;;  %2000 = vmax.xlane.f32.xlu0 %v1999_v11  ;;  %v4489_v13 = vpop.f32.mrb[33].mxu0 }
 0x795   : > { %v5619_v14 = vsel %vm1669_vm13, %v1990_v12, -1e+30 }
 0x796   : > { %v1975_v15 = vpop.f32.mrb[34].mxu0  ;;  %v2002_v16 = vsel %vm1675_vm14, %v5619_v14, -inf }
 0x797   : > { %v1991_v17 = vmul.f32 0.35355338, %v1975_v15  ;;  %2003 = vmax.xlane.f32.xlu1 %v2002_v16  ;;  %v4492_v18 = vpop.f32.mrb[35].mxu0 }
 0x799   : > { %v5625_v19 = vsel %vm1669_vm13, %v1991_v17, -1e+30 }
 0x79a   : > { %v1980_v20 = vpop.f32.mrb[36].mxu0  ;;  %v2005_v21 = vsel %vm1675_vm14, %v5625_v19, -inf }
 0x79b   : > { %v1992_v22 = vmul.f32 0.35355338, %v1980_v20  ;;  %2006 = vmax.xlane.f32.xlu0 %v2005_v21  ;;  %v4495_v23 = vpop.f32.mrb[37].mxu0 }
 0x79d   : > { %v5631_v24 = vsel %vm1669_vm13, %v1992_v22, -1e+30 }
 0x79e   : > { %v1985_v25 = vpop.f32.mrb[38].mxu0  ;;  %v2008_v26 = vsel %vm1675_vm14, %v5631_v24, -inf }
 0x79f   : > { %v1993_v28 = vmul.f32 0.35355338, %v1985_v25  ;;  %2009 = vmax.xlane.f32.xlu1 %v2008_v26  ;;  %v4498_v29 = vpop.f32.mrb[39].mxu0 }
 0x7a1   : > { %v5637_v32 = vsel %vm1669_vm13, %v1993_v28, -1e+30 }
 0x7a2   : > { %v2011_v33 = vsel %vm1688_vm15, %v5637_v32, -inf }
 0x7a3   : > { %2012 = vmax.xlane.f32.xlu0 %v2011_v33 }
 0x7b0   : > { %4931 = vrot.lane.b32.xlu1 %v5512_v57, %s5171_s2 }
 0x7b9   : > { %4926 = vrot.lane.b32.xlu0 %v5503_v50, %s5171_s2 }
 0x7bd   : > { %1745 = vrot.lane.b32.xlu0 %v5516_v60, %s5171_s2  ;;  %s5177_s2 = smov 72  }
 0x80c   : > { %v1678_v34 = vpop.xlane.xlu1 %1677 }
 0x80d   : > { %v1692_v37 = vmax.f32 %v1678_v34, -1e+30 }
 0x80f   : > { %v1697_v38 = vsub.f32 %v5592_v36, %v1692_v37 }
 0x810   : > { %v1681_v40 = vpop.xlane.xlu0 %1680 }
 0x811   : > { %v1702_v41 = vmul.f32 1.442695, %v1697_v38  ;;  %v1693_v44 = vmax.f32 %v1681_v40, -1e+30 }
 0x813   : > { %5025 = vpow2.f32 %v1702_v41  ;;  %v1698_v45 = vsub.f32 %v5598_v43, %v1693_v44 }
 0x814   : > { %v1684_v46 = vpop.xlane.xlu0 %1683 }
 0x815   : > { %v1704_v49 = vmul.f32 1.442695, %v1698_v45  ;;  %v1694_v52 = vmax.f32 %v1684_v46, -1e+30 }
 0x817   : > { %5027 = vpow2.f32 %v1704_v49  ;;  %v1699_v53 = vsub.f32 %v1672_v51, %v1694_v52 }
 0x818   : > { %v1687_v56 = vpop.xlane.xlu0 %1686 }
 0x819   : > { %v1706_v58 = vmul.f32 1.442695, %v1699_v53  ;;  %v1695_v61 = vmax.f32 %v1687_v56, -1e+30 }
 0x81b   : > { %5029 = vpow2.f32 %v1706_v58  ;;  %v1700_v62 = vsub.f32 %v1673_v59, %v1695_v61 }
 0x81c   : > { %v1691_v63 = vpop.xlane.xlu1 %1690 }
 0x81d   : > { %v5646_v1 = vpop.eup %5025  ;;  %v1708_v36 = vmul.f32 1.442695, %v1700_v62  ;;  %v1696_v4 = vmax.f32 %v1691_v63, -1e+30 }
 0x81e   : > { %v1712_v5 = vsel %vm1675_vm14, %v5646_v1, 0.0 }
 0x81f   : > { %5031 = vpow2.f32 %v1708_v36  ;;  %v1701_v43 = vsub.f32 %v1674_v2, %v1696_v4  ;;  %1713 = vadd.xlane.f32.xlu1 %v1712_v5 }
 0x820   : > { %v2001_v7 = vpop.xlane.xlu0 %2000 }
 0x821   : > { %v5650_v8 = vpop.eup %5027  ;;  %v1710_v51 = vmul.f32 1.442695, %v1701_v43  ;;  %v2014_v10 = vmax.f32 %v2001_v7, -1e+30 }
 0x822   : > { %v1715_v11 = vsel %vm1675_vm14, %v5650_v8, 0.0 }
 0x823   : > { %5033 = vpow2.f32 %v1710_v51  ;;  %v2019_v59 = vsub.f32 %v5613_v9, %v2014_v10  ;;  %1716 = vadd.xlane.f32.xlu0 %v1715_v11 }
 0x824   : > { %v2004_v12 = vpop.xlane.xlu1 %2003 }
 0x825   : > { %v5655_v13 = vpop.eup %5029  ;;  %v2024_v15 = vmul.f32 1.442695, %v2019_v59  ;;  %v2015_v16 = vmax.f32 %v2004_v12, -1e+30 }
 0x826   : > { %v1718_v2 = vsel %vm1675_vm14, %v5655_v13, 0.0 }
 0x827   : > { %5035 = vpow2.f32 %v2024_v15  ;;  %v2020_v17 = vsub.f32 %v5619_v14, %v2015_v16  ;;  %1719 = vadd.xlane.f32.xlu1 %v1718_v2 }
 0x828   : > { %v2007_v18 = vpop.xlane.xlu0 %2006 }
 0x829   : > { %v5660_v20 = vpop.eup %5031  ;;  %v2026_v21 = vmul.f32 1.442695, %v2020_v17  ;;  %v2016_v22 = vmax.f32 %v2007_v18, -1e+30 }
 0x82a   : > { %v1721_v9 = vsel %vm1675_vm14, %v5660_v20, 0.0 }
 0x82b   : > { %5037 = vpow2.f32 %v2026_v21  ;;  %v2021_v23 = vsub.f32 %v5625_v19, %v2016_v22  ;;  %1722 = vadd.xlane.f32.xlu0 %v1721_v9 }
 0x82c   : > { %v2010_v25 = vpop.xlane.xlu1 %2009 }
 0x82d   : > { %v5665_v26 = vpop.eup %5033  ;;  %v2028_v28 = vmul.f32 1.442695, %v2021_v23  ;;  %v2017_v29 = vmax.f32 %v2010_v25, -1e+30 }
 0x82e   : > { %v1724_v14 = vsel %vm1688_vm15, %v5665_v26, 0.0 }
 0x82f   : > { %5039 = vpow2.f32 %v2028_v28  ;;  %v2022_v33 = vsub.f32 %v5631_v24, %v2017_v29  ;;  %1725 = vadd.xlane.f32.xlu1 %v1724_v14 }
 0x830   : > { %v2013_v34 = vpop.xlane.xlu0 %2012  ;;  %v4932_v44 = vpop.permute.xlu1 %4931 }
 0x831   : > { %v5670_v37 = vpop.eup %5035  ;;  %v2030_v38 = vmul.f32 1.442695, %v2022_v33  ;;  %v2018_v40 = vmax.f32 %v2013_v34, -1e+30  ;;  %v4934_v56 = vunpack.i.h.bf16 %v4932_v44  ;;  %v4933_v58 = vunpack.i.l.bf16 %v4932_v44 }
 0x832   : > { %v2034_v19 = vsel %vm1675_vm14, %v5670_v37, 0.0 }
 0x833   : > { %5041 = vpow2.f32 %v2030_v38  ;;  %v2023_v41 = vsub.f32 %v5637_v32, %v2018_v40  ;;  %2035 = vadd.xlane.f32.xlu1 %v2034_v19  ;;  %v4806_v63 = vpack.c.bf16 %v4934_v56, %v4933_v58 }
 0x834   : > { %v4927_v45 = vpop.permute.xlu0 %4926 }
 0x835   : > { %v5675_v46 = vpop.eup %5037  ;;  %v2032_v49 = vmul.f32 1.442695, %v2023_v41  ;;  %v4929_v52 = vunpack.i.h.bf16 %v4927_v45  ;;  %v4928_v24 = vunpack.i.l.bf16 %v4927_v45 }
 0x836   : > { %v2037_v53 = vsel %vm1675_vm14, %v5675_v46, 0.0 }
 0x837   : > { %5043 = vpow2.f32 %v2032_v49  ;;  %v4803_v61 = vpack.c.bf16 %v4929_v52, %v4928_v24  ;;  %2038 = vadd.xlane.f32.xlu0 %v2037_v53 }
 0x838   : > { %v1746_v5 = vpop.permute.xlu0 %1745 }
 0x839   : > { %v5679_v62 = vpop.eup %5039  ;;  %4804 = vmatpush3.bf16.msra.mxu1 %v4803_v61  ;;  %v1528_v61 = vld [vmem:[%s6228_s12] sm:$0xff] }
 0x83a   : > { %v2040_v32 = vsel %vm1675_vm14, %v5679_v62, 0.0  ;;  %4805 = vmatprep.subr.bf16.mxu1 %v5163_v3 }
 0x83b   : > { %2041 = vadd.xlane.f32.xlu1 %v2040_v32 }
 0x83d   : > { %v5684_v36 = vpop.eup %5041  ;;  %4807 = vmatpush3.bf16.msra.mxu1 %v4806_v63 }
 0x83e   : > { %v2043_v4 = vsel %vm1675_vm14, %v5684_v36, 0.0  ;;  %4457 = vmatprep.subr.mxu1 %v5165_v6 }
 0x83f   : > { %2044 = vadd.xlane.f32.xlu1 %v2043_v4 }
 0x841   : > { %v5689_v43 = vpop.eup %5043  ;;  %4458 = vmatpush3.msk.msra.mxu1 %vm1766_vm0, %v1746_v5 }
 0x842   : > { %v2046_v7 = vsel %vm1688_vm15, %v5689_v43, 0.0  ;;  %4816 = vmatprep.subr.bf16.mxu1 %v5163_v3 }
 0x843   : > { %2047 = vadd.xlane.f32.xlu1 %v2046_v7 }
 0x84d   : > { %4941 = vrot.lane.b32.xlu0 %v5512_v57, %s5172_s1 }
 0x851   : > { %2067 = vrot.lane.b32.xlu0 %v5516_v60, %s5172_s1 }
 0x854   : > { %4936 = vrot.lane.b32.xlu1 %v5503_v50, %s5172_s1 }
 0x855   : > { %4951 = vrot.lane.b32.xlu0 %v5512_v57, %s5173_s8 }
 0x858   : > { %4946 = vrot.lane.b32.xlu1 %v5503_v50, %s5173_s8 }
 0x859   : > { %2390 = vrot.lane.b32.xlu0 %v5497_v47, %s5174_s4 }
 0x85c   : > { %2408 = vrot.lane.b32.xlu1 %v5516_v60, %s5173_s8 }
 0x85d   : > { %2394 = vrot.lane.b32.xlu0 %v5506_v54, %s5174_s4 }
 0x860   : > { %2392 = vrot.lane.b32.xlu1 %v5499_v48, %s5174_s4 }
 0x861   : > { %2398 = vrot.lane.b32.xlu0 %v5516_v60, %s5174_s4 }
 0x864   : > { %2396 = vrot.lane.b32.xlu1 %v5508_v55, %s5174_s4  ;;  %s5178_s4 = smov 40  }
 0x8ac   : > { %v1714_v51 = vpop.xlane.xlu1 %1713 }
 0x8ad   : > { %5045 = vrcp.f32 %v1714_v51 }
 0x8b0   : > { %v1717_v10 = vpop.xlane.xlu0 %1716 }
 0x8b1   : > { %5047 = vrcp.f32 %v1717_v10 }
 0x8b4   : > { %v1720_v11 = vpop.xlane.xlu1 %1719 }
 0x8b5   : > { %5049 = vrcp.f32 %v1720_v11 }
 0x8b7   : > { %v5046_v59 = vpop.eup %5045 }
 0x8b8   : > { %v1732_v12 = vmul.f32 %v5046_v59, %v5646_v1  ;;  %v1723_v15 = vpop.xlane.xlu0 %1722 }
 0x8b9   : > { %5051 = vrcp.f32 %v1723_v15 }
 0x8ba   : > { %4460 = vmatmul.mubr.msk.f32.vlgmr.msra.gmra.mrb[20].mxu1 %vm1675_vm14, %v1732_v12 }
 0x8bb   : > { %v5048_v16 = vpop.eup %5047  ;;  %4462 = vmatprep.mubr.msk.f32.mxu1 %vm5164_vm1, %v5165_v6 }
 0x8bc   : > { %v1726_v2 = vpop.xlane.xlu1 %1725  ;;  %v1733_v17 = vmul.f32 %v5048_v16, %v5650_v8 }
 0x8bd   : > { %5053 = vrcp.f32 %v1726_v2 }
 0x8be   : > { %4463 = vmatmul.mubr.msk.f32.gmra.mrb[22].mxu1 %vm1675_vm14, %v1733_v17 }
 0x8bf   : > { %v5050_v18 = vpop.eup %5049  ;;  %4465 = vmatprep.mubr.msk.f32.mxu1 %vm5164_vm1, %v5165_v6 }
 0x8c0   : > { %v1734_v1 = vmul.f32 %v5050_v18, %v5655_v13  ;;  %v2036_v22 = vpop.xlane.xlu1 %2035 }
 0x8c1   : > { %5055 = vrcp.f32 %v2036_v22 }
 0x8c2   : > { %4466 = vmatmul.mubr.msk.f32.gmra.mrb[24].mxu1 %vm1675_vm14, %v1734_v1 }
 0x8c3   : > { %v5052_v21 = vpop.eup %5051  ;;  %4468 = vmatprep.mubr.msk.f32.mxu1 %vm5164_vm1, %v5165_v6 }
 0x8c4   : > { %v1735_v9 = vmul.f32 %v5052_v21, %v5660_v20  ;;  %v2039_v28 = vpop.xlane.xlu0 %2038 }
 0x8c5   : > { %5057 = vrcp.f32 %v2039_v28 }
 0x8c6   : > { %4469 = vmatmul.mubr.msk.f32.gmra.mrb[26].mxu1 %vm1675_vm14, %v1735_v9 }
 0x8c7   : > { %v5054_v8 = vpop.eup %5053  ;;  %4471 = vmatprep.mubr.msk.f32.mxu1 %vm5164_vm1, %v5165_v6 }
 0x8c8   : > { %v2042_v23 = vpop.xlane.xlu1 %2041  ;;  %v1736_v25 = vmul.f32 %v5054_v8, %v5665_v26  ;;  %v4942_v14 = vpop.permute.xlu0 %4941 }
 0x8c9   : > { %v4944_v38 = vunpack.i.h.bf16 %v4942_v14  ;;  %v4943_v40 = vunpack.i.l.bf16 %v4942_v14  ;;  %5059 = vrcp.f32 %v2042_v23 }
 0x8ca   : > { %4472 = vmatmul.mubr.msk.f32.gmra.mrb[28].mxu1 %vm1675_vm14, %v1736_v25 }
 0x8cb   : > { %4509 = vmatprep.mubr.msk.f32.mxu1 %vm5164_vm1, %v5165_v6  ;;  %v4820_v26 = vpack.c.bf16 %v4944_v38, %v4943_v40  ;;  %v5056_v41 = vpop.eup %5055 }
 0x8cc   : > { %v2045_v13 = vpop.xlane.xlu1 %2044  ;;  %v2054_v44 = vmul.f32 %v5056_v41, %v5670_v37  ;;  %v2068_v45 = vpop.permute.xlu0 %2067 }
 0x8cd   : > { %5061 = vrcp.f32 %v2045_v13 }
 0x8cf   : > { %v5058_v49 = vpop.eup %5057 }
 0x8d0   : > { %v2048_v29 = vpop.xlane.xlu1 %2047  ;;  %v2055_v52 = vmul.f32 %v5058_v49, %v5675_v46  ;;  %v4952_v17 = vpop.permute.xlu0 %4951 }
 0x8d1   : > { %5063 = vrcp.f32 %v2048_v29  ;;  %v4954_v1 = vunpack.i.h.bf16 %v4952_v17  ;;  %v4953_v21 = vunpack.i.l.bf16 %v4952_v17 }
 0x8d3   : > { %v5060_v24 = vpop.eup %5059  ;;  %v4827_v8 = vpack.c.bf16 %v4954_v1, %v4953_v21 }
 0x8d4   : > { %v4937_v20 = vpop.permute.xlu1 %4936  ;;  %v2056_v37 = vmul.f32 %v5060_v24, %v5679_v62  ;;  %v1529_v62 = vld [vmem:[%s6228_s12 + $0x8] sm:$0xff] }
 0x8d5   : > { %v4939_v33 = vunpack.i.h.bf16 %v4937_v20  ;;  %v4938_v34 = vunpack.i.l.bf16 %v4937_v20  ;;  %4525 = vmatpush3.msra.mxu0 %v1529_v62 }
 0x8d6   : > { %4822 = vmatprep.subr.bf16.mxu0 %v5163_v3 }
 0x8d7   : > { %v4817_v19 = vpack.c.bf16 %v4939_v33, %v4938_v34  ;;  %v5062_v53 = vpop.eup %5061  ;;  %v2391_v33 = vpop.permute.xlu0 %2390 }
 0x8d8   : > { %v2057_v56 = vmul.f32 %v5062_v53, %v5684_v36  ;;  %v4947_v59 = vpop.permute.xlu1 %4946 }
 0x8d9   : > { %4818 = vmatpush3.bf16.msra.mxu1 %v4817_v19  ;;  %v4949_v12 = vunpack.i.h.bf16 %v4947_v59  ;;  %v4948_v15 = vunpack.i.l.bf16 %v4947_v59 }
 0x8da   : > { %4819 = vmatprep.subr.bf16.mxu1 %v5163_v3 }
 0x8db   : > { %v5064_v58 = vpop.eup %5063  ;;  %v4823_v16 = vpack.c.bf16 %v4949_v12, %v4948_v15  ;;  %v2395_v38 = vpop.permute.xlu0 %2394 }
 0x8dc   : > { %v2058_v46 = vmul.f32 %v5064_v58, %v5689_v43  ;;  %v2409_v14 = vpop.permute.xlu1 %2408 }
 0x8dd   : > { %4821 = vmatpush3.bf16.msra.mxu1 %v4820_v26 }
 0x8de   : > { %4507 = vmatprep.subr.mxu1 %v5165_v6 }
 0x8df   : > { %v2399_v19 = vpop.permute.xlu0 %2398 }
 0x8e0   : > { %v2393_v34 = vpop.permute.xlu1 %2392 }
 0x8e1   : > { %4508 = vmatpush3.msk.msra.mxu1 %vm1766_vm0, %v2068_v45 }
 0x8e2   : > { %4510 = vmatmul.mubr.msk.f32.vlgmr.msra.gmra.mrb[30].mxu1 %vm1675_vm14, %v2054_v44  ;;  %4541 = vmatprep.subr.mxu1 %v5165_v6 }
 0x8e3   : > { %4512 = vmatprep.mubr.msk.f32.mxu1 %vm5164_vm1, %v5165_v6  ;;  %4542 = vmatpush3.msra.mxu1 %v1528_v61 }
 0x8e4   : > { %4830 = vmatprep.subr.bf16.mxu1 %v5163_v3  ;;  %v2397_v40 = vpop.permute.xlu1 %2396 }
 0x8e6   : > { %4513 = vmatmul.mubr.msk.f32.gmra.mrb[32].mxu1 %vm1675_vm14, %v2055_v52 }
 0x8e7   : > { %4515 = vmatprep.mubr.msk.f32.mxu1 %vm5164_vm1, %v5165_v6 }
 0x8ea   : > { %4516 = vmatmul.mubr.msk.f32.gmra.mrb[34].mxu1 %vm1675_vm14, %v2056_v37 }
 0x8eb   : > { %4518 = vmatprep.mubr.msk.f32.mxu1 %vm5164_vm1, %v5165_v6 }
 0x8ee   : > { %4519 = vmatmul.mubr.msk.f32.gmra.mrb[36].mxu1 %vm1675_vm14, %v2057_v56 }
 0x8ef   : > { %4521 = vmatprep.mubr.msk.f32.mxu1 %vm5164_vm1, %v5165_v6 }
 0x8f2   : > { %4522 = vmatmul.mubr.msk.f32.gmra.mrb[38].mxu1 %vm1675_vm14, %v2058_v46 }
 0x8f3   : > { %4543 = vmatprep.mubr.msk.f32.mxu1 %vm5164_vm1, %v5165_v6 }
 0x98d   : > { %v1835_v32 = vpop.f32.mrb[20].mxu1 }
 0x98e   : > { %v4461_v63 = vpop.f32.mrb[21].mxu1  ;;  %4544 = vmatmul.mubr.msk.f32.vlgmr.msra.gmra.mrb[40].mxu1 %vm1547_vm10, %v1835_v32 }
 0x98f   : > { %4546 = vmatprep.mubr.msk.f32.mxu1 %vm5164_vm1, %v5165_v6 }
 0x991   : > { %v1840_v36 = vpop.f32.mrb[22].mxu1 }
 0x992   : > { %v4464_v4 = vpop.f32.mrb[23].mxu1  ;;  %4547 = vmatmul.mubr.msk.f32.gmra.mrb[42].mxu1 %vm1547_vm10, %v1840_v36 }
 0x993   : > { %4549 = vmatprep.mubr.msk.f32.mxu1 %vm5164_vm1, %v5165_v6 }
 0x995   : > { %v1845_v5 = vpop.f32.mrb[24].mxu1 }
 0x996   : > { %v4467_v43 = vpop.f32.mrb[25].mxu1  ;;  %4550 = vmatmul.mubr.msk.f32.gmra.mrb[44].mxu1 %vm1547_vm10, %v1845_v5 }
 0x997   : > { %4552 = vmatprep.mubr.msk.f32.mxu1 %vm5164_vm1, %v5165_v6 }
 0x999   : > { %v1850_v7 = vpop.f32.mrb[26].mxu1 }
 0x99a   : > { %v4470_v51 = vpop.f32.mrb[27].mxu1  ;;  %4553 = vmatmul.mubr.msk.f32.gmra.mrb[46].mxu1 %vm1547_vm10, %v1850_v7 }
 0x99b   : > { %4555 = vmatprep.mubr.msk.f32.mxu1 %vm5164_vm1, %v5165_v6 }
 0x99d   : > { %v1855_v10 = vpop.f32.mrb[28].mxu1 }
 0x99e   : > { %v4473_v11 = vpop.f32.mrb[29].mxu1  ;;  %4556 = vmatmul.mubr.msk.f32.gmra.mrb[48].mxu1 %vm1547_vm10, %v1855_v10 }
 0x99f   : > { %4593 = vmatprep.mubr.msk.f32.mxu1 %vm5164_vm1, %v5165_v6 }
 0x9b5   : > { %v2156_v2 = vpop.f32.mrb[30].mxu1 }
 0x9b6   : > { %v4511_v18 = vpop.f32.mrb[31].mxu1  ;;  %4527 = vmatmul.mubr.msk.f32.vlgmr.msra.gmra.mrb[40].mxu0 %vm1547_vm10, %v2156_v2 }
 0x9b7   : > { %4825 = vmatpush3.bf16.xpose.msk.msra.mxu0 %vm5528_vm11, %v4823_v16  ;;  %4529 = vmatprep.mubr.msk.f32.mxu0 %vm5164_vm1, %v5165_v6 }
 0x9b8   : > { %4826 = vmatprep.subr.bf16.mxu0 %v5163_v3 }
 0x9b9   : > { %v2161_v22 = vpop.f32.mrb[32].mxu1 }
 0x9ba   : > { %v4514_v9 = vpop.f32.mrb[33].mxu1  ;;  %4530 = vmatmul.mubr.msk.f32.gmra.mrb[42].mxu0 %vm1547_vm10, %v2161_v22 }
 0x9bb   : > { %4532 = vmatprep.mubr.msk.f32.mxu0 %vm5164_vm1, %v5165_v6 }
 0x9bd   : > { %v2166_v23 = vpop.f32.mrb[34].mxu1 }
 0x9be   : > { %v4517_v25 = vpop.f32.mrb[35].mxu1  ;;  %4533 = vmatmul.mubr.msk.f32.gmra.mrb[44].mxu0 %vm1547_vm10, %v2166_v23 }
 0x9bf   : > { %4829 = vmatpush3.bf16.xpose.msk.msra.mxu0 %vm5528_vm11, %v4827_v8  ;;  %4535 = vmatprep.mubr.msk.f32.mxu0 %vm5164_vm1, %v5165_v6 }
 0x9c0   : > { %4566 = vmatprep.subr.mxu0 %v5165_v6 }
 0x9c1   : > { %v2171_v13 = vpop.f32.mrb[36].mxu1 }
 0x9c2   : > { %v4520_v28 = vpop.f32.mrb[37].mxu1  ;;  %4536 = vmatmul.mubr.msk.f32.gmra.mrb[46].mxu0 %vm1547_vm10, %v2171_v13 }
 0x9c3   : > { %4538 = vmatprep.mubr.msk.f32.mxu0 %vm5164_vm1, %v5165_v6 }
 0x9c5   : > { %v2176_v29 = vpop.f32.mrb[38].mxu1 }
 0x9c6   : > { %v4523_v20 = vpop.f32.mrb[39].mxu1  ;;  %4539 = vmatmul.mubr.msk.f32.gmra.mrb[48].mxu0 %vm1547_vm10, %v2176_v29 }
 0x9c7   : > { %4567 = vmatpush3.xpose.msk.msra.mxu0 %vm1547_vm10, %v2409_v14  ;;  %4568 = vmatprep.mubr.msk.f32.mxu0 %vm5164_vm1, %v5165_v6 }
 0x9c8   : > { %4608 = vmatprep.subr.mxu0 %v5165_v6 }
 0x9ca   : > { %4569 = vmatmul.mubr.msk.f32.vlgmr.msra.gmra.mrb[50].mxu0 %vm1547_vm10, %v2391_v33 }
 0x9cb   : > { %4571 = vmatprep.mubr.msk.f32.mxu0 %vm5164_vm1, %v5165_v6 }
 0x9ce   : > { %4572 = vmatmul.mubr.msk.f32.gmra.mrb[52].mxu0 %vm1547_vm10, %v2393_v34 }
 0x9cf   : > { %4574 = vmatprep.mubr.msk.f32.mxu0 %vm5164_vm1, %v5165_v6 }
 0x9d2   : > { %4575 = vmatmul.mubr.msk.f32.gmra.mrb[54].mxu0 %vm1547_vm10, %v2395_v38 }
 0x9d3   : > { %4577 = vmatprep.mubr.msk.f32.mxu0 %vm5164_vm1, %v5165_v6 }
 0x9d6   : > { %4578 = vmatmul.mubr.msk.f32.gmra.mrb[56].mxu0 %vm1547_vm10, %v2397_v40 }
 0x9d7   : > { %4580 = vmatprep.mubr.msk.f32.mxu0 %vm5164_vm1, %v5165_v6 }
 0x9da   : > { %4581 = vmatmul.mubr.msk.f32.gmra.mrb[58].mxu0 %vm1547_vm10, %v2399_v19 }
 0x9db   : > { %4610 = vmatprep.mubr.msk.f32.mxu0 %vm5164_vm1, %v5165_v6 }
 0xa61   : > { %v2366_v26 = vpop.f32.mrb[40].mxu1 }
 0xa62   : > { %v4545_v41 = vpop.f32.mrb[41].mxu1 }
 0xa65   : > { %v2371_v44 = vpop.f32.mrb[42].mxu1 }
 0xa66   : > { %v4548_v45 = vpop.f32.mrb[43].mxu1 }
 0xa69   : > { %v2376_v49 = vpop.f32.mrb[44].mxu1 }
 0xa6a   : > { %v4551_v52 = vpop.f32.mrb[45].mxu1 }
 0xa6d   : > { %v2381_v24 = vpop.f32.mrb[46].mxu1 }
 0xa6e   : > { %v4554_v37 = vpop.f32.mrb[47].mxu1 }
 0xa71   : > { %v2386_v53 = vpop.f32.mrb[48].mxu1 }
 0xa72   : > { %v4557_v56 = vpop.f32.mrb[49].mxu1 }
 0xa89   : > { %v2261_v58 = vpop.f32.mrb[40].mxu0 }
 0xa8a   : > { %v5811_v46 = vadd.f32 %v2366_v26, %v2261_v58  ;;  %v4528_v61 = vpop.f32.mrb[41].mxu0 }
 0xa8d   : > { %v2266_v62 = vpop.f32.mrb[42].mxu0 }
 0xa8e   : > { %v5813_v32 = vadd.f32 %v2371_v44, %v2266_v62  ;;  %v4531_v63 = vpop.f32.mrb[43].mxu0 }
 0xa91   : > { %v2271_v36 = vpop.f32.mrb[44].mxu0 }
 0xa92   : > { %v5815_v4 = vadd.f32 %v2376_v49, %v2271_v36  ;;  %v4534_v5 = vpop.f32.mrb[45].mxu0 }
 0xa95   : > { %v2276_v43 = vpop.f32.mrb[46].mxu0 }
 0xa96   : > { %v5817_v7 = vadd.f32 %v2381_v24, %v2276_v43  ;;  %v4537_v51 = vpop.f32.mrb[47].mxu0 }
 0xa99   : > { %v2281_v10 = vpop.f32.mrb[48].mxu0 }
 0xa9a   : > { %v5819_v11 = vadd.f32 %v2386_v53, %v2281_v10  ;;  %v4540_v59 = vpop.f32.mrb[49].mxu0 }
 0xa9d   : > { %v2496_v12 = vpop.f32.mrb[50].mxu0 }
 0xa9e   : > { %v2520_v15 = vmul.f32 0.35355338, %v2496_v12  ;;  %v4570_v16 = vpop.f32.mrb[51].mxu0 }
 0xaa0   : > { %v2525_v2 = vsel %vm1669_vm13, %v2520_v15, -1e+30 }
 0xaa1   : > { %v2501_v17 = vpop.f32.mrb[52].mxu0  ;;  %v2530_v18 = vsel %vm1675_vm14, %v2525_v2, -inf }
 0xaa2   : > { %v2521_v1 = vmul.f32 0.35355338, %v2501_v17  ;;  %2531 = vmax.xlane.f32.xlu1 %v2530_v18  ;;  %v4573_v21 = vpop.f32.mrb[53].mxu0 }
 0xaa4   : > { %v2526_v22 = vsel %vm1669_vm13, %v2521_v1, -1e+30 }
 0xaa5   : > { %v2506_v9 = vpop.f32.mrb[54].mxu0  ;;  %v2533_v8 = vsel %vm1675_vm14, %v2526_v22, -inf }
 0xaa6   : > { %v2522_v23 = vmul.f32 0.35355338, %v2506_v9  ;;  %2534 = vmax.xlane.f32.xlu0 %v2533_v8  ;;  %v4576_v25 = vpop.f32.mrb[55].mxu0 }
 0xaa8   : > { %v2527_v13 = vsel %vm1669_vm13, %v2522_v23, -1e+30 }
 0xaa9   : > { %v2511_v28 = vpop.f32.mrb[56].mxu0  ;;  %v2536_v29 = vsel %vm1675_vm14, %v2527_v13, -inf }
 0xaaa   : > { %v2523_v14 = vmul.f32 0.35355338, %v2511_v28  ;;  %2537 = vmax.xlane.f32.xlu0 %v2536_v29  ;;  %v4579_v20 = vpop.f32.mrb[57].mxu0 }
 0xaac   : > { %v2528_v33 = vsel %vm1669_vm13, %v2523_v14, -1e+30 }
 0xaad   : > { %v2516_v34 = vpop.f32.mrb[58].mxu0  ;;  %v2539_v38 = vsel %vm1675_vm14, %v2528_v33, -inf }
 0xaae   : > { %v2524_v40 = vmul.f32 0.35355338, %v2516_v34  ;;  %2540 = vmax.xlane.f32.xlu0 %v2539_v38  ;;  %v4582_v19 = vpop.f32.mrb[59].mxu0 }
 0xab0   : > { %v2529_v26 = vsel %vm1669_vm13, %v2524_v40, -1e+30 }
 0xab1   : > { %v2542_v41 = vsel %vm1688_vm15, %v2529_v26, -inf }
 0xab2   : > { %2543 = vmax.xlane.f32.xlu1 %v2542_v41 }
 0xb2f   : > { %v2532_v44 = vpop.xlane.xlu1 %2531 }
 0xb30   : > { %v2545_v45 = vmax.f32 %v2532_v44, -1e+30 }
 0xb32   : > { %v2550_v49 = vsub.f32 %v2525_v2, %v2545_v45 }
 0xb33   : > { %v2535_v52 = vpop.xlane.xlu0 %2534 }
 0xb34   : > { %v2555_v24 = vmul.f32 1.442695, %v2550_v49  ;;  %v2546_v37 = vmax.f32 %v2535_v52, -1e+30 }
 0xb36   : > { %5065 = vpow2.f32 %v2555_v24  ;;  %v2551_v53 = vsub.f32 %v2526_v22, %v2546_v37 }
 0xb37   : > { %v2538_v36 = vpop.xlane.xlu0 %2537 }
 0xb38   : > { %v2557_v56 = vmul.f32 1.442695, %v2551_v53  ;;  %v2547_v5 = vmax.f32 %v2538_v36, -1e+30 }
 0xb3a   : > { %5067 = vpow2.f32 %v2557_v56  ;;  %v2552_v59 = vsub.f32 %v2527_v13, %v2547_v5 }
 0xb3b   : > { %v2541_v43 = vpop.xlane.xlu0 %2540 }
 0xb3c   : > { %v2548_v10 = vmax.f32 %v2541_v43, -1e+30  ;;  %v2559_v16 = vmul.f32 1.442695, %v2552_v59 }
 0xb3e   : > { %v2553_v15 = vsub.f32 %v2528_v33, %v2548_v10  ;;  %5069 = vpow2.f32 %v2559_v16  ;;  %v1530_v16 = vld [vmem:[%s6228_s12 + $0x10] sm:$0xff] }
 0xb3f   : > { %v2544_v51 = vpop.xlane.xlu1 %2543  ;;  %4609 = vmatpush3.msra.mxu0 %v1530_v16 }
 0xb40   : > { %v5836_v58 = vpop.eup %5065  ;;  %v2549_v12 = vmax.f32 %v2544_v51, -1e+30  ;;  %v2561_v17 = vmul.f32 1.442695, %v2553_v15  ;;  %4844 = vmatprep.subr.bf16.mxu0 %v5163_v3 }
 0xb41   : > { %v2565_v61 = vsel %vm1675_vm14, %v5836_v58, 0.0 }
 0xb42   : > { %2566 = vadd.xlane.f32.xlu0 %v2565_v61  ;;  %v2554_v2 = vsub.f32 %v2529_v26, %v2549_v12  ;;  %5071 = vpow2.f32 %v2561_v17 }
 0xb44   : > { %v5840_v62 = vpop.eup %5067  ;;  %v2563_v18 = vmul.f32 1.442695, %v2554_v2 }
 0xb45   : > { %v2568_v63 = vsel %vm1675_vm14, %v5840_v62, 0.0 }
 0xb46   : > { %2569 = vadd.xlane.f32.xlu1 %v2568_v63  ;;  %5073 = vpow2.f32 %v2563_v18 }
 0xb48   : > { %v5070_v1 = vpop.eup %5069 }
 0xb49   : > { %v2571_v22 = vsel %vm1675_vm14, %v5070_v1, 0.0 }
 0xb4c   : > { %v5846_v21 = vpop.eup %5071 }
 0xb4d   : > { %v2574_v8 = vsel %vm1675_vm14, %v5846_v21, 0.0 }
 0xb50   : > { %v5849_v9 = vpop.eup %5073 }
 0xb51   : > { %v2577_v23 = vsel %vm1688_vm15, %v5849_v9, 0.0 }
 0xb57   : > { %4956 = vrot.lane.b32.xlu1 %v5503_v50, %s5175_s30 }
 0xb58   : > { %4961 = vrot.lane.b32.xlu0 %v5512_v57, %s5175_s30 }
 0xb77   : > { %2572 = vadd.xlane.f32.xlu0 %v2571_v22 }
 0xb7b   : > { %2575 = vadd.xlane.f32.xlu0 %v2574_v8  ;;  %2578 = vadd.xlane.f32.xlu1 %v2577_v23 }
 0xb8c   : > { %2825 = vrot.lane.b32.xlu1 %v5506_v54, %s5176_s3 }
 0xb91   : > { %2598 = vrot.lane.b32.xlu0 %v5516_v60, %s5175_s30 }
 0xb95   : > { %4966 = vrot.lane.b32.xlu0 %v5503_v50, %s5177_s2 }
 0xb99   : > { %4971 = vrot.lane.b32.xlu0 %v5512_v57, %s5177_s2 }
 0xb9d   : > { %2839 = vrot.lane.b32.xlu0 %v5516_v60, %s5177_s2 }
 0xba1   : > { %2821 = vrot.lane.b32.xlu0 %v5497_v47, %s5176_s3 }
 0xba5   : > { %2823 = vrot.lane.b32.xlu0 %v5499_v48, %s5176_s3 }
 0xba9   : > { %2827 = vrot.lane.b32.xlu0 %v5508_v55, %s5176_s3 }
 0xbad   : > { %2829 = vrot.lane.b32.xlu0 %v5516_v60, %s5176_s3  ;;  %s791_s3 = scalar_lea.vmem %s6241_s25, %s5340_s28 }
 0xbcf   : > { %v2567_v25 = vpop.xlane.xlu0 %2566 }
 0xbd0   : > { %5075 = vrcp.f32 %v2567_v25 }
 0xbd3   : > { %v2570_v13 = vpop.xlane.xlu1 %2569  ;;  %v4962_v54 = vpop.permute.xlu0 %4961 }
 0xbd4   : > { %v4964_v20 = vunpack.i.h.bf16 %v4962_v54  ;;  %v4963_v33 = vunpack.i.l.bf16 %v4962_v54  ;;  %5077 = vrcp.f32 %v2570_v13 }
 0xbd6   : > { %v4834_v38 = vpack.c.bf16 %v4964_v20, %v4963_v33 }
 0xbd7   : > { %v4957_v28 = vpop.permute.xlu1 %4956 }
 0xbd8   : > { %v4959_v29 = vunpack.i.h.bf16 %v4957_v28  ;;  %v4958_v14 = vunpack.i.l.bf16 %v4957_v28 }
 0xbda   : > { %v4831_v34 = vpack.c.bf16 %v4959_v29, %v4958_v14  ;;  %v5076_v55 = vpop.eup %5075 }
 0xbdb   : > { %v2585_v40 = vmul.f32 %v5076_v55, %v5836_v58 }
 0xbdc   : > { %4832 = vmatpush3.bf16.msra.mxu1 %v4831_v34 }
 0xbdd   : > { %4833 = vmatprep.subr.bf16.mxu1 %v5163_v3 }
 0xbde   : > { %v5078_v41 = vpop.eup %5077 }
 0xbdf   : > { %v2586_v45 = vmul.f32 %v5078_v41, %v5840_v62 }
 0xbe0   : > { %4835 = vmatpush3.bf16.msra.mxu1 %v4834_v38 }
 0xbe1   : > { %4591 = vmatprep.subr.mxu1 %v5165_v6 }
 0xc04   : > { %v2573_v47 = vpop.xlane.xlu0 %2572 }
 0xc05   : > { %5079 = vrcp.f32 %v2573_v47 }
 0xc08   : > { %v2576_v48 = vpop.xlane.xlu0 %2575  ;;  %v2579_v19 = vpop.xlane.xlu1 %2578 }
 0xc09   : > { %5081 = vrcp.f32 %v2576_v48 }
 0xc0a   : > { %5083 = vrcp.f32 %v2579_v19 }
 0xc0c   : > { %v2599_v26 = vpop.permute.xlu0 %2598  ;;  %v2826_v59 = vpop.permute.xlu1 %2825 }
 0xc0d   : > { %4592 = vmatpush3.msk.msra.mxu1 %vm1766_vm0, %v2599_v26 }
 0xc0e   : > { %4594 = vmatmul.mubr.msk.f32.vlgmr.msra.gmra.mrb[50].mxu1 %vm1675_vm14, %v2585_v40  ;;  %4836 = vmatprep.subr.bf16.mxu1 %v5163_v3 }
 0xc0f   : > { %4596 = vmatprep.mubr.msk.f32.mxu1 %vm5164_vm1, %v5165_v6  ;;  %v5080_v49 = vpop.eup %5079 }
 0xc10   : > { %v4967_v44 = vpop.permute.xlu0 %4966  ;;  %v2587_v56 = vmul.f32 %v5080_v49, %v5070_v1 }
 0xc11   : > { %v4969_v52 = vunpack.i.h.bf16 %v4967_v44  ;;  %v4968_v24 = vunpack.i.l.bf16 %v4967_v44 }
 0xc12   : > { %4597 = vmatmul.mubr.msk.f32.gmra.mrb[52].mxu1 %vm1675_vm14, %v2586_v45 }
 0xc13   : > { %v4837_v37 = vpack.c.bf16 %v4969_v52, %v4968_v24  ;;  %4599 = vmatprep.mubr.msk.f32.mxu1 %vm5164_vm1, %v5165_v6  ;;  %v5082_v58 = vpop.eup %5081 }
 0xc14   : > { %v4972_v53 = vpop.permute.xlu0 %4971  ;;  %v2588_v63 = vmul.f32 %v5082_v58, %v5846_v21  ;;  %v5084_v36 = vpop.eup %5083 }
 0xc15   : > { %4839 = vmatpush3.bf16.xpose.msk.msra.mxu1 %vm5528_vm11, %v4837_v37  ;;  %v4974_v61 = vunpack.i.h.bf16 %v4972_v53  ;;  %v4973_v62 = vunpack.i.l.bf16 %v4972_v53  ;;  %v2589_v43 = vmul.f32 %v5084_v36, %v5849_v9 }
 0xc16   : > { %4600 = vmatmul.mubr.msk.f32.gmra.mrb[54].mxu1 %vm1675_vm14, %v2587_v56  ;;  %4840 = vmatprep.subr.bf16.mxu1 %v5163_v3 }
 0xc17   : > { %4602 = vmatprep.mubr.msk.f32.mxu1 %vm5164_vm1, %v5165_v6  ;;  %v4841_v5 = vpack.c.bf16 %v4974_v61, %v4973_v62 }
 0xc18   : > { %v2840_v51 = vpop.permute.xlu0 %2839 }
 0xc1a   : > { %4603 = vmatmul.mubr.msk.f32.gmra.mrb[56].mxu1 %vm1675_vm14, %v2588_v63 }
 0xc1b   : > { %4605 = vmatprep.mubr.msk.f32.mxu1 %vm5164_vm1, %v5165_v6 }
 0xc1c   : > { %v2822_v10 = vpop.permute.xlu0 %2821 }
 0xc1d   : > { %4843 = vmatpush3.bf16.xpose.msk.msra.mxu1 %vm5528_vm11, %v4841_v5 }
 0xc1e   : > { %4606 = vmatmul.mubr.msk.f32.gmra.mrb[58].mxu1 %vm1675_vm14, %v2589_v43  ;;  %4633 = vmatprep.subr.mxu1 %v5165_v6 }
 0xc1f   : > { %4635 = vmatprep.mubr.msk.f32.mxu1 %vm5164_vm1, %v5165_v6 }
 0xc20   : > { %v2824_v0 = vpop.permute.xlu0 %2823 }
 0xc24   : > { %v2828_v12 = vpop.permute.xlu0 %2827 }
 0xc25   : > { %4634 = vmatpush3.xpose.msk.msra.mxu1 %vm1547_vm10, %v2840_v51 }
 0xc26   : > { %4874 = vmatprep.subr.bf16.mxu1 %v5163_v3 }
 0xc28   : > { %4636 = vmatmul.mubr.msk.f32.vlgmr.msra.gmra.mrb[60].mxu1 %vm1547_vm10, %v2822_v10  ;;  %v2830_v15 = vpop.permute.xlu0 %2829 }
 0xc29   : > { %4638 = vmatprep.mubr.msk.f32.mxu1 %vm5164_vm1, %v5165_v6 }
 0xc2c   : > { %4639 = vmatmul.mubr.msk.f32.gmra.mrb[62].mxu1 %vm1547_vm10, %v2824_v0 }
 0xc2d   : > { %4641 = vmatprep.mubr.msk.f32.mxu1 %vm5164_vm1, %v5165_v6 }
 0xc30   : > { %4642 = vmatmul.mubr.msk.f32.gmra.mrb[64].mxu1 %vm1547_vm10, %v2826_v59 }
 0xc31   : > { %4644 = vmatprep.mubr.msk.f32.mxu1 %vm5164_vm1, %v5165_v6 }
 0xc34   : > { %4645 = vmatmul.mubr.msk.f32.gmra.mrb[66].mxu1 %vm1547_vm10, %v2828_v12 }
 0xc35   : > { %4647 = vmatprep.mubr.msk.f32.mxu1 %vm5164_vm1, %v5165_v6 }
 0xc38   : > { %4648 = vmatmul.mubr.msk.f32.gmra.mrb[68].mxu1 %vm1547_vm10, %v2830_v15 }
 0xc39   : > { %4669 = vmatprep.mubr.msk.f32.mxu1 %vm5164_vm1, %v5165_v6 }
 0xce1   : > { %v2687_v2 = vpop.f32.mrb[50].mxu1 }
 0xce2   : > { %v4595_v17 = vpop.f32.mrb[51].mxu1  ;;  %4611 = vmatmul.mubr.msk.f32.vlgmr.msra.gmra.mrb[60].mxu0 %vm1547_vm10, %v2687_v2 }
 0xce3   : > { %4613 = vmatprep.mubr.msk.f32.mxu0 %vm5164_vm1, %v5165_v6 }
 0xce5   : > { %v2692_v18 = vpop.f32.mrb[52].mxu1 }
 0xce6   : > { %v4598_v1 = vpop.f32.mrb[53].mxu1  ;;  %4614 = vmatmul.mubr.msk.f32.gmra.mrb[62].mxu0 %vm1547_vm10, %v2692_v18 }
 0xce7   : > { %4616 = vmatprep.mubr.msk.f32.mxu0 %vm5164_vm1, %v5165_v6 }
 0xce9   : > { %v2697_v21 = vpop.f32.mrb[54].mxu1 }
 0xcea   : > { %v4601_v22 = vpop.f32.mrb[55].mxu1  ;;  %4617 = vmatmul.mubr.msk.f32.gmra.mrb[64].mxu0 %vm1547_vm10, %v2697_v21 }
 0xceb   : > { %4619 = vmatprep.mubr.msk.f32.mxu0 %vm5164_vm1, %v5165_v6 }
 0xced   : > { %v2702_v9 = vpop.f32.mrb[56].mxu1 }
 0xcee   : > { %v4604_v8 = vpop.f32.mrb[57].mxu1  ;;  %4620 = vmatmul.mubr.msk.f32.gmra.mrb[66].mxu0 %vm1547_vm10, %v2702_v9 }
 0xcef   : > { %4622 = vmatprep.mubr.msk.f32.mxu0 %vm5164_vm1, %v5165_v6 }
 0xcf1   : > { %v2707_v23 = vpop.f32.mrb[58].mxu1 }
 0xcf2   : > { %v4607_v25 = vpop.f32.mrb[59].mxu1  ;;  %4623 = vmatmul.mubr.msk.f32.gmra.mrb[68].mxu0 %vm1547_vm10, %v2707_v23 }
 0xcf3   : > { %4660 = vmatprep.mubr.msk.f32.mxu0 %vm5164_vm1, %v5165_v6 }
 0xcfb   : > { %v2927_v13 = vpop.f32.mrb[60].mxu1 }
 0xcfc   : > { %v2951_v54 = vmul.f32 0.35355338, %v2927_v13  ;;  %v4637_v28 = vpop.f32.mrb[61].mxu1 }
 0xcfe   : > { %v2956_v29 = vsel %vm1669_vm13, %v2951_v54, -1e+30 }
 0xcff   : > { %v2932_v14 = vpop.f32.mrb[62].mxu1  ;;  %v2961_v20 = vsel %vm1675_vm14, %v2956_v29, -inf }
 0xd00   : > { %v2952_v33 = vmul.f32 0.35355338, %v2932_v14  ;;  %2962 = vmax.xlane.f32.xlu0 %v2961_v20  ;;  %v4640_v34 = vpop.f32.mrb[63].mxu1 }
 0xd02   : > { %v2957_v38 = vsel %vm1669_vm13, %v2952_v33, -1e+30 }
 0xd03   : > { %v2937_v47 = vpop.f32.mrb[64].mxu1  ;;  %v2964_v48 = vsel %vm1675_vm14, %v2957_v38, -inf }
 0xd04   : > { %v2953_v55 = vmul.f32 0.35355338, %v2937_v47  ;;  %2965 = vmax.xlane.f32.xlu1 %v2964_v48  ;;  %v4643_v40 = vpop.f32.mrb[65].mxu1 }
 0xd06   : > { %v2958_v19 = vsel %vm1669_vm13, %v2953_v55, -1e+30 }
 0xd07   : > { %v2942_v26 = vpop.f32.mrb[66].mxu1  ;;  %v2967_v41 = vsel %vm1675_vm14, %v2958_v19, -inf }
 0xd08   : > { %v2954_v44 = vmul.f32 0.35355338, %v2942_v26  ;;  %2968 = vmax.xlane.f32.xlu0 %v2967_v41  ;;  %v4646_v45 = vpop.f32.mrb[67].mxu1 }
 0xd0a   : > { %v2959_v49 = vsel %vm1669_vm13, %v2954_v44, -1e+30 }
 0xd0b   : > { %v2947_v52 = vpop.f32.mrb[68].mxu1  ;;  %v2970_v24 = vsel %vm1675_vm14, %v2959_v49, -inf }
 0xd0c   : > { %v2955_v37 = vmul.f32 0.35355338, %v2947_v52  ;;  %2971 = vmax.xlane.f32.xlu0 %v2970_v24  ;;  %v4649_v53 = vpop.f32.mrb[69].mxu1 }
 0xd0e   : > { %v2960_v56 = vsel %vm1669_vm13, %v2955_v37, -1e+30 }
 0xd0f   : > { %v2973_v58 = vsel %vm1688_vm15, %v2960_v56, -inf }
 0xd10   : > { %2974 = vmax.xlane.f32.xlu0 %v2973_v58 }
 0xd15   : > { %4976 = vrot.lane.b32.xlu1 %v5503_v50, %s5178_s4 }
 0xd8d   : > { %v2963_v61 = vpop.xlane.xlu0 %2962 }
 0xd8e   : > { %v2976_v62 = vmax.f32 %v2963_v61, -1e+30 }
 0xd90   : > { %v2981_v63 = vsub.f32 %v2956_v29, %v2976_v62 }
 0xd91   : > { %v2966_v36 = vpop.xlane.xlu1 %2965 }
 0xd92   : > { %v2986_v5 = vmul.f32 1.442695, %v2981_v63  ;;  %v2977_v43 = vmax.f32 %v2966_v36, -1e+30 }
 0xd94   : > { %5085 = vpow2.f32 %v2986_v5  ;;  %v2982_v51 = vsub.f32 %v2957_v38, %v2977_v43 }
 0xd95   : > { %v4977_v10 = vpop.permute.xlu1 %4976  ;;  %v2969_v0 = vpop.xlane.xlu0 %2968 }
 0xd96   : > { %v2988_v59 = vmul.f32 1.442695, %v2982_v51  ;;  %v4979_v30 = vunpack.i.h.bf16 %v4977_v10  ;;  %v4978_v12 = vunpack.i.l.bf16 %v4977_v10  ;;  %v2978_v15 = vmax.f32 %v2969_v0, -1e+30 }
 0xd98   : > { %5087 = vpow2.f32 %v2988_v59  ;;  %v4845_v16 = vpack.c.bf16 %v4979_v30, %v4978_v12  ;;  %v2983_v2 = vsub.f32 %v2958_v19, %v2978_v15  ;;  %v1531_v15 = vld [vmem:[%s6228_s12 + $0x18] sm:$0xff] }
 0xd99   : > { %v2972_v17 = vpop.xlane.xlu0 %2971 }
 0xd9a   : > { %v2990_v18 = vmul.f32 1.442695, %v2983_v2  ;;  %v2979_v50 = vmax.f32 %v2972_v17, -1e+30  ;;  %4846 = vmatpush3.bf16.msra.mxu0 %v4845_v16  ;;  %4877 = vmatpush3.bf16.msra.mxu1 %v4845_v16 }
 0xd9b   : > { %4847 = vmatprep.subr.bf16.mxu0 %v5163_v3  ;;  %4875 = vmatprep.subr.bf16.mxu1 %v5163_v3 }
 0xd9c   : > { %5089 = vpow2.f32 %v2990_v18  ;;  %v2984_v1 = vsub.f32 %v2959_v49, %v2979_v50 }
 0xd9d   : > { %v2975_v21 = vpop.xlane.xlu0 %2974 }
 0xd9e   : > { %v5086_v22 = vpop.eup %5085  ;;  %v2992_v9 = vmul.f32 1.442695, %v2984_v1  ;;  %v2980_v8 = vmax.f32 %v2975_v21, -1e+30 }
 0xd9f   : > { %v2996_v23 = vsel %vm1675_vm14, %v5086_v22, 0.0 }
 0xda0   : > { %5091 = vpow2.f32 %v2992_v9  ;;  %v2985_v25 = vsub.f32 %v2960_v56, %v2980_v8  ;;  %2997 = vadd.xlane.f32.xlu0 %v2996_v23 }
 0xda2   : > { %v5088_v13 = vpop.eup %5087  ;;  %v2994_v54 = vmul.f32 1.442695, %v2985_v25  ;;  %v4136_v25 = vld [vmem:[%s6229_s13] ss:$0 sm:$0xff] }
 0xda3   : > { %v2999_v28 = vsel %vm1675_vm14, %v5088_v13, 0.0 }
 0xda4   : > { %5093 = vpow2.f32 %v2994_v54  ;;  %3000 = vadd.xlane.f32.xlu1 %v2999_v28 }
 0xda6   : > { %v5950_v29 = vpop.eup %5089 }
 0xda7   : > { %v3002_v14 = vsel %vm1675_vm14, %v5950_v29, 0.0 }
 0xda8   : > { %3003 = vadd.xlane.f32.xlu0 %v3002_v14 }
 0xdaa   : > { %v5092_v20 = vpop.eup %5091 }
 0xdab   : > { %v3005_v33 = vsel %vm1675_vm14, %v5092_v20, 0.0 }
 0xdac   : > { %3006 = vadd.xlane.f32.xlu1 %v3005_v33 }
 0xdae   : > { %v5094_v34 = vpop.eup %5093 }
 0xdaf   : > { %v3008_v38 = vsel %vm1688_vm15, %v5094_v34, 0.0 }
 0xdb0   : > { %3009 = vadd.xlane.f32.xlu0 %v3008_v38 }
 0xdb5   : > { %v2792_v47 = vpop.f32.mrb[60].mxu0 }
 0xdb6   : > { %v5957_v48 = vadd.f32 %v2792_v47, %v5811_v46  ;;  %v4612_v55 = vpop.f32.mrb[61].mxu0 }
 0xdb9   : > { %v2797_v40 = vpop.f32.mrb[62].mxu0 }
 0xdba   : > { %v5960_v19 = vadd.f32 %v2797_v40, %v5813_v32  ;;  %v4615_v26 = vpop.f32.mrb[63].mxu0 }
 0xdbd   : > { %3029 = vrot.lane.b32.xlu1 %v5516_v60, %s5178_s4  ;;  %v2802_v41 = vpop.f32.mrb[64].mxu0 }
 0xdbe   : > { %v5965_v44 = vadd.f32 %v2802_v41, %v5815_v4  ;;  %v4618_v45 = vpop.f32.mrb[65].mxu0 }
 0xdc1   : > { %v2807_v49 = vpop.f32.mrb[66].mxu0 }
 0xdc2   : > { %v5968_v52 = vadd.f32 %v2807_v49, %v5817_v7  ;;  %v4621_v46 = vpop.f32.mrb[67].mxu0 }
 0xdc5   : > { %v2812_v24 = vpop.f32.mrb[68].mxu0 }
 0xdc6   : > { %v5971_v37 = vadd.f32 %v2812_v24, %v5819_v11  ;;  %4981 = vrot.lane.b32.xlu0 %v5512_v57, %s5178_s4  ;;  %v4624_v32 = vpop.f32.mrb[69].mxu0 }
 0xe2d   : > { %v2998_v53 = vpop.xlane.xlu0 %2997 }
 0xe2e   : > { %5095 = vrcp.f32 %v2998_v53 }
 0xe31   : > { %v3001_v60 = vpop.xlane.xlu1 %3000 }
 0xe35   : > { %v3004_v56 = vpop.xlane.xlu0 %3003 }
 0xe38   : > { %v5096_v11 = vpop.eup %5095 }
 0xe39   : > { %v3007_v58 = vpop.xlane.xlu1 %3006  ;;  %v3016_v5 = vmul.f32 %v5096_v11, %v5086_v22 }
 0xe3a   : > { %5097 = vrcp.f32 %v3007_v58 }
 0xe3b   : > { %5099 = vrcp.f32 %v3001_v60 }
 0xe3d   : > { %v3010_v4 = vpop.xlane.xlu0 %3009  ;;  %v3030_v51 = vpop.permute.xlu1 %3029 }
 0xe3e   : > { %5101 = vrcp.f32 %v3010_v4 }
 0xe3f   : > { %5103 = vrcp.f32 %v3004_v56 }
 0xe41   : > { %v4982_v7 = vpop.permute.xlu0 %4981 }
 0xe42   : > { %v4984_v61 = vunpack.i.h.bf16 %v4982_v7  ;;  %v4983_v62 = vunpack.i.l.bf16 %v4982_v7 }
 0xe44   : > { %v4848_v63 = vpack.c.bf16 %v4984_v61, %v4983_v62  ;;  %v5098_v36 = vpop.eup %5097 }
 0xe45   : > { %v5100_v57 = vpop.eup %5099  ;;  %v3019_v43 = vmul.f32 %v5098_v36, %v5092_v20 }
 0xe46   : > { %4849 = vmatpush3.bf16.msra.mxu0 %v4848_v63  ;;  %4878 = vmatpush3.bf16.msra.mxu1 %v4848_v63  ;;  %v3017_v0 = vmul.f32 %v5100_v57, %v5088_v13 }
 0xe47   : > { %4658 = vmatprep.subr.mxu0 %v5165_v6  ;;  %4876 = vmatprep.subr.mxu1 %v5165_v6 }
 0xe48   : > { %v5102_v10 = vpop.eup %5101 }
 0xe49   : > { %v3020_v59 = vmul.f32 %v5102_v10, %v5094_v34  ;;  %v5104_v30 = vpop.eup %5103 }
 0xe4a   : > { %4659 = vmatpush3.msk.msra.mxu0 %vm1766_vm0, %v3030_v51  ;;  %4879 = vmatpush3.msk.msra.mxu1 %vm1766_vm0, %v3030_v51  ;;  %v3018_v12 = vmul.f32 %v5104_v30, %v5950_v29 }
 0xe4b   : > { %4661 = vmatmul.mubr.msk.f32.vlgmr.msra.gmra.mrb[70].mxu0 %vm1675_vm14, %v3016_v5  ;;  %4670 = vmatmul.mubr.msk.f32.vlgmr.msra.gmra.mrb[70].mxu1 %vm1675_vm14, %v3019_v43 }
 0xe4c   : > { %4663 = vmatprep.mubr.msk.f32.mxu0 %vm5164_vm1, %v5165_v6  ;;  %4672 = vmatprep.mubr.msk.f32.mxu1 %vm5164_vm1, %v5165_v6 }
 0xe4d   : > { %4675 = vmatprep.subr.mxu1 %v5165_v6  ;;  %4850 = vmatprep.subr.bf16.mxu0 %v5163_v3 }
 0xe4e   : > { %4676 = vmatpush3.msra.mxu1 %v1531_v15 }
 0xe4f   : > { %4664 = vmatmul.mubr.msk.f32.gmra.mrb[72].mxu0 %vm1675_vm14, %v3017_v0  ;;  %4673 = vmatmul.mubr.msk.f32.gmra.mrb[72].mxu1 %vm1675_vm14, %v3020_v59 }
 0xe50   : > { %4666 = vmatprep.mubr.msk.f32.mxu0 %vm5164_vm1, %v5165_v6  ;;  %4677 = vmatprep.mubr.msk.f32.mxu1 %vm5164_vm1, %v5165_v6 }
 0xe51   : > { %4856 = vmatprep.subr.bf16.mxu1 %v5163_v3 }
 0xe53   : > { %4667 = vmatmul.mubr.msk.f32.gmra.mrb[74].mxu0 %vm1675_vm14, %v3018_v12 }
 0xe54   : > { %4700 = vmatprep.mubr.msk.f32.mxu0 %vm5164_vm1, %v5165_v6 }
 0xf1e   : > { %v3118_v16 = vpop.f32.mrb[70].mxu0  ;;  %v3133_v2 = vpop.f32.mrb[70].mxu1 }
 0xf1f   : > { %v4662_v17 = vpop.f32.mrb[71].mxu0  ;;  %v4671_v18 = vpop.f32.mrb[71].mxu1  ;;  %4678 = vmatmul.mubr.msk.f32.vlgmr.msra.gmra.mrb[74].mxu1 %vm1547_vm10, %v3118_v16 }
 0xf20   : > { %4680 = vmatprep.mubr.msk.f32.mxu1 %vm5164_vm1, %v5165_v6 }
 0xf22   : > { %v3123_v50 = vpop.f32.mrb[72].mxu0  ;;  %v3138_v1 = vpop.f32.mrb[72].mxu1 }
 0xf23   : > { %v4665_v21 = vpop.f32.mrb[73].mxu0  ;;  %v4674_v22 = vpop.f32.mrb[73].mxu1  ;;  %4681 = vmatmul.mubr.msk.f32.gmra.mrb[76].mxu1 %vm1547_vm10, %v3123_v50  ;;  %v3358_v50 = vld [vmem:[%s6232_s16] sm:$0xff] }
 0xf24   : > { %4683 = vmatprep.mubr.msk.f32.mxu1 %vm5164_vm1, %v5165_v6  ;;  %v3360_v22 = vld [vmem:[%s6232_s16 + $0x10] sm:$0xff] }
 0xf26   : > { %v3128_v9 = vpop.f32.mrb[74].mxu0 }
 0xf27   : > { %v4668_v8 = vpop.f32.mrb[75].mxu0  ;;  %4684 = vmatmul.mubr.msk.f32.gmra.mrb[78].mxu1 %vm1547_vm10, %v3128_v9  ;;  %v3361_v9 = vld [vmem:[%s6232_s16 + $0x18] sm:$0xff] }
 0xf28   : > { %4686 = vmatprep.mubr.msk.f32.mxu1 %vm5164_vm1, %v5165_v6  ;;  %v4854_v8 = vpack.c.bf16 %v3361_v9, %v3360_v22 }
 0xf2b   : > { %4687 = vmatmul.mubr.msk.f32.gmra.mrb[80].mxu1 %vm1547_vm10, %v3133_v2 }
 0xf2c   : > { %4689 = vmatprep.mubr.msk.f32.mxu1 %vm5164_vm1, %v5165_v6 }
 0xf2f   : > { %4690 = vmatmul.mubr.msk.f32.gmra.mrb[82].mxu1 %vm1547_vm10, %v3138_v1  ;;  %v3359_v1 = vld [vmem:[%s6232_s16 + $0x8] sm:$0xff] }
 0xf30   : > { %4731 = vmatprep.mubr.msk.f32.mxu1 %vm5164_vm1, %v5165_v6  ;;  %v4851_v21 = vpack.c.bf16 %v3359_v1, %v3358_v50 }
 0xf32   : > { %4852 = vmatpush3.bf16.msra.mxu0 %v4851_v21 }
 0xf33   : > { %4853 = vmatprep.subr.bf16.mxu0 %v5163_v3 }
 0xf36   : > { %4855 = vmatpush3.bf16.msra.mxu0 %v4854_v8 }
 0xf37   : > { %4868 = vmatprep.subr.bf16.mxu0 %v5163_v3 }
 0xff2   : > { %v3223_v23 = vpop.f32.mrb[74].mxu1 }
 0xff3   : > { %v3247_v13 = vadd.f32 %v3223_v23, %v5957_v48  ;;  %v4679_v54 = vpop.f32.mrb[75].mxu1 }
 0xff5   : > { %v3259_v28 = vadd.f32 %v4136_v25, %v3247_v13 }
 0xff6   : > { %v3228_v29 = vpop.f32.mrb[76].mxu1 }
 0xff7   : > { %v3248_v14 = vadd.f32 %v3228_v29, %v5960_v19  ;;  %v4682_v20 = vpop.f32.mrb[77].mxu1  ;;  %v3264_v33 = vadd.f32 %v3259_v28, %v5464_v27 }
 0xff9   : > { %v3260_v34 = vadd.f32 %v4136_v25, %v3248_v14  ;;  %v3271_v38 = vsel %vm1321_vm8, %v3264_v33, 0.0 }
 0xffa   : > { %3272 = vadd.xlane.f32.xlu1 %v3271_v38  ;;  %v3233_v47 = vpop.f32.mrb[78].mxu1 }
 0xffb   : > { %v3249_v55 = vadd.f32 %v3233_v47, %v5965_v44  ;;  %v4685_v40 = vpop.f32.mrb[79].mxu1  ;;  %v3265_v26 = vadd.f32 %v3260_v34, %v5470_v31 }
 0xffd   : > { %v3261_v41 = vadd.f32 %v4136_v25, %v3249_v55  ;;  %v3274_v48 = vsel %vm1321_vm8, %v3265_v26, 0.0  ;;  %v4137_v55 = vld [vmem:[%s6230_s14] ss:$0 sm:$0xff] }
 0xffe   : > { %3275 = vadd.xlane.f32.xlu0 %v3274_v48  ;;  %v3238_v45 = vpop.f32.mrb[80].mxu1  ;;  %v4138_v48 = vld [vmem:[%s6231_s15] ss:$0 sm:$0xff] }
 0xfff   : > { %v3250_v19 = vadd.f32 %v3238_v45, %v5968_v52  ;;  %v4688_v49 = vpop.f32.mrb[81].mxu1  ;;  %v3266_v27 = vadd.f32 %v3261_v41, %v5476_v35 }
0x1001   : > { %v3262_v46 = vadd.f32 %v4136_v25, %v3250_v19  ;;  %v3277_v24 = vsel %vm1321_vm8, %v3266_v27, 0.0 }
0x1002   : > { %3278 = vadd.xlane.f32.xlu0 %v3277_v24  ;;  %v3243_v32 = vpop.f32.mrb[82].mxu1 }
0x1003   : > { %v3251_v44 = vadd.f32 %v3243_v32, %v5971_v37  ;;  %v4691_v53 = vpop.f32.mrb[83].mxu1  ;;  %v3267_v31 = vadd.f32 %v3262_v46, %v5482_v39 }
0x1005   : > { %v3263_v60 = vadd.f32 %v4136_v25, %v3251_v44  ;;  %v3280_v56 = vsel %vm1321_vm8, %v3267_v31, 0.0 }
0x1006   : > { %3281 = vadd.xlane.f32.xlu1 %v3280_v56 }
0x1007   : > { %v3268_v58 = vadd.f32 %v3263_v60, %v5488_v42 }
0x1009   : > { %v3283_v52 = vsel %vm1334_vm9, %v3268_v58, 0.0 }
0x100a   : > { %3284 = vadd.xlane.f32.xlu0 %v3283_v52 }
0x1087   : > { %v3273_v35 = vpop.xlane.xlu1 %3272 }
0x1088   : > { %v3286_v4 = vmul.f32 0.03125, %v3273_v35 }
0x108a   : > { %v3291_v7 = vsub.f32 %v3264_v33, %v3286_v4 }
0x108b   : > { %v3276_v61 = vpop.xlane.xlu0 %3275 }
0x108c   : > { %v3287_v62 = vmul.f32 0.03125, %v3276_v61  ;;  %v3296_v63 = vmul.f32 %v3291_v7, %v3291_v7 }
0x108e   : > { %v3292_v11 = vsub.f32 %v3265_v26, %v3287_v62  ;;  %v3301_v37 = vsel %vm1321_vm8, %v3296_v63, 0.0 }
0x108f   : > { %v3279_v36 = vpop.xlane.xlu0 %3278  ;;  %3302 = vadd.xlane.f32.xlu1 %v3301_v37  ;;  %v3520_v37 = vld [vmem:[%s6234_s18 + $0x8] sm:$0xff] }
0x1090   : > { %v3288_v39 = vmul.f32 0.03125, %v3279_v36  ;;  %v3297_v57 = vmul.f32 %v3292_v11, %v3292_v11 }
0x1092   : > { %v3293_v5 = vsub.f32 %v3266_v27, %v3288_v39  ;;  %v3304_v43 = vsel %vm1321_vm8, %v3297_v57, 0.0  ;;  %v3521_v39 = vld [vmem:[%s6234_s18 + $0x10] sm:$0xff]  ;;  %v3522_v57 = vld [vmem:[%s6234_s18 + $0x18] sm:$0xff] }
0x1093   : > { %v3282_v42 = vpop.xlane.xlu1 %3281  ;;  %3305 = vadd.xlane.f32.xlu0 %v3304_v43  ;;  %v3523_v43 = vld [vmem:[%s6234_s18 + $0x20] sm:$0xff] }
0x1094   : > { %v3289_v51 = vmul.f32 0.03125, %v3282_v42  ;;  %v3298_v10 = vmul.f32 %v3293_v5, %v3293_v5  ;;  %v3524_v42 = vld [vmem:[%s6234_s18 + $0x28] sm:$0xff] }
0x1096   : > { %v3294_v0 = vsub.f32 %v3267_v31, %v3289_v51  ;;  %v3307_v59 = vsel %vm1321_vm8, %v3298_v10, 0.0  ;;  %v4863_v51 = vpack.c.bf16 %v3524_v42, %v3523_v43  ;;  %v3525_v10 = vld [vmem:[%s6234_s18 + $0x30] sm:$0xff] }
0x1097   : > { %3308 = vadd.xlane.f32.xlu1 %v3307_v59  ;;  %v3285_v30 = vpop.xlane.xlu0 %3284 }
0x1098   : > { %v3290_v12 = vmul.f32 0.03125, %v3285_v30  ;;  %v3299_v15 = vmul.f32 %v3294_v0, %v3294_v0  ;;  %v4139_v30 = vld [vmem:[%s6233_s17] ss:$0 sm:$0xff] }
0x109a   : > { %v3295_v16 = vsub.f32 %v3268_v58, %v3290_v12  ;;  %v3310_v2 = vsel %vm1321_vm8, %v3299_v15, 0.0 }
0x109b   : > { %3311 = vadd.xlane.f32.xlu0 %v3310_v2 }
0x109c   : > { %v3300_v17 = vmul.f32 %v3295_v16, %v3295_v16 }
0x109e   : > { %v3313_v18 = vsel %vm1334_vm9, %v3300_v17, 0.0 }
0x109f   : > { %3314 = vadd.xlane.f32.xlu1 %v3313_v18 }
0x111c   : > { %v3303_v23 = vpop.xlane.xlu1 %3302 }
0x111d   : > { %v3316_v25 = vmul.f32 0.03125, %v3303_v23 }
0x111f   : > { %v3321_v13 = vadd.f32 1e-05, %v3316_v25 }
0x1120   : > { %v3306_v54 = vpop.xlane.xlu0 %3305 }
0x1121   : > { %5105 = vrsqrt.f32 %v3321_v13  ;;  %v3317_v28 = vmul.f32 0.03125, %v3306_v54 }
0x1123   : > { %v3322_v29 = vadd.f32 1e-05, %v3317_v28 }
0x1124   : > { %v3309_v14 = vpop.xlane.xlu1 %3308 }
0x1125   : > { %5107 = vrsqrt.f32 %v3322_v29  ;;  %v3318_v20 = vmul.f32 0.03125, %v3309_v14 }
0x1127   : > { %v3323_v33 = vadd.f32 1e-05, %v3318_v20 }
0x1128   : > { %v3312_v34 = vpop.xlane.xlu0 %3311 }
0x1129   : > { %5109 = vrsqrt.f32 %v3323_v33  ;;  %v3319_v38 = vmul.f32 0.03125, %v3312_v34 }
0x112b   : > { %v5106_v47 = vpop.eup %5105  ;;  %v3324_v40 = vadd.f32 1e-05, %v3319_v38 }
0x112c   : > { %v3331_v26 = vmul.f32 %v5106_v47, %v3291_v7  ;;  %v3315_v41 = vpop.xlane.xlu1 %3314 }
0x112d   : > { %5111 = vrsqrt.f32 %v3324_v40  ;;  %v3320_v45 = vmul.f32 0.03125, %v3315_v41 }
0x112e   : > { %v3342_v19 = vmul.f32 %v4137_v55, %v3331_v26 }
0x112f   : > { %v5108_v49 = vpop.eup %5107  ;;  %v3325_v27 = vadd.f32 1e-05, %v3320_v45 }
0x1130   : > { %v6059_v46 = vadd.f32 %v4138_v48, %v3342_v19  ;;  %v3332_v24 = vmul.f32 %v5108_v49, %v3292_v11  ;;  %v3519_v11 = vld [vmem:[%s6234_s18] sm:$0xff] }
0x1131   : > { %5113 = vrsqrt.f32 %v3325_v27  ;;  %v4857_v36 = vpack.c.bf16 %v3520_v37, %v3519_v11 }
0x1132   : > { %4701 = vmatmul.mubr.msk.f32.vlgmr.msra.gmra.mrb[76].mxu0 %vm1321_vm8, %v6059_v46  ;;  %v3343_v32 = vmul.f32 %v4137_v55, %v3332_v24 }
0x1133   : > { %v5110_v44 = vpop.eup %5109  ;;  %4703 = vmatprep.mubr.msk.f32.mxu0 %vm5164_vm1, %v5165_v6  ;;  %4858 = vmatpush3.bf16.msra.mxu1 %v4857_v36 }
0x1134   : > { %v6065_v53 = vadd.f32 %v4138_v48, %v3343_v32  ;;  %v3333_v31 = vmul.f32 %v5110_v44, %v3293_v5  ;;  %4859 = vmatprep.subr.bf16.mxu1 %v5163_v3  ;;  %v4860_v5 = vpack.c.bf16 %v3522_v57, %v3521_v39 }
0x1136   : > { %4704 = vmatmul.mubr.msk.f32.gmra.mrb[78].mxu0 %vm1321_vm8, %v6065_v53  ;;  %v3344_v60 = vmul.f32 %v4137_v55, %v3333_v31 }
0x1137   : > { %v5112_v56 = vpop.eup %5111  ;;  %4706 = vmatprep.mubr.msk.f32.mxu0 %vm5164_vm1, %v5165_v6  ;;  %4861 = vmatpush3.bf16.msra.mxu1 %v4860_v5 }
0x1138   : > { %v6071_v58 = vadd.f32 %v4138_v48, %v3344_v60  ;;  %v3334_v52 = vmul.f32 %v5112_v56, %v3294_v0  ;;  %4862 = vmatprep.subr.bf16.mxu1 %v5163_v3  ;;  %v3526_v0 = vld [vmem:[%s6234_s18 + $0x38] sm:$0xff] }
0x1139   : > { %v4866_v59 = vpack.c.bf16 %v3526_v0, %v3525_v10 }
0x113a   : > { %4707 = vmatmul.mubr.msk.f32.gmra.mrb[80].mxu0 %vm1321_vm8, %v6071_v58  ;;  %v3345_v35 = vmul.f32 %v4137_v55, %v3334_v52 }
0x113b   : > { %v5114_v4 = vpop.eup %5113  ;;  %4709 = vmatprep.mubr.msk.f32.mxu0 %vm5164_vm1, %v5165_v6  ;;  %4864 = vmatpush3.bf16.msra.mxu1 %v4863_v51 }
0x113c   : > { %v6077_v7 = vadd.f32 %v4138_v48, %v3345_v35  ;;  %v3335_v61 = vmul.f32 %v5114_v4, %v3295_v16  ;;  %4865 = vmatprep.subr.bf16.mxu1 %v5163_v3 }
0x113e   : > { %4710 = vmatmul.mubr.msk.f32.gmra.mrb[82].mxu0 %vm1321_vm8, %v6077_v7  ;;  %v3346_v62 = vmul.f32 %v4137_v55, %v3335_v61 }
0x113f   : > { %4712 = vmatprep.mubr.msk.f32.mxu0 %vm5164_vm1, %v5165_v6  ;;  %4867 = vmatpush3.bf16.msra.mxu1 %v4866_v59 }
0x1140   : > { %v6083_v63 = vadd.f32 %v4138_v48, %v3346_v62 }
0x1142   : > { %4713 = vmatmul.mubr.msk.f32.gmra.mrb[84].mxu0 %vm1321_vm8, %v6083_v63 }
0x1143   : > { %4754 = vmatprep.mubr.msk.f32.mxu0 %vm5164_vm1, %v5165_v6 }
0x1205   : > { %v3450_v12 = vpop.f32.mrb[76].mxu0 }
0x1206   : > { %v3451_v15 = vadd.f32 %v4139_v30, %v3450_v12  ;;  %v4702_v16 = vpop.f32.mrb[77].mxu0 }
0x1208   : > { %v3479_v2 = vmul.f32 0.044715, %v3451_v15  ;;  %v3474_v52 = vmul.f32 0.5, %v3451_v15 }
0x1209   : > { %v3455_v17 = vpop.f32.mrb[78].mxu0 }
0x120a   : > { %v3484_v18 = vmul.f32 %v3479_v2, %v3451_v15  ;;  %v3456_v50 = vadd.f32 %v4139_v30, %v3455_v17  ;;  %v4705_v1 = vpop.f32.mrb[79].mxu0  ;;  %v4145_v2 = vld [vmem:[%s6235_s19] ss:$0 sm:$0xff] }
0x120c   : > { %v3489_v21 = vmul.f32 %v3484_v18, %v3451_v15  ;;  %v3480_v22 = vmul.f32 0.044715, %v3456_v50  ;;  %v3475_v37 = vmul.f32 0.5, %v3456_v50 }
0x120d   : > { %v3460_v9 = vpop.f32.mrb[80].mxu0 }
0x120e   : > { %v3494_v8 = vadd.f32 %v3489_v21, %v3451_v15  ;;  %v3485_v23 = vmul.f32 %v3480_v22, %v3456_v50  ;;  %v3461_v25 = vadd.f32 %v4139_v30, %v3460_v9  ;;  %v4708_v13 = vpop.f32.mrb[81].mxu0 }
0x1210   : > { %v3499_v54 = vmul.f32 0.7978846, %v3494_v8  ;;  %v3490_v28 = vmul.f32 %v3485_v23, %v3456_v50  ;;  %v3481_v29 = vmul.f32 0.044715, %v3461_v25  ;;  %v3476_v5 = vmul.f32 0.5, %v3461_v25 }
0x1211   : > { %v3465_v14 = vpop.f32.mrb[82].mxu0 }
0x1212   : > { %5115 = vtanh.f32 %v3499_v54  ;;  %v3495_v20 = vadd.f32 %v3490_v28, %v3456_v50  ;;  %v3486_v33 = vmul.f32 %v3481_v29, %v3461_v25  ;;  %v3466_v34 = vadd.f32 %v4139_v30, %v3465_v14  ;;  %v4711_v38 = vpop.f32.mrb[83].mxu0 }
0x1214   : > { %v3491_v47 = vmul.f32 %v3486_v33, %v3461_v25  ;;  %v3482_v55 = vmul.f32 0.044715, %v3466_v34  ;;  %v3500_v40 = vmul.f32 0.7978846, %v3495_v20  ;;  %v3477_v10 = vmul.f32 0.5, %v3466_v34 }
0x1215   : > { %v3470_v26 = vpop.f32.mrb[84].mxu0 }
0x1216   : > { %v3496_v41 = vadd.f32 %v3491_v47, %v3461_v25  ;;  %v3487_v48 = vmul.f32 %v3482_v55, %v3466_v34  ;;  %v3471_v45 = vadd.f32 %v4139_v30, %v3470_v26  ;;  %v4714_v19 = vpop.f32.mrb[85].mxu0  ;;  %5117 = vtanh.f32 %v3500_v40 }
0x1218   : > { %v3492_v49 = vmul.f32 %v3487_v48, %v3466_v34  ;;  %v3483_v27 = vmul.f32 0.044715, %v3471_v45  ;;  %v3501_v24 = vmul.f32 0.7978846, %v3496_v41  ;;  %v3478_v12 = vmul.f32 0.5, %v3471_v45 }
0x121a   : > { %v3497_v32 = vadd.f32 %v3492_v49, %v3466_v34  ;;  %v3488_v44 = vmul.f32 %v3483_v27, %v3471_v45  ;;  %5119 = vtanh.f32 %v3501_v24 }
0x121c   : > { %v5116_v31 = vpop.eup %5115  ;;  %v3493_v60 = vmul.f32 %v3488_v44, %v3471_v45  ;;  %v3502_v56 = vmul.f32 0.7978846, %v3497_v32 }
0x121d   : > { %v3509_v35 = vadd.f32 1.0, %v5116_v31 }
0x121e   : > { %v3498_v4 = vadd.f32 %v3493_v60, %v3471_v45  ;;  %5121 = vtanh.f32 %v3502_v56 }
0x121f   : > { %v3514_v61 = vmul.f32 %v3509_v35, %v3474_v52 }
0x1220   : > { %v5118_v62 = vpop.eup %5117  ;;  %v3503_v11 = vmul.f32 0.7978846, %v3498_v4 }
0x1221   : > { %4732 = vmatmul.mubr.msk.f32.vlgmr.msra.gmra.mrb[84].mxu1 %vm3534_vm2, %v3514_v61  ;;  %v3510_v36 = vadd.f32 1.0, %v5118_v62 }
0x1222   : > { %4734 = vmatprep.mubr.msk.f32.mxu1 %vm5164_vm1, %v5165_v6  ;;  %5123 = vtanh.f32 %v3503_v11 }
0x1223   : > { %v3515_v39 = vmul.f32 %v3510_v36, %v3475_v37 }
0x1224   : > { %v5120_v57 = vpop.eup %5119 }
0x1225   : > { %4735 = vmatmul.mubr.msk.f32.gmra.mrb[86].mxu1 %vm3534_vm2, %v3515_v39  ;;  %v3511_v43 = vadd.f32 1.0, %v5120_v57 }
0x1226   : > { %4737 = vmatprep.mubr.msk.f32.mxu1 %vm5164_vm1, %v5165_v6 }
0x1227   : > { %v3516_v42 = vmul.f32 %v3511_v43, %v3476_v5  ;;  %v3734_v5 = vld [vmem:[%s6238_s22] sm:$0xff]  ;;  %v3735_v43 = vld [vmem:[%s6238_s22 + $0x8] sm:$0xff] }
0x1228   : > { %v5122_v51 = vpop.eup %5121 }
0x1229   : > { %4738 = vmatmul.mubr.msk.f32.gmra.mrb[88].mxu1 %vm3534_vm2, %v3516_v42  ;;  %v3512_v0 = vadd.f32 1.0, %v5122_v51  ;;  %v4869_v42 = vpack.c.bf16 %v3735_v43, %v3734_v5  ;;  %v3736_v51 = vld [vmem:[%s6238_s22 + $0x10] sm:$0xff] }
0x122a   : > { %4740 = vmatprep.mubr.msk.f32.mxu1 %vm5164_vm1, %v5165_v6 }
0x122b   : > { %v3517_v59 = vmul.f32 %v3512_v0, %v3477_v10  ;;  %4870 = vmatpush3.bf16.msra.mxu0 %v4869_v42  ;;  %v3737_v10 = vld [vmem:[%s6238_s22 + $0x18] sm:$0xff] }
0x122c   : > { %v5124_v30 = vpop.eup %5123  ;;  %4871 = vmatprep.subr.bf16.mxu0 %v5163_v3  ;;  %v4872_v0 = vpack.c.bf16 %v3737_v10, %v3736_v51 }
0x122d   : > { %4741 = vmatmul.mubr.msk.f32.gmra.mrb[90].mxu1 %vm3534_vm2, %v3517_v59  ;;  %v3513_v15 = vadd.f32 1.0, %v5124_v30 }
0x122e   : > { %4743 = vmatprep.mubr.msk.f32.mxu1 %vm5164_vm1, %v5165_v6 }
0x122f   : > { %v3518_v16 = vmul.f32 %v3513_v15, %v3478_v12  ;;  %4873 = vmatpush3.bf16.msra.mxu0 %v4872_v0 }
0x1231   : > { %4744 = vmatmul.mubr.msk.f32.gmra.mrb[92].mxu1 %vm3534_vm2, %v3518_v16 }
0x12f4   : > { %v3616_v17 = vpop.f32.mrb[84].mxu1 }
0x12f5   : > { %v3617_v18 = vadd.f32 %v4145_v2, %v3616_v17  ;;  %v4733_v50 = vpop.f32.mrb[85].mxu1 }
0x12f7   : > { %v3640_v1 = vadd.f32 %v3617_v18, %v6059_v46 }
0x12f8   : > { %v3621_v21 = vpop.f32.mrb[86].mxu1 }
0x12f9   : > { %v3622_v22 = vadd.f32 %v4145_v2, %v3621_v21  ;;  %v4736_v9 = vpop.f32.mrb[87].mxu1  ;;  %v3647_v8 = vsel %vm1321_vm8, %v3640_v1, 0.0 }
0x12fa   : > { %3648 = vadd.xlane.f32.xlu0 %v3647_v8 }
0x12fb   : > { %v3641_v23 = vadd.f32 %v3622_v22, %v6065_v53  ;;  %v4151_v22 = vld [vmem:[%s6236_s20] ss:$0 sm:$0xff] }
0x12fc   : > { %v3626_v25 = vpop.f32.mrb[88].mxu1 }
0x12fd   : > { %v3627_v13 = vadd.f32 %v4145_v2, %v3626_v25  ;;  %v4739_v54 = vpop.f32.mrb[89].mxu1  ;;  %v3650_v28 = vsel %vm1321_vm8, %v3641_v23, 0.0  ;;  %v4152_v25 = vld [vmem:[%s6237_s21] ss:$0 sm:$0xff] }
0x12fe   : > { %3651 = vadd.xlane.f32.xlu1 %v3650_v28 }
0x12ff   : > { %v3642_v29 = vadd.f32 %v3627_v13, %v6071_v58 }
0x1300   : > { %v3631_v14 = vpop.f32.mrb[90].mxu1 }
0x1301   : > { %v3632_v20 = vadd.f32 %v4145_v2, %v3631_v14  ;;  %v4742_v33 = vpop.f32.mrb[91].mxu1  ;;  %v3653_v46 = vsel %vm1321_vm8, %v3642_v29, 0.0 }
0x1302   : > { %3654 = vadd.xlane.f32.xlu0 %v3653_v46 }
0x1303   : > { %v3643_v34 = vadd.f32 %v3632_v20, %v6077_v7 }
0x1304   : > { %v3636_v38 = vpop.f32.mrb[92].mxu1 }
0x1305   : > { %v3637_v47 = vadd.f32 %v4145_v2, %v3636_v38  ;;  %v4745_v55 = vpop.f32.mrb[93].mxu1  ;;  %v3656_v53 = vsel %vm1321_vm8, %v3643_v34, 0.0 }
0x1306   : > { %3657 = vadd.xlane.f32.xlu1 %v3656_v53 }
0x1307   : > { %v3644_v40 = vadd.f32 %v3637_v47, %v6083_v63 }
0x1309   : > { %v3659_v26 = vsel %vm1334_vm9, %v3644_v40, 0.0 }
0x130a   : > { %3660 = vadd.xlane.f32.xlu0 %v3659_v26 }
0x1387   : > { %v3649_v58 = vpop.xlane.xlu0 %3648 }
0x1388   : > { %v3662_v41 = vmul.f32 0.03125, %v3649_v58 }
0x138a   : > { %v3667_v48 = vsub.f32 %v3640_v1, %v3662_v41 }
0x138b   : > { %v3652_v45 = vpop.xlane.xlu1 %3651 }
0x138c   : > { %v3663_v19 = vmul.f32 0.03125, %v3652_v45  ;;  %v3672_v49 = vmul.f32 %v3667_v48, %v3667_v48 }
0x138e   : > { %v3668_v27 = vsub.f32 %v3641_v23, %v3663_v19  ;;  %v3677_v7 = vsel %vm1321_vm8, %v3672_v49, 0.0  ;;  %v4153_v49 = vld [vmem:[%s6239_s23] ss:$0 sm:$0xff] }
0x138f   : > { %v3655_v24 = vpop.xlane.xlu0 %3654  ;;  %3678 = vadd.xlane.f32.xlu1 %v3677_v7 }
0x1390   : > { %v3664_v32 = vmul.f32 0.03125, %v3655_v24  ;;  %v3673_v44 = vmul.f32 %v3668_v27, %v3668_v27 }
0x1392   : > { %v3669_v31 = vsub.f32 %v3642_v29, %v3664_v32  ;;  %v3680_v60 = vsel %vm1321_vm8, %v3673_v44, 0.0 }
0x1393   : > { %v3658_v63 = vpop.xlane.xlu1 %3657  ;;  %3681 = vadd.xlane.f32.xlu0 %v3680_v60 }
0x1394   : > { %v3665_v56 = vmul.f32 0.03125, %v3658_v63  ;;  %v3674_v52 = vmul.f32 %v3669_v31, %v3669_v31 }
0x1396   : > { %v3670_v35 = vsub.f32 %v3643_v34, %v3665_v56  ;;  %v3683_v4 = vsel %vm1321_vm8, %v3674_v52, 0.0 }
0x1397   : > { %3684 = vadd.xlane.f32.xlu1 %v3683_v4  ;;  %v3661_v61 = vpop.xlane.xlu0 %3660 }
0x1398   : > { %v3666_v62 = vmul.f32 0.03125, %v3661_v61  ;;  %v3675_v11 = vmul.f32 %v3670_v35, %v3670_v35 }
0x139a   : > { %v3671_v37 = vsub.f32 %v3644_v40, %v3666_v62  ;;  %v3686_v36 = vsel %vm1321_vm8, %v3675_v11, 0.0 }
0x139b   : > { %3687 = vadd.xlane.f32.xlu0 %v3686_v36 }
0x139c   : > { %v3676_v39 = vmul.f32 %v3671_v37, %v3671_v37 }
0x139e   : > { %v3689_v57 = vsel %vm1334_vm9, %v3676_v39, 0.0 }
0x139f   : > { %3690 = vadd.xlane.f32.xlu1 %v3689_v57 }
0x141c   : > { %v3679_v59 = vpop.xlane.xlu1 %3678 }
0x141d   : > { %v3692_v30 = vmul.f32 0.03125, %v3679_v59 }
0x141f   : > { %v3697_v12 = vadd.f32 1e-05, %v3692_v30 }
0x1420   : > { %v3682_v15 = vpop.xlane.xlu0 %3681 }
0x1421   : > { %5125 = vrsqrt.f32 %v3697_v12  ;;  %v3693_v16 = vmul.f32 0.03125, %v3682_v15 }
0x1423   : > { %v3698_v2 = vadd.f32 1e-05, %v3693_v16 }
0x1424   : > { %v3685_v17 = vpop.xlane.xlu1 %3684 }
0x1425   : > { %5127 = vrsqrt.f32 %v3698_v2  ;;  %v3694_v3 = vmul.f32 0.03125, %v3685_v17 }
0x1427   : > { %v3699_v18 = vadd.f32 1e-05, %v3694_v3 }
0x1428   : > { %v3688_v50 = vpop.xlane.xlu0 %3687 }
0x1429   : > { %5129 = vrsqrt.f32 %v3699_v18  ;;  %v3695_v1 = vmul.f32 0.03125, %v3688_v50 }
0x142b   : > { %v5126_v21 = vpop.eup %5125  ;;  %v3700_v9 = vadd.f32 1e-05, %v3695_v1 }
0x142c   : > { %v3707_v8 = vmul.f32 %v5126_v21, %v3667_v48  ;;  %v3691_v23 = vpop.xlane.xlu1 %3690 }
0x142d   : > { %5131 = vrsqrt.f32 %v3700_v9  ;;  %v3696_v13 = vmul.f32 0.03125, %v3691_v23 }
0x142e   : > { %v3718_v54 = vmul.f32 %v4151_v22, %v3707_v8 }
0x142f   : > { %v5128_v28 = vpop.eup %5127  ;;  %v3701_v29 = vadd.f32 1e-05, %v3696_v13 }
0x1430   : > { %v3729_v14 = vadd.f32 %v4152_v25, %v3718_v54  ;;  %v3708_v20 = vmul.f32 %v5128_v28, %v3668_v27 }
0x1431   : > { %5133 = vrsqrt.f32 %v3701_v29 }
0x1432   : > { %4755 = vmatmul.mubr.msk.f32.vlgmr.msra.gmra.mrb[86].mxu0 %vm1321_vm8, %v3729_v14  ;;  %v3719_v33 = vmul.f32 %v4151_v22, %v3708_v20 }
0x1433   : > { %v5130_v46 = vpop.eup %5129  ;;  %4757 = vmatprep.mubr.msk.f32.mxu0 %vm5164_vm1, %v5165_v6 }
0x1434   : > { %v3730_v34 = vadd.f32 %v4152_v25, %v3719_v33  ;;  %v3709_v38 = vmul.f32 %v5130_v46, %v3669_v31 }
0x1436   : > { %4758 = vmatmul.mubr.msk.f32.gmra.mrb[88].mxu0 %vm1321_vm8, %v3730_v34  ;;  %v3720_v47 = vmul.f32 %v4151_v22, %v3709_v38 }
0x1437   : > { %v5132_v55 = vpop.eup %5131  ;;  %4760 = vmatprep.mubr.msk.f32.mxu0 %vm5164_vm1, %v5165_v6 }
0x1438   : > { %v3731_v53 = vadd.f32 %v4152_v25, %v3720_v47  ;;  %v3710_v40 = vmul.f32 %v5132_v55, %v3670_v35 }
0x143a   : > { %4761 = vmatmul.mubr.msk.f32.gmra.mrb[90].mxu0 %vm1321_vm8, %v3731_v53  ;;  %v3721_v26 = vmul.f32 %v4151_v22, %v3710_v40 }
0x143b   : > { %v5134_v58 = vpop.eup %5133  ;;  %4763 = vmatprep.mubr.msk.f32.mxu0 %vm5164_vm1, %v5165_v6 }
0x143c   : > { %v3732_v41 = vadd.f32 %v4152_v25, %v3721_v26  ;;  %v3711_v48 = vmul.f32 %v5134_v58, %v3671_v37 }
0x143e   : > { %4764 = vmatmul.mubr.msk.f32.gmra.mrb[92].mxu0 %vm1321_vm8, %v3732_v41  ;;  %v3722_v45 = vmul.f32 %v4151_v22, %v3711_v48 }
0x143f   : > { %4766 = vmatprep.mubr.msk.f32.mxu0 %vm5164_vm1, %v5165_v6 }
0x1440   : > { %v3733_v19 = vadd.f32 %v4152_v25, %v3722_v45 }
0x1442   : > { %4767 = vmatmul.mubr.msk.f32.gmra.mrb[94].mxu0 %vm1321_vm8, %v3733_v19 }
0x1505   : > { %v3826_v27 = vpop.f32.mrb[86].mxu0 }
0x1506   : > { %v3827_v7 = vadd.f32 %v4153_v49, %v3826_v27  ;;  %v4756_v24 = vpop.f32.mrb[87].mxu0 }
0x1508   : > { %3850 = vst.msk [vmem:[%s786_s0] sm:$0xff] %vm1321_vm8, %v3827_v7  ;;  %v3855_v32 = vsel %vm1321_vm8, %v3827_v7, -inf }
0x1509   : > { %3856 = vmax.xlane.f32.xlu0 %v3855_v32  ;;  %v3831_v6 = vpop.f32.mrb[88].mxu0 }
0x150a   : > { %v3832_v44 = vadd.f32 %v4153_v49, %v3831_v6  ;;  %v4759_v31 = vpop.f32.mrb[89].mxu0 }
0x150c   : > { %3851 = vst.msk [vmem:[%s786_s0 + $0x8] sm:$0xff] %vm1321_vm8, %v3832_v44  ;;  %v3858_v60 = vsel %vm1321_vm8, %v3832_v44, -inf }
0x150d   : > { %3859 = vmax.xlane.f32.xlu1 %v3858_v60  ;;  %v3836_v63 = vpop.f32.mrb[90].mxu0 }
0x150e   : > { %v3837_v56 = vadd.f32 %v4153_v49, %v3836_v63  ;;  %v4762_v52 = vpop.f32.mrb[91].mxu0 }
0x1510   : > { %3852 = vst.msk [vmem:[%s786_s0 + $0x10] sm:$0xff] %vm1321_vm8, %v3837_v56  ;;  %v3861_v35 = vsel %vm1321_vm8, %v3837_v56, -inf }
0x1511   : > { %3862 = vmax.xlane.f32.xlu0 %v3861_v35  ;;  %v3841_v4 = vpop.f32.mrb[92].mxu0 }
0x1512   : > { %v3842_v61 = vadd.f32 %v4153_v49, %v3841_v4  ;;  %v4765_v62 = vpop.f32.mrb[93].mxu0 }
0x1514   : > { %3853 = vst.msk [vmem:[%s786_s0 + $0x18] sm:$0xff] %vm1321_vm8, %v3842_v61  ;;  %v3864_v11 = vsel %vm1321_vm8, %v3842_v61, -inf }
0x1515   : > { %3865 = vmax.xlane.f32.xlu1 %v3864_v11  ;;  %v3846_v37 = vpop.f32.mrb[94].mxu0 }
0x1516   : > { %v3847_v36 = vadd.f32 %v4153_v49, %v3846_v37  ;;  %v4768_v39 = vpop.f32.mrb[95].mxu0 }
0x1518   : > { %3854 = vst.msk [vmem:[%s786_s0 + $0x20] sm:$0x7f] %vm1334_vm9, %v3847_v36  ;;  %v3867_v57 = vsel %vm1334_vm9, %v3847_v36, -inf }
0x1519   : > { %3868 = vmax.xlane.f32.xlu0 %v3867_v57 }
0x1596   : > { %v3857_v5 = vpop.xlane.xlu0 %3856 }
0x1597   : > { %v3870_v43 = vsub.f32 %v3827_v7, %v3857_v5 }
0x1599   : > { %v3875_v42 = vmul.f32 1.442695, %v3870_v43 }
0x159a   : > { %v3860_v51 = vpop.xlane.xlu1 %3859 }
0x159b   : > { %5135 = vpow2.f32 %v3875_v42  ;;  %v3871_v10 = vsub.f32 %v3832_v44, %v3860_v51 }
0x159d   : > { %v3877_v0 = vmul.f32 1.442695, %v3871_v10 }
0x159e   : > { %v3863_v59 = vpop.xlane.xlu0 %3862 }
0x159f   : > { %5137 = vpow2.f32 %v3877_v0  ;;  %v3872_v30 = vsub.f32 %v3837_v56, %v3863_v59 }
0x15a1   : > { %v3879_v12 = vmul.f32 1.442695, %v3872_v30 }
0x15a2   : > { %v3866_v15 = vpop.xlane.xlu1 %3865 }
0x15a3   : > { %5139 = vpow2.f32 %v3879_v12  ;;  %v3873_v16 = vsub.f32 %v3842_v61, %v3866_v15 }
0x15a5   : > { %v5136_v2 = vpop.eup %5135  ;;  %v3881_v17 = vmul.f32 1.442695, %v3873_v16 }
0x15a6   : > { %v3869_v3 = vpop.xlane.xlu0 %3868  ;;  %v3885_v18 = vsel %vm1321_vm8, %v5136_v2, 0.0 }
0x15a7   : > { %5141 = vpow2.f32 %v3881_v17  ;;  %v3874_v50 = vsub.f32 %v3847_v36, %v3869_v3  ;;  %3886 = vadd.xlane.f32.xlu1 %v3885_v18 }
0x15a9   : > { %v5138_v1 = vpop.eup %5137  ;;  %v3883_v21 = vmul.f32 1.442695, %v3874_v50 }
0x15aa   : > { %v3888_v22 = vsel %vm1321_vm8, %v5138_v1, 0.0 }
0x15ab   : > { %5143 = vpow2.f32 %v3883_v21  ;;  %3889 = vadd.xlane.f32.xlu0 %v3888_v22 }
0x15ad   : > { %v5140_v9 = vpop.eup %5139 }
0x15ae   : > { %v3891_v8 = vsel %vm1321_vm8, %v5140_v9, 0.0 }
0x15af   : > { %3892 = vadd.xlane.f32.xlu1 %v3891_v8 }
0x15b1   : > { %v5142_v23 = vpop.eup %5141 }
0x15b2   : > { %v3894_v25 = vsel %vm1321_vm8, %v5142_v23, 0.0 }
0x15b3   : > { %3895 = vadd.xlane.f32.xlu0 %v3894_v25 }
0x15b5   : > { %v5144_v13 = vpop.eup %5143 }
0x15b6   : > { %v3897_v54 = vsel %vm1334_vm9, %v5144_v13, 0.0 }
0x15b7   : > { %3898 = vadd.xlane.f32.xlu1 %v3897_v54 }
0x1634   : > { %v3887_v28 = vpop.xlane.xlu1 %3886 }
0x1635   : > { %5145 = vlog2.f32 %v3887_v28 }
0x1638   : > { %v3890_v29 = vpop.xlane.xlu0 %3889 }
0x1639   : > { %5147 = vlog2.f32 %v3890_v29 }
0x163c   : > { %v3893_v14 = vpop.xlane.xlu1 %3892 }
0x163d   : > { %5149 = vlog2.f32 %v3893_v14 }
0x163f   : > { %v5146_v20 = vpop.eup %5145 }
0x1640   : > { %v3901_v33 = vmul.f32 0.6931472, %v5146_v20  ;;  %v3896_v46 = vpop.xlane.xlu0 %3895 }
0x1641   : > { %5151 = vlog2.f32 %v3896_v46 }
0x1642   : > { %v3910_v34 = vsub.f32 %v3870_v43, %v3901_v33 }
0x1643   : > { %v5148_v38 = vpop.eup %5147 }
0x1644   : > { %3915 = vst.msk [vmem:[%s791_s3] sm:$0xff] %vm1321_vm8, %v3910_v34  ;;  %v3903_v47 = vmul.f32 0.6931472, %v5148_v38  ;;  %v3899_v55 = vpop.xlane.xlu1 %3898 }
0x1645   : > { %5153 = vlog2.f32 %v3899_v55 }
0x1646   : > { %v3911_v53 = vsub.f32 %v3871_v10, %v3903_v47 }
0x1647   : > { %v5150_v40 = vpop.eup %5149 }
0x1648   : > { %3916 = vst.msk [vmem:[%s791_s3 + $0x8] sm:$0xff] %vm1321_vm8, %v3911_v53  ;;  %v3905_v26 = vmul.f32 0.6931472, %v5150_v40 }
0x164a   : > { %v3912_v58 = vsub.f32 %v3872_v30, %v3905_v26 }
0x164b   : > { %v5152_v41 = vpop.eup %5151 }
0x164c   : > { %3917 = vst.msk [vmem:[%s791_s3 + $0x10] sm:$0xff] %vm1321_vm8, %v3912_v58  ;;  %v3907_v48 = vmul.f32 0.6931472, %v5152_v41 }
0x164e   : > { %v3913_v45 = vsub.f32 %v3873_v16, %v3907_v48 }
0x164f   : > { %v5154_v19 = vpop.eup %5153 }
0x1650   : > { %3918 = vst.msk [vmem:[%s791_s3 + $0x18] sm:$0xff] %vm1321_vm8, %v3913_v45  ;;  %v3909_v49 = vmul.f32 0.6931472, %v5154_v19 }
0x1652   : > { %v3914_v27 = vsub.f32 %v3874_v50, %v3909_v49 }
0x1654   : > { %3919 = vst.msk [vmem:[%s791_s3 + $0x20] sm:$0x7f] %vm1334_vm9, %v3914_v27 }
0x1655 PF: > { %s36_s29 = sadd.s32 1, %s5161_s29  }
0x1656   : > { %p33_p4 = scmp.ge.s32.totalorder %s36_s29, 4  }
0x1658   :  { %35 = sbr.rel (!%p33_p4) target bundleno = 11 (0xb), region = 161 }

</bundles_post_ra>
